<compile_context>
chip_gen: v7x
topology: tpu7x:2x2x1
jax: 0.10.0
libtpu: 0.0.40
codegen_flags: <defaults>
</compile_context>

<pallas_src>
import functools

import jax
import jax.numpy as jnp
from jax.experimental import pallas as pl
from jax.experimental.pallas import tpu as pltpu


# ---------------------------------------------------------------------------
# helpers
# ---------------------------------------------------------------------------
def _round_up(x, m):
    return (x + m - 1) // m * m


def _pick_chunk(T, max_chunk=32):
    """Largest divisor of T that is <= max_chunk (timesteps per grid step)."""
    for c in range(min(T, max_chunk), 0, -1):
        if T % c == 0:
            return c
    return 1


# ---------------------------------------------------------------------------
# GRU layer kernel
#   grid = (T // T_CHUNK,), sequential ("arbitrary"); hidden state carried in a
#   VMEM scratch that persists across grid iterations.
# ---------------------------------------------------------------------------
def _gru_layer_kernel(*refs, t_chunk, b_pad, h_pad, fuse_fc):
    if fuse_fc:
        (x_ref, w_ih_ref, w_hh_ref, b_i_ref, b_hn_ref,
         w_fc_ref, b_fc_ref, out_ref, h_ref) = refs
    else:
        (x_ref, w_ih_ref, w_hh_ref, b_i_ref, b_hn_ref,
         out_ref, h_ref) = refs

    c = pl.program_id(0)

    @pl.when(c == 0)
    def _():
        # h0 = zeros, matching torch.zeros(num_layers, B, H)
        h_ref[...] = jnp.zeros_like(h_ref)

    # ---- Phase 1: hoisted input projection for the whole chunk (one big matmul).
    d_in = x_ref.shape[-1]
    x_chunk = x_ref[...].reshape(t_chunk * b_pad, d_in)          # (T_CHUNK*B_pad, D)
    gi = (jnp.dot(x_chunk, w_ih_ref[...],
                  preferred_element_type=jnp.float32)
          + b_i_ref[...])                                        # (T_CHUNK*B_pad, 3*H_pad)

    w_hh = w_hh_ref[...]                                         # resident across inner loop
    b_hn = jnp.broadcast_to(b_hn_ref[...], (b_pad, h_pad))       # broadcast hoisted once

    # ---- Phase 2: sequential recurrence; only h @ W_hh on the critical path.
    # t_chunk is a static Python int -> fully unrolled for LLO scheduler visibility.
    for t in range(t_chunk):
        h_prev = h_ref[...]
        gh = jnp.dot(h_prev, w_hh, preferred_element_type=jnp.float32)   # (B_pad, 3*H_pad)
        gi_t = gi[t * b_pad:(t + 1) * b_pad]                             # static sublane slice
        # static lane slices at multiples of 128 (no tile-boundary copies)
        r = jax.nn.sigmoid(gi_t[:, :h_pad] + gh[:, :h_pad])
        z = jax.nn.sigmoid(gi_t[:, h_pad:2 * h_pad] + gh[:, h_pad:2 * h_pad])
        n = jnp.tanh(gi_t[:, 2 * h_pad:] + r * (gh[:, 2 * h_pad:] + b_hn))
        h_new = (1.0 - z) * n + z * h_prev
        h_ref[...] = h_new
        if not fuse_fc:
            out_ref[t] = h_new

    if fuse_fc:
        # Final layer: emit only logits = last_h @ W_fc + b_fc (no (T,B,H) writeback).
        @pl.when(c == pl.num_programs(0) - 1)
        def _():
            out_ref[...] = (jnp.dot(h_ref[...], w_fc_ref[...],
                                    preferred_element_type=jnp.float32)
                            + b_fc_ref[...])


def _gru_layer(x_tbd, w_ih, w_hh, b_i, b_hn, *, t_chunk, fc_w=None, fc_b=None):
    """One GRU layer on padded, time-major input.

    x_tbd: (T, B_pad, D_pad).
    Returns (T, B_pad, H_pad) if fc_w is None, else fused-FC logits (B_pad, C_pad).
    """
    T, b_pad, d_pad = x_tbd.shape
    h_pad = w_hh.shape[0]
    n_chunks = T // t_chunk
    fuse_fc = fc_w is not None

    kernel = functools.partial(_gru_layer_kernel, t_chunk=t_chunk,
                               b_pad=b_pad, h_pad=h_pad, fuse_fc=fuse_fc)

    in_specs = [
        pl.BlockSpec((t_chunk, b_pad, d_pad), lambda c: (c, 0, 0)),   # x chunk
        pl.BlockSpec((d_pad, 3 * h_pad), lambda c: (0, 0)),           # W_ih (fused gates)
        pl.BlockSpec((h_pad, 3 * h_pad), lambda c: (0, 0)),           # W_hh (fused gates)
        pl.BlockSpec((1, 3 * h_pad), lambda c: (0, 0)),               # folded input bias
        pl.BlockSpec((1, h_pad), lambda c: (0, 0)),                   # b_hh_n
    ]
    args = [x_tbd, w_ih, w_hh, b_i, b_hn]

    if fuse_fc:
        c_pad = fc_w.shape[1]
        in_specs += [pl.BlockSpec((h_pad, c_pad), lambda c: (0, 0)),
                     pl.BlockSpec((1, c_pad), lambda c: (0, 0))]
        args += [fc_w, fc_b]
        out_shape = jax.ShapeDtypeStruct((b_pad, c_pad), jnp.float32)
        out_specs = pl.BlockSpec((b_pad, c_pad), lambda c: (0, 0))
    else:
        out_shape = jax.ShapeDtypeStruct((T, b_pad, h_pad), jnp.float32)
        out_specs = pl.BlockSpec((t_chunk, b_pad, h_pad), lambda c: (c, 0, 0))

    return pl.pallas_call(
        kernel,
        out_shape=out_shape,
        grid_spec=pltpu.PrefetchScalarGridSpec(
            num_scalar_prefetch=0,
            grid=(n_chunks,),
            in_specs=in_specs,
            out_specs=out_specs,
            scratch_shapes=[pltpu.VMEM((b_pad, h_pad), jnp.float32)],  # carried hidden state
        ),
        compiler_params=pltpu.CompilerParams(
            dimension_semantics=("arbitrary",)),  # time recurrence is sequential
    )(*args)


# ---------------------------------------------------------------------------
# Full model forward: x (B, T, input_size) -> logits (B, num_classes)
# ---------------------------------------------------------------------------
@functools.partial(jax.jit, static_argnames=("num_classes",))
def gru_model_forward(x_btd, packed, *, num_classes):
    B, T, D = x_btd.shape
    b_pad = _round_up(B, 8)
    d_pad = packed["layers"][0]["w_ih"].shape[0]
    t_chunk = _pick_chunk(T)

    # Pad (B->B_pad sublane, D->D_pad lane) and go time-major in one fused XLA pass.
    xp = jnp.pad(x_btd.astype(jnp.float32),
                 ((0, b_pad - B), (0, 0), (0, d_pad - D)))
    xp = jnp.transpose(xp, (1, 0, 2))                     # (T, B_pad, D_pad)

    n_layers = len(packed["layers"])
    h = xp
    out = None
    for li, layer in enumerate(packed["layers"]):
        if li == n_layers - 1:
            out = _gru_layer(h, layer["w_ih"], layer["w_hh"],
                             layer["b_i"], layer["b_hn"], t_chunk=t_chunk,
                             fc_w=packed["fc_w"], fc_b=packed["fc_b"])
        else:
            h = _gru_layer(h, layer["w_ih"], layer["w_hh"],
                           layer["b_i"], layer["b_hn"], t_chunk=t_chunk)
    return out[:B, :num_classes]


# ---------------------------------------------------------------------------
# Parameters: natural (PyTorch-like) layout + a one-time packing step that
# pads/fuses gates and pre-folds biases into the kernel-facing layout.
# ---------------------------------------------------------------------------
def init_params(key, input_size, hidden_size, num_layers, num_classes):
    k = 1.0 / (hidden_size ** 0.5)
    layers = []
    for layer_idx in range(num_layers):
        d_in = input_size if layer_idx == 0 else hidden_size
        key, k1, k2, k3, k4 = jax.random.split(key, 5)
        layers.append(dict(
            w_ih=jax.random.uniform(k1, (3, d_in, hidden_size), jnp.float32, -k, k),
            w_hh=jax.random.uniform(k2, (3, hidden_size, hidden_size), jnp.float32, -k, k),
            b_ih=jax.random.uniform(k3, (3, hidden_size), jnp.float32, -k, k),
            b_hh=jax.random.uniform(k4, (3, hidden_size), jnp.float32, -k, k),
        ))
    key, k5, k6 = jax.random.split(key, 3)
    return dict(
        gru_layers=layers,
        fc_w=jax.random.uniform(k5, (hidden_size, num_classes), jnp.float32, -k, k),
        fc_b=jax.random.uniform(k6, (num_classes,), jnp.float32, -k, k),
    )


def pack_params(params):
    """Pad to (8,128) tiles, fuse gate matmuls, pre-fold biases. Called once."""
    hidden = params["fc_w"].shape[0]
    n_cls = params["fc_w"].shape[1]
    h_pad = _round_up(hidden, 128)
    c_pad = _round_up(n_cls, 128)

    layers = []
    for layer in params["gru_layers"]:
        d_in = layer["w_ih"].shape[1]
        d_pad = _round_up(d_in, 128)
        w_ih = jnp.pad(layer["w_ih"], ((0, 0), (0, d_pad - d_in), (0, h_pad - hidden)))
        w_hh = jnp.pad(layer["w_hh"], ((0, 0), (0, h_pad - hidden), (0, h_pad - hidden)))
        b_ih = jnp.pad(layer["b_ih"], ((0, 0), (0, h_pad - hidden)))
        b_hh = jnp.pad(layer["b_hh"], ((0, 0), (0, h_pad - hidden)))
        layers.append(dict(
            # fused-gate weights: [r | z | n] along lanes
            w_ih=jnp.concatenate([w_ih[0], w_ih[1], w_ih[2]], axis=-1),   # (D_pad, 3*H_pad)
            w_hh=jnp.concatenate([w_hh[0], w_hh[1], w_hh[2]], axis=-1),   # (H_pad, 3*H_pad)
            # folded input-projection bias: b_ih+b_hh for r,z; b_ih only for n
            b_i=jnp.concatenate([b_ih[0] + b_hh[0], b_ih[1] + b_hh[1], b_ih[2]],
                                axis=-1).reshape(1, 3 * h_pad),
            # b_hh_n stays inside r * (h@W_hh_n + b_hh_n)
            b_hn=b_hh[2].reshape(1, h_pad),
        ))

    fc_w = jnp.pad(params["fc_w"], ((0, h_pad - hidden), (0, c_pad - n_cls)))
    fc_b = jnp.pad(params["fc_b"], ((0, c_pad - n_cls),)).reshape(1, c_pad)
    return dict(layers=layers, fc_w=fc_w, fc_b=fc_b)


# ---------------------------------------------------------------------------
# Pure-JAX reference (same math as torch nn.GRU + Linear) for correctness check.
# ---------------------------------------------------------------------------
def _ref_forward(x_btd, params):
    B, T, _ = x_btd.shape
    out = x_btd
    for layer in params["gru_layers"]:
        H = layer["w_hh"].shape[-1]
        h = jnp.zeros((B, H), jnp.float32)
        ys = []
        for t in range(T):
            xt = out[:, t, :]
            gi = [xt @ layer["w_ih"][g] + layer["b_ih"][g] for g in range(3)]
            gh = [h @ layer["w_hh"][g] + layer["b_hh"][g] for g in range(3)]
            r = jax.nn.sigmoid(gi[0] + gh[0])
            z = jax.nn.sigmoid(gi[1] + gh[1])
            n = jnp.tanh(gi[2] + r * gh[2])
            h = (1.0 - z) * n + z * h
            ys.append(h)
        out = jnp.stack(ys, axis=1)
    return out[:, -1, :] @ params["fc_w"] + params["fc_b"]


if __name__ == "__main__":
    B, T = 2, 8
    INPUT_SIZE, HIDDEN_SIZE, NUM_LAYERS, NUM_CLASSES = 16, 32, 2, 4

    key = jax.random.PRNGKey(0)
    key, xkey = jax.random.split(key)
    x = jax.random.normal(xkey, (B, T, INPUT_SIZE), jnp.float32)
    params = init_params(key, INPUT_SIZE, HIDDEN_SIZE, NUM_LAYERS, NUM_CLASSES)
    packed = pack_params(params)

    out = gru_model_forward(x, packed, num_classes=NUM_CLASSES)
    jax.block_until_ready(out)
    assert out.shape == (B, NUM_CLASSES)

    ref = _ref_forward(x, params)
    assert jnp.allclose(out, ref, atol=1e-4, rtol=1e-4), "mismatch vs reference"

    print("KERNEL_OK")
</pallas_src>

<mosaic_0001>
module attributes {stable_mosaic.version = 11 : i64} {
  func.func @_gru_layer_kernel(%arg0: i32, %arg1: memref<8x8x128xf32, #tpu.memory_space<vmem>>, %arg2: memref<128x384xf32, #tpu.memory_space<vmem>>, %arg3: memref<128x384xf32, #tpu.memory_space<vmem>>, %arg4: memref<1x384xf32, #tpu.memory_space<vmem>>, %arg5: memref<1x128xf32, #tpu.memory_space<vmem>>, %arg6: memref<128x128xf32, #tpu.memory_space<vmem>>, %arg7: memref<1x128xf32, #tpu.memory_space<vmem>>, %arg8: memref<8x128xf32, #tpu.memory_space<vmem>>, %arg9: memref<8x128xf32, #tpu.memory_space<vmem>>) attributes {dimension_semantics = [#tpu.dimension_semantics<arbitrary>], iteration_bounds = array<i64: 1>, scalar_prefetch = 0 : i64, scratch_operands = 1 : i64, tpu.core_type = #tpu.core_type<tc>, window_params = [{transform_indices = @transform_0, window_bounds = array<i64: 8, 8, 128>}, {pipeline_mode = #tpu.pipeline_mode<synchronous>, transform_indices = @transform_1, window_bounds = array<i64: 128, 384>}, {pipeline_mode = #tpu.pipeline_mode<synchronous>, transform_indices = @transform_2, window_bounds = array<i64: 128, 384>}, {pipeline_mode = #tpu.pipeline_mode<synchronous>, transform_indices = @transform_3, window_bounds = array<i64: 1, 384>}, {pipeline_mode = #tpu.pipeline_mode<synchronous>, transform_indices = @transform_4, window_bounds = array<i64: 1, 128>}, {pipeline_mode = #tpu.pipeline_mode<synchronous>, transform_indices = @transform_5, window_bounds = array<i64: 128, 128>}, {pipeline_mode = #tpu.pipeline_mode<synchronous>, transform_indices = @transform_6, window_bounds = array<i64: 1, 128>}, {pipeline_mode = #tpu.pipeline_mode<synchronous>, transform_indices = @transform_7, window_bounds = array<i64: 8, 128>}]} {
    %c0_i32 = arith.constant 0 : i32
    %0 = arith.cmpi eq, %arg0, %c0_i32 : i32
    %1 = arith.extui %0 : i1 to i32
    %c0_i32_0 = arith.constant 0 : i32
    %2 = arith.cmpi ne, %1, %c0_i32_0 : i32
    scf.if %2 {
      %cst_77 = arith.constant 0.000000e+00 : f32
      %265 = vector.broadcast %cst_77 : f32 to vector<8x128xf32>
      %c0_78 = arith.constant 0 : index
      %c0_79 = arith.constant 0 : index
      %266 = vector.load %arg9[%c0_78, %c0_79] : memref<8x128xf32, #tpu.memory_space<vmem>>, vector<8x128xf32>
      tpu.vector_store %arg9[%c0_78, %c0_79], %265 {strides = array<i32>} : memref<8x128xf32, #tpu.memory_space<vmem>>, vector<8x128xf32>,
    } else {
    }
    %c0 = arith.constant 0 : index
    %c0_1 = arith.constant 0 : index
    %c0_2 = arith.constant 0 : index
    %3 = vector.load %arg1[%c0, %c0_1, %c0_2] : memref<8x8x128xf32, #tpu.memory_space<vmem>>, vector<8x8x128xf32>
    %4 = vector.shape_cast %3 : vector<8x8x128xf32> to vector<64x128xf32>
    %c0_3 = arith.constant 0 : index
    %c0_4 = arith.constant 0 : index
    %5 = vector.load %arg2[%c0_3, %c0_4] : memref<128x384xf32, #tpu.memory_space<vmem>>, vector<128x384xf32>
    %cst = arith.constant dense<0.000000e+00> : vector<64x384xf32>
    %6 = tpu.matmul %4, %5, %cst {dimension_numbers = #tpu.dot_dimension_numbers<[1], [0], [0], [1], [0, 0, 1, 1], [], []>} : vector<64x128xf32>, vector<128x384xf32>, vector<64x384xf32> -> vector<64x384xf32>
    %c0_5 = arith.constant 0 : index
    %c0_6 = arith.constant 0 : index
    %7 = vector.load %arg4[%c0_5, %c0_6] : memref<1x384xf32, #tpu.memory_space<vmem>>, vector<1x384xf32>
    %8 = vector.broadcast %7 : vector<1x384xf32> to vector<64x384xf32>
    %9 = arith.addf %6, %8 : vector<64x384xf32>
    %c0_7 = arith.constant 0 : index
    %c0_8 = arith.constant 0 : index
    %10 = vector.load %arg3[%c0_7, %c0_8] : memref<128x384xf32, #tpu.memory_space<vmem>>, vector<128x384xf32>
    %c0_9 = arith.constant 0 : index
    %c0_10 = arith.constant 0 : index
    %11 = vector.load %arg5[%c0_9, %c0_10] : memref<1x128xf32, #tpu.memory_space<vmem>>, vector<1x128xf32>
    %12 = vector.shape_cast %11 : vector<1x128xf32> to vector<1x128xf32>
    %13 = vector.broadcast %12 : vector<1x128xf32> to vector<8x128xf32>
    %c0_11 = arith.constant 0 : index
    %c0_12 = arith.constant 0 : index
    %14 = vector.load %arg9[%c0_11, %c0_12] : memref<8x128xf32, #tpu.memory_space<vmem>>, vector<8x128xf32>
    %cst_13 = arith.constant dense<0.000000e+00> : vector<8x384xf32>
    %15 = tpu.matmul %14, %10, %cst_13 {dimension_numbers = #tpu.dot_dimension_numbers<[1], [0], [0], [1], [0, 0, 1, 1], [], []>} : vector<8x128xf32>, vector<128x384xf32>, vector<8x384xf32> -> vector<8x384xf32>
    %16 = vector.extract_strided_slice %9 {offsets = [0, 0], sizes = [8, 384], strides = [1, 1]} : vector<64x384xf32> to vector<8x384xf32>
    %17 = vector.extract_strided_slice %16 {offsets = [0, 0], sizes = [8, 128], strides = [1, 1]} : vector<8x384xf32> to vector<8x128xf32>
    %18 = vector.extract_strided_slice %15 {offsets = [0, 0], sizes = [8, 128], strides = [1, 1]} : vector<8x384xf32> to vector<8x128xf32>
    %19 = arith.addf %17, %18 : vector<8x128xf32>
    %20 = arith.negf %19 : vector<8x128xf32>
    %21 = math.exp %20 : vector<8x128xf32>
    %cst_14 = arith.constant 1.000000e+00 : f32
    %22 = vector.broadcast %cst_14 : f32 to vector<8x128xf32>
    %23 = arith.addf %22, %21 : vector<8x128xf32>
    %24 = arith.divf %22, %23 : vector<8x128xf32>
    %25 = vector.extract_strided_slice %16 {offsets = [0, 128], sizes = [8, 128], strides = [1, 1]} : vector<8x384xf32> to vector<8x128xf32>
    %26 = vector.extract_strided_slice %15 {offsets = [0, 128], sizes = [8, 128], strides = [1, 1]} : vector<8x384xf32> to vector<8x128xf32>
    %27 = arith.addf %25, %26 : vector<8x128xf32>
    %28 = arith.negf %27 : vector<8x128xf32>
    %29 = math.exp %28 : vector<8x128xf32>
    %cst_15 = arith.constant 1.000000e+00 : f32
    %30 = vector.broadcast %cst_15 : f32 to vector<8x128xf32>
    %31 = arith.addf %30, %29 : vector<8x128xf32>
    %32 = arith.divf %30, %31 : vector<8x128xf32>
    %33 = vector.extract_strided_slice %16 {offsets = [0, 256], sizes = [8, 128], strides = [1, 1]} : vector<8x384xf32> to vector<8x128xf32>
    %34 = vector.extract_strided_slice %15 {offsets = [0, 256], sizes = [8, 128], strides = [1, 1]} : vector<8x384xf32> to vector<8x128xf32>
    %35 = arith.addf %34, %13 : vector<8x128xf32>
    %36 = arith.mulf %24, %35 : vector<8x128xf32>
    %37 = arith.addf %33, %36 : vector<8x128xf32>
    %38 = math.tanh %37 : vector<8x128xf32>
    %cst_16 = arith.constant 1.000000e+00 : f32
    %39 = vector.broadcast %cst_16 : f32 to vector<8x128xf32>
    %40 = arith.subf %39, %32 : vector<8x128xf32>
    %41 = arith.mulf %40, %38 : vector<8x128xf32>
    %42 = arith.mulf %32, %14 : vector<8x128xf32>
    %43 = arith.addf %41, %42 : vector<8x128xf32>
    %c0_17 = arith.constant 0 : index
    %c0_18 = arith.constant 0 : index
    %44 = vector.load %arg9[%c0_17, %c0_18] : memref<8x128xf32, #tpu.memory_space<vmem>>, vector<8x128xf32>
    tpu.vector_store %arg9[%c0_17, %c0_18], %43 {strides = array<i32>} : memref<8x128xf32, #tpu.memory_space<vmem>>, vector<8x128xf32>,
    %c0_19 = arith.constant 0 : index
    %c0_20 = arith.constant 0 : index
    %45 = vector.load %arg9[%c0_19, %c0_20] : memref<8x128xf32, #tpu.memory_space<vmem>>, vector<8x128xf32>
    %cst_21 = arith.constant dense<0.000000e+00> : vector<8x384xf32>
    %46 = tpu.matmul %45, %10, %cst_21 {dimension_numbers = #tpu.dot_dimension_numbers<[1], [0], [0], [1], [0, 0, 1, 1], [], []>} : vector<8x128xf32>, vector<128x384xf32>, vector<8x384xf32> -> vector<8x384xf32>
    %47 = vector.extract_strided_slice %9 {offsets = [8, 0], sizes = [8, 384], strides = [1, 1]} : vector<64x384xf32> to vector<8x384xf32>
    %48 = vector.extract_strided_slice %47 {offsets = [0, 0], sizes = [8, 128], strides = [1, 1]} : vector<8x384xf32> to vector<8x128xf32>
    %49 = vector.extract_strided_slice %46 {offsets = [0, 0], sizes = [8, 128], strides = [1, 1]} : vector<8x384xf32> to vector<8x128xf32>
    %50 = arith.addf %48, %49 : vector<8x128xf32>
    %51 = arith.negf %50 : vector<8x128xf32>
    %52 = math.exp %51 : vector<8x128xf32>
    %cst_22 = arith.constant 1.000000e+00 : f32
    %53 = vector.broadcast %cst_22 : f32 to vector<8x128xf32>
    %54 = arith.addf %53, %52 : vector<8x128xf32>
    %55 = arith.divf %53, %54 : vector<8x128xf32>
    %56 = vector.extract_strided_slice %47 {offsets = [0, 128], sizes = [8, 128], strides = [1, 1]} : vector<8x384xf32> to vector<8x128xf32>
    %57 = vector.extract_strided_slice %46 {offsets = [0, 128], sizes = [8, 128], strides = [1, 1]} : vector<8x384xf32> to vector<8x128xf32>
    %58 = arith.addf %56, %57 : vector<8x128xf32>
    %59 = arith.negf %58 : vector<8x128xf32>
    %60 = math.exp %59 : vector<8x128xf32>
    %cst_23 = arith.constant 1.000000e+00 : f32
    %61 = vector.broadcast %cst_23 : f32 to vector<8x128xf32>
    %62 = arith.addf %61, %60 : vector<8x128xf32>
    %63 = arith.divf %61, %62 : vector<8x128xf32>
    %64 = vector.extract_strided_slice %47 {offsets = [0, 256], sizes = [8, 128], strides = [1, 1]} : vector<8x384xf32> to vector<8x128xf32>
    %65 = vector.extract_strided_slice %46 {offsets = [0, 256], sizes = [8, 128], strides = [1, 1]} : vector<8x384xf32> to vector<8x128xf32>
    %66 = arith.addf %65, %13 : vector<8x128xf32>
    %67 = arith.mulf %55, %66 : vector<8x128xf32>
    %68 = arith.addf %64, %67 : vector<8x128xf32>
    %69 = math.tanh %68 : vector<8x128xf32>
    %cst_24 = arith.constant 1.000000e+00 : f32
    %70 = vector.broadcast %cst_24 : f32 to vector<8x128xf32>
    %71 = arith.subf %70, %63 : vector<8x128xf32>
    %72 = arith.mulf %71, %69 : vector<8x128xf32>
    %73 = arith.mulf %63, %45 : vector<8x128xf32>
    %74 = arith.addf %72, %73 : vector<8x128xf32>
    %c0_25 = arith.constant 0 : index
    %c0_26 = arith.constant 0 : index
    %75 = vector.load %arg9[%c0_25, %c0_26] : memref<8x128xf32, #tpu.memory_space<vmem>>, vector<8x128xf32>
    tpu.vector_store %arg9[%c0_25, %c0_26], %74 {strides = array<i32>} : memref<8x128xf32, #tpu.memory_space<vmem>>, vector<8x128xf32>,
    %c0_27 = arith.constant 0 : index
    %c0_28 = arith.constant 0 : index
    %76 = vector.load %arg9[%c0_27, %c0_28] : memref<8x128xf32, #tpu.memory_space<vmem>>, vector<8x128xf32>
    %cst_29 = arith.constant dense<0.000000e+00> : vector<8x384xf32>
    %77 = tpu.matmul %76, %10, %cst_29 {dimension_numbers = #tpu.dot_dimension_numbers<[1], [0], [0], [1], [0, 0, 1, 1], [], []>} : vector<8x128xf32>, vector<128x384xf32>, vector<8x384xf32> -> vector<8x384xf32>
    %78 = vector.extract_strided_slice %9 {offsets = [16, 0], sizes = [8, 384], strides = [1, 1]} : vector<64x384xf32> to vector<8x384xf32>
    %79 = vector.extract_strided_slice %78 {offsets = [0, 0], sizes = [8, 128], strides = [1, 1]} : vector<8x384xf32> to vector<8x128xf32>
    %80 = vector.extract_strided_slice %77 {offsets = [0, 0], sizes = [8, 128], strides = [1, 1]} : vector<8x384xf32> to vector<8x128xf32>
    %81 = arith.addf %79, %80 : vector<8x128xf32>
    %82 = arith.negf %81 : vector<8x128xf32>
    %83 = math.exp %82 : vector<8x128xf32>
    %cst_30 = arith.constant 1.000000e+00 : f32
    %84 = vector.broadcast %cst_30 : f32 to vector<8x128xf32>
    %85 = arith.addf %84, %83 : vector<8x128xf32>
    %86 = arith.divf %84, %85 : vector<8x128xf32>
    %87 = vector.extract_strided_slice %78 {offsets = [0, 128], sizes = [8, 128], strides = [1, 1]} : vector<8x384xf32> to vector<8x128xf32>
    %88 = vector.extract_strided_slice %77 {offsets = [0, 128], sizes = [8, 128], strides = [1, 1]} : vector<8x384xf32> to vector<8x128xf32>
    %89 = arith.addf %87, %88 : vector<8x128xf32>
    %90 = arith.negf %89 : vector<8x128xf32>
    %91 = math.exp %90 : vector<8x128xf32>
    %cst_31 = arith.constant 1.000000e+00 : f32
    %92 = vector.broadcast %cst_31 : f32 to vector<8x128xf32>
    %93 = arith.addf %92, %91 : vector<8x128xf32>
    %94 = arith.divf %92, %93 : vector<8x128xf32>
    %95 = vector.extract_strided_slice %78 {offsets = [0, 256], sizes = [8, 128], strides = [1, 1]} : vector<8x384xf32> to vector<8x128xf32>
    %96 = vector.extract_strided_slice %77 {offsets = [0, 256], sizes = [8, 128], strides = [1, 1]} : vector<8x384xf32> to vector<8x128xf32>
    %97 = arith.addf %96, %13 : vector<8x128xf32>
    %98 = arith.mulf %86, %97 : vector<8x128xf32>
    %99 = arith.addf %95, %98 : vector<8x128xf32>
    %100 = math.tanh %99 : vector<8x128xf32>
    %cst_32 = arith.constant 1.000000e+00 : f32
    %101 = vector.broadcast %cst_32 : f32 to vector<8x128xf32>
    %102 = arith.subf %101, %94 : vector<8x128xf32>
    %103 = arith.mulf %102, %100 : vector<8x128xf32>
    %104 = arith.mulf %94, %76 : vector<8x128xf32>
    %105 = arith.addf %103, %104 : vector<8x128xf32>
    %c0_33 = arith.constant 0 : index
    %c0_34 = arith.constant 0 : index
    %106 = vector.load %arg9[%c0_33, %c0_34] : memref<8x128xf32, #tpu.memory_space<vmem>>, vector<8x128xf32>
    tpu.vector_store %arg9[%c0_33, %c0_34], %105 {strides = array<i32>} : memref<8x128xf32, #tpu.memory_space<vmem>>, vector<8x128xf32>,
    %c0_35 = arith.constant 0 : index
    %c0_36 = arith.constant 0 : index
    %107 = vector.load %arg9[%c0_35, %c0_36] : memref<8x128xf32, #tpu.memory_space<vmem>>, vector<8x128xf32>
    %cst_37 = arith.constant dense<0.000000e+00> : vector<8x384xf32>
    %108 = tpu.matmul %107, %10, %cst_37 {dimension_numbers = #tpu.dot_dimension_numbers<[1], [0], [0], [1], [0, 0, 1, 1], [], []>} : vector<8x128xf32>, vector<128x384xf32>, vector<8x384xf32> -> vector<8x384xf32>
    %109 = vector.extract_strided_slice %9 {offsets = [24, 0], sizes = [8, 384], strides = [1, 1]} : vector<64x384xf32> to vector<8x384xf32>
    %110 = vector.extract_strided_slice %109 {offsets = [0, 0], sizes = [8, 128], strides = [1, 1]} : vector<8x384xf32> to vector<8x128xf32>
    %111 = vector.extract_strided_slice %108 {offsets = [0, 0], sizes = [8, 128], strides = [1, 1]} : vector<8x384xf32> to vector<8x128xf32>
    %112 = arith.addf %110, %111 : vector<8x128xf32>
    %113 = arith.negf %112 : vector<8x128xf32>
    %114 = math.exp %113 : vector<8x128xf32>
    %cst_38 = arith.constant 1.000000e+00 : f32
    %115 = vector.broadcast %cst_38 : f32 to vector<8x128xf32>
    %116 = arith.addf %115, %114 : vector<8x128xf32>
    %117 = arith.divf %115, %116 : vector<8x128xf32>
    %118 = vector.extract_strided_slice %109 {offsets = [0, 128], sizes = [8, 128], strides = [1, 1]} : vector<8x384xf32> to vector<8x128xf32>
    %119 = vector.extract_strided_slice %108 {offsets = [0, 128], sizes = [8, 128], strides = [1, 1]} : vector<8x384xf32> to vector<8x128xf32>
    %120 = arith.addf %118, %119 : vector<8x128xf32>
    %121 = arith.negf %120 : vector<8x128xf32>
    %122 = math.exp %121 : vector<8x128xf32>
    %cst_39 = arith.constant 1.000000e+00 : f32
    %123 = vector.broadcast %cst_39 : f32 to vector<8x128xf32>
    %124 = arith.addf %123, %122 : vector<8x128xf32>
    %125 = arith.divf %123, %124 : vector<8x128xf32>
    %126 = vector.extract_strided_slice %109 {offsets = [0, 256], sizes = [8, 128], strides = [1, 1]} : vector<8x384xf32> to vector<8x128xf32>
    %127 = vector.extract_strided_slice %108 {offsets = [0, 256], sizes = [8, 128], strides = [1, 1]} : vector<8x384xf32> to vector<8x128xf32>
    %128 = arith.addf %127, %13 : vector<8x128xf32>
    %129 = arith.mulf %117, %128 : vector<8x128xf32>
    %130 = arith.addf %126, %129 : vector<8x128xf32>
    %131 = math.tanh %130 : vector<8x128xf32>
    %cst_40 = arith.constant 1.000000e+00 : f32
    %132 = vector.broadcast %cst_40 : f32 to vector<8x128xf32>
    %133 = arith.subf %132, %125 : vector<8x128xf32>
    %134 = arith.mulf %133, %131 : vector<8x128xf32>
    %135 = arith.mulf %125, %107 : vector<8x128xf32>
    %136 = arith.addf %134, %135 : vector<8x128xf32>
    %c0_41 = arith.constant 0 : index
    %c0_42 = arith.constant 0 : index
    %137 = vector.load %arg9[%c0_41, %c0_42] : memref<8x128xf32, #tpu.memory_space<vmem>>, vector<8x128xf32>
    tpu.vector_store %arg9[%c0_41, %c0_42], %136 {strides = array<i32>} : memref<8x128xf32, #tpu.memory_space<vmem>>, vector<8x128xf32>,
    %c0_43 = arith.constant 0 : index
    %c0_44 = arith.constant 0 : index
    %138 = vector.load %arg9[%c0_43, %c0_44] : memref<8x128xf32, #tpu.memory_space<vmem>>, vector<8x128xf32>
    %cst_45 = arith.constant dense<0.000000e+00> : vector<8x384xf32>
    %139 = tpu.matmul %138, %10, %cst_45 {dimension_numbers = #tpu.dot_dimension_numbers<[1], [0], [0], [1], [0, 0, 1, 1], [], []>} : vector<8x128xf32>, vector<128x384xf32>, vector<8x384xf32> -> vector<8x384xf32>
    %140 = vector.extract_strided_slice %9 {offsets = [32, 0], sizes = [8, 384], strides = [1, 1]} : vector<64x384xf32> to vector<8x384xf32>
    %141 = vector.extract_strided_slice %140 {offsets = [0, 0], sizes = [8, 128], strides = [1, 1]} : vector<8x384xf32> to vector<8x128xf32>
    %142 = vector.extract_strided_slice %139 {offsets = [0, 0], sizes = [8, 128], strides = [1, 1]} : vector<8x384xf32> to vector<8x128xf32>
    %143 = arith.addf %141, %142 : vector<8x128xf32>
    %144 = arith.negf %143 : vector<8x128xf32>
    %145 = math.exp %144 : vector<8x128xf32>
    %cst_46 = arith.constant 1.000000e+00 : f32
    %146 = vector.broadcast %cst_46 : f32 to vector<8x128xf32>
    %147 = arith.addf %146, %145 : vector<8x128xf32>
    %148 = arith.divf %146, %147 : vector<8x128xf32>
    %149 = vector.extract_strided_slice %140 {offsets = [0, 128], sizes = [8, 128], strides = [1, 1]} : vector<8x384xf32> to vector<8x128xf32>
    %150 = vector.extract_strided_slice %139 {offsets = [0, 128], sizes = [8, 128], strides = [1, 1]} : vector<8x384xf32> to vector<8x128xf32>
    %151 = arith.addf %149, %150 : vector<8x128xf32>
    %152 = arith.negf %151 : vector<8x128xf32>
    %153 = math.exp %152 : vector<8x128xf32>
    %cst_47 = arith.constant 1.000000e+00 : f32
    %154 = vector.broadcast %cst_47 : f32 to vector<8x128xf32>
    %155 = arith.addf %154, %153 : vector<8x128xf32>
    %156 = arith.divf %154, %155 : vector<8x128xf32>
    %157 = vector.extract_strided_slice %140 {offsets = [0, 256], sizes = [8, 128], strides = [1, 1]} : vector<8x384xf32> to vector<8x128xf32>
    %158 = vector.extract_strided_slice %139 {offsets = [0, 256], sizes = [8, 128], strides = [1, 1]} : vector<8x384xf32> to vector<8x128xf32>
    %159 = arith.addf %158, %13 : vector<8x128xf32>
    %160 = arith.mulf %148, %159 : vector<8x128xf32>
    %161 = arith.addf %157, %160 : vector<8x128xf32>
    %162 = math.tanh %161 : vector<8x128xf32>
    %cst_48 = arith.constant 1.000000e+00 : f32
    %163 = vector.broadcast %cst_48 : f32 to vector<8x128xf32>
    %164 = arith.subf %163, %156 : vector<8x128xf32>
    %165 = arith.mulf %164, %162 : vector<8x128xf32>
    %166 = arith.mulf %156, %138 : vector<8x128xf32>
    %167 = arith.addf %165, %166 : vector<8x128xf32>
    %c0_49 = arith.constant 0 : index
    %c0_50 = arith.constant 0 : index
    %168 = vector.load %arg9[%c0_49, %c0_50] : memref<8x128xf32, #tpu.memory_space<vmem>>, vector<8x128xf32>
    tpu.vector_store %arg9[%c0_49, %c0_50], %167 {strides = array<i32>} : memref<8x128xf32, #tpu.memory_space<vmem>>, vector<8x128xf32>,
    %c0_51 = arith.constant 0 : index
    %c0_52 = arith.constant 0 : index
    %169 = vector.load %arg9[%c0_51, %c0_52] : memref<8x128xf32, #tpu.memory_space<vmem>>, vector<8x128xf32>
    %cst_53 = arith.constant dense<0.000000e+00> : vector<8x384xf32>
    %170 = tpu.matmul %169, %10, %cst_53 {dimension_numbers = #tpu.dot_dimension_numbers<[1], [0], [0], [1], [0, 0, 1, 1], [], []>} : vector<8x128xf32>, vector<128x384xf32>, vector<8x384xf32> -> vector<8x384xf32>
    %171 = vector.extract_strided_slice %9 {offsets = [40, 0], sizes = [8, 384], strides = [1, 1]} : vector<64x384xf32> to vector<8x384xf32>
    %172 = vector.extract_strided_slice %171 {offsets = [0, 0], sizes = [8, 128], strides = [1, 1]} : vector<8x384xf32> to vector<8x128xf32>
    %173 = vector.extract_strided_slice %170 {offsets = [0, 0], sizes = [8, 128], strides = [1, 1]} : vector<8x384xf32> to vector<8x128xf32>
    %174 = arith.addf %172, %173 : vector<8x128xf32>
    %175 = arith.negf %174 : vector<8x128xf32>
    %176 = math.exp %175 : vector<8x128xf32>
    %cst_54 = arith.constant 1.000000e+00 : f32
    %177 = vector.broadcast %cst_54 : f32 to vector<8x128xf32>
    %178 = arith.addf %177, %176 : vector<8x128xf32>
    %179 = arith.divf %177, %178 : vector<8x128xf32>
    %180 = vector.extract_strided_slice %171 {offsets = [0, 128], sizes = [8, 128], strides = [1, 1]} : vector<8x384xf32> to vector<8x128xf32>
    %181 = vector.extract_strided_slice %170 {offsets = [0, 128], sizes = [8, 128], strides = [1, 1]} : vector<8x384xf32> to vector<8x128xf32>
    %182 = arith.addf %180, %181 : vector<8x128xf32>
    %183 = arith.negf %182 : vector<8x128xf32>
    %184 = math.exp %183 : vector<8x128xf32>
    %cst_55 = arith.constant 1.000000e+00 : f32
    %185 = vector.broadcast %cst_55 : f32 to vector<8x128xf32>
    %186 = arith.addf %185, %184 : vector<8x128xf32>
    %187 = arith.divf %185, %186 : vector<8x128xf32>
    %188 = vector.extract_strided_slice %171 {offsets = [0, 256], sizes = [8, 128], strides = [1, 1]} : vector<8x384xf32> to vector<8x128xf32>
    %189 = vector.extract_strided_slice %170 {offsets = [0, 256], sizes = [8, 128], strides = [1, 1]} : vector<8x384xf32> to vector<8x128xf32>
    %190 = arith.addf %189, %13 : vector<8x128xf32>
    %191 = arith.mulf %179, %190 : vector<8x128xf32>
    %192 = arith.addf %188, %191 : vector<8x128xf32>
    %193 = math.tanh %192 : vector<8x128xf32>
    %cst_56 = arith.constant 1.000000e+00 : f32
    %194 = vector.broadcast %cst_56 : f32 to vector<8x128xf32>
    %195 = arith.subf %194, %187 : vector<8x128xf32>
    %196 = arith.mulf %195, %193 : vector<8x128xf32>
    %197 = arith.mulf %187, %169 : vector<8x128xf32>
    %198 = arith.addf %196, %197 : vector<8x128xf32>
    %c0_57 = arith.constant 0 : index
    %c0_58 = arith.constant 0 : index
    %199 = vector.load %arg9[%c0_57, %c0_58] : memref<8x128xf32, #tpu.memory_space<vmem>>, vector<8x128xf32>
    tpu.vector_store %arg9[%c0_57, %c0_58], %198 {strides = array<i32>} : memref<8x128xf32, #tpu.memory_space<vmem>>, vector<8x128xf32>,
    %c0_59 = arith.constant 0 : index
    %c0_60 = arith.constant 0 : index
    %200 = vector.load %arg9[%c0_59, %c0_60] : memref<8x128xf32, #tpu.memory_space<vmem>>, vector<8x128xf32>
    %cst_61 = arith.constant dense<0.000000e+00> : vector<8x384xf32>
    %201 = tpu.matmul %200, %10, %cst_61 {dimension_numbers = #tpu.dot_dimension_numbers<[1], [0], [0], [1], [0, 0, 1, 1], [], []>} : vector<8x128xf32>, vector<128x384xf32>, vector<8x384xf32> -> vector<8x384xf32>
    %202 = vector.extract_strided_slice %9 {offsets = [48, 0], sizes = [8, 384], strides = [1, 1]} : vector<64x384xf32> to vector<8x384xf32>
    %203 = vector.extract_strided_slice %202 {offsets = [0, 0], sizes = [8, 128], strides = [1, 1]} : vector<8x384xf32> to vector<8x128xf32>
    %204 = vector.extract_strided_slice %201 {offsets = [0, 0], sizes = [8, 128], strides = [1, 1]} : vector<8x384xf32> to vector<8x128xf32>
    %205 = arith.addf %203, %204 : vector<8x128xf32>
    %206 = arith.negf %205 : vector<8x128xf32>
    %207 = math.exp %206 : vector<8x128xf32>
    %cst_62 = arith.constant 1.000000e+00 : f32
    %208 = vector.broadcast %cst_62 : f32 to vector<8x128xf32>
    %209 = arith.addf %208, %207 : vector<8x128xf32>
    %210 = arith.divf %208, %209 : vector<8x128xf32>
    %211 = vector.extract_strided_slice %202 {offsets = [0, 128], sizes = [8, 128], strides = [1, 1]} : vector<8x384xf32> to vector<8x128xf32>
    %212 = vector.extract_strided_slice %201 {offsets = [0, 128], sizes = [8, 128], strides = [1, 1]} : vector<8x384xf32> to vector<8x128xf32>
    %213 = arith.addf %211, %212 : vector<8x128xf32>
    %214 = arith.negf %213 : vector<8x128xf32>
    %215 = math.exp %214 : vector<8x128xf32>
    %cst_63 = arith.constant 1.000000e+00 : f32
    %216 = vector.broadcast %cst_63 : f32 to vector<8x128xf32>
    %217 = arith.addf %216, %215 : vector<8x128xf32>
    %218 = arith.divf %216, %217 : vector<8x128xf32>
    %219 = vector.extract_strided_slice %202 {offsets = [0, 256], sizes = [8, 128], strides = [1, 1]} : vector<8x384xf32> to vector<8x128xf32>
    %220 = vector.extract_strided_slice %201 {offsets = [0, 256], sizes = [8, 128], strides = [1, 1]} : vector<8x384xf32> to vector<8x128xf32>
    %221 = arith.addf %220, %13 : vector<8x128xf32>
    %222 = arith.mulf %210, %221 : vector<8x128xf32>
    %223 = arith.addf %219, %222 : vector<8x128xf32>
    %224 = math.tanh %223 : vector<8x128xf32>
    %cst_64 = arith.constant 1.000000e+00 : f32
    %225 = vector.broadcast %cst_64 : f32 to vector<8x128xf32>
    %226 = arith.subf %225, %218 : vector<8x128xf32>
    %227 = arith.mulf %226, %224 : vector<8x128xf32>
    %228 = arith.mulf %218, %200 : vector<8x128xf32>
    %229 = arith.addf %227, %228 : vector<8x128xf32>
    %c0_65 = arith.constant 0 : index
    %c0_66 = arith.constant 0 : index
    %230 = vector.load %arg9[%c0_65, %c0_66] : memref<8x128xf32, #tpu.memory_space<vmem>>, vector<8x128xf32>
    tpu.vector_store %arg9[%c0_65, %c0_66], %229 {strides = array<i32>} : memref<8x128xf32, #tpu.memory_space<vmem>>, vector<8x128xf32>,
    %c0_67 = arith.constant 0 : index
    %c0_68 = arith.constant 0 : index
    %231 = vector.load %arg9[%c0_67, %c0_68] : memref<8x128xf32, #tpu.memory_space<vmem>>, vector<8x128xf32>
    %cst_69 = arith.constant dense<0.000000e+00> : vector<8x384xf32>
    %232 = tpu.matmul %231, %10, %cst_69 {dimension_numbers = #tpu.dot_dimension_numbers<[1], [0], [0], [1], [0, 0, 1, 1], [], []>} : vector<8x128xf32>, vector<128x384xf32>, vector<8x384xf32> -> vector<8x384xf32>
    %233 = vector.extract_strided_slice %9 {offsets = [56, 0], sizes = [8, 384], strides = [1, 1]} : vector<64x384xf32> to vector<8x384xf32>
    %234 = vector.extract_strided_slice %233 {offsets = [0, 0], sizes = [8, 128], strides = [1, 1]} : vector<8x384xf32> to vector<8x128xf32>
    %235 = vector.extract_strided_slice %232 {offsets = [0, 0], sizes = [8, 128], strides = [1, 1]} : vector<8x384xf32> to vector<8x128xf32>
    %236 = arith.addf %234, %235 : vector<8x128xf32>
    %237 = arith.negf %236 : vector<8x128xf32>
    %238 = math.exp %237 : vector<8x128xf32>
    %cst_70 = arith.constant 1.000000e+00 : f32
    %239 = vector.broadcast %cst_70 : f32 to vector<8x128xf32>
    %240 = arith.addf %239, %238 : vector<8x128xf32>
    %241 = arith.divf %239, %240 : vector<8x128xf32>
    %242 = vector.extract_strided_slice %233 {offsets = [0, 128], sizes = [8, 128], strides = [1, 1]} : vector<8x384xf32> to vector<8x128xf32>
    %243 = vector.extract_strided_slice %232 {offsets = [0, 128], sizes = [8, 128], strides = [1, 1]} : vector<8x384xf32> to vector<8x128xf32>
    %244 = arith.addf %242, %243 : vector<8x128xf32>
    %245 = arith.negf %244 : vector<8x128xf32>
    %246 = math.exp %245 : vector<8x128xf32>
    %cst_71 = arith.constant 1.000000e+00 : f32
    %247 = vector.broadcast %cst_71 : f32 to vector<8x128xf32>
    %248 = arith.addf %247, %246 : vector<8x128xf32>
    %249 = arith.divf %247, %248 : vector<8x128xf32>
    %250 = vector.extract_strided_slice %233 {offsets = [0, 256], sizes = [8, 128], strides = [1, 1]} : vector<8x384xf32> to vector<8x128xf32>
    %251 = vector.extract_strided_slice %232 {offsets = [0, 256], sizes = [8, 128], strides = [1, 1]} : vector<8x384xf32> to vector<8x128xf32>
    %252 = arith.addf %251, %13 : vector<8x128xf32>
    %253 = arith.mulf %241, %252 : vector<8x128xf32>
    %254 = arith.addf %250, %253 : vector<8x128xf32>
    %255 = math.tanh %254 : vector<8x128xf32>
    %cst_72 = arith.constant 1.000000e+00 : f32
    %256 = vector.broadcast %cst_72 : f32 to vector<8x128xf32>
    %257 = arith.subf %256, %249 : vector<8x128xf32>
    %258 = arith.mulf %257, %255 : vector<8x128xf32>
    %259 = arith.mulf %249, %231 : vector<8x128xf32>
    %260 = arith.addf %258, %259 : vector<8x128xf32>
    %c0_73 = arith.constant 0 : index
    %c0_74 = arith.constant 0 : index
    %261 = vector.load %arg9[%c0_73, %c0_74] : memref<8x128xf32, #tpu.memory_space<vmem>>, vector<8x128xf32>
    tpu.vector_store %arg9[%c0_73, %c0_74], %260 {strides = array<i32>} : memref<8x128xf32, #tpu.memory_space<vmem>>, vector<8x128xf32>,
    %c0_i32_75 = arith.constant 0 : i32
    %262 = arith.cmpi eq, %arg0, %c0_i32_75 : i32
    %263 = arith.extui %262 : i1 to i32
    %c0_i32_76 = arith.constant 0 : i32
    %264 = arith.cmpi ne, %263, %c0_i32_76 : i32
    scf.if %264 {
      %c0_77 = arith.constant 0 : index
      %c0_78 = arith.constant 0 : index
      %265 = vector.load %arg9[%c0_77, %c0_78] : memref<8x128xf32, #tpu.memory_space<vmem>>, vector<8x128xf32>
      %c0_79 = arith.constant 0 : index
      %c0_80 = arith.constant 0 : index
      %266 = vector.load %arg6[%c0_79, %c0_80] : memref<128x128xf32, #tpu.memory_space<vmem>>, vector<128x128xf32>
      %cst_81 = arith.constant dense<0.000000e+00> : vector<8x128xf32>
      %267 = tpu.matmul %265, %266, %cst_81 {dimension_numbers = #tpu.dot_dimension_numbers<[1], [0], [0], [1], [0, 0, 1, 1], [], []>} : vector<8x128xf32>, vector<128x128xf32>, vector<8x128xf32> -> vector<8x128xf32>
      %c0_82 = arith.constant 0 : index
      %c0_83 = arith.constant 0 : index
      %268 = vector.load %arg7[%c0_82, %c0_83] : memref<1x128xf32, #tpu.memory_space<vmem>>, vector<1x128xf32>
      %269 = vector.broadcast %268 : vector<1x128xf32> to vector<8x128xf32>
      %270 = arith.addf %267, %269 : vector<8x128xf32>
      %c0_84 = arith.constant 0 : index
      %c0_85 = arith.constant 0 : index
      %271 = vector.load %arg8[%c0_84, %c0_85] : memref<8x128xf32, #tpu.memory_space<vmem>>, vector<8x128xf32>
      tpu.vector_store %arg8[%c0_84, %c0_85], %270 {strides = array<i32>} : memref<8x128xf32, #tpu.memory_space<vmem>>, vector<8x128xf32>,
    } else {
    }
    return
  }
  func.func @transform_0(%arg0: i32) -> (i32, i32, i32) {
    %c0_i32 = arith.constant 0 : i32
    %c0_i32_0 = arith.constant 0 : i32
    %c0_i32_1 = arith.constant 0 : i32
    return %arg0, %c0_i32, %c0_i32_0 : i32, i32, i32
  }
  func.func @transform_1(%arg0: i32) -> (i32, i32) {
    %c0_i32 = arith.constant 0 : i32
    %c0_i32_0 = arith.constant 0 : i32
    %c0_i32_1 = arith.constant 0 : i32
    return %c0_i32, %c0_i32_0 : i32, i32
  }
  func.func @transform_2(%arg0: i32) -> (i32, i32) {
    %c0_i32 = arith.constant 0 : i32
    %c0_i32_0 = arith.constant 0 : i32
    %c0_i32_1 = arith.constant 0 : i32
    return %c0_i32, %c0_i32_0 : i32, i32
  }
  func.func @transform_3(%arg0: i32) -> (i32, i32) {
    %c0_i32 = arith.constant 0 : i32
    %c0_i32_0 = arith.constant 0 : i32
    %c0_i32_1 = arith.constant 0 : i32
    return %c0_i32, %c0_i32_0 : i32, i32
  }
  func.func @transform_4(%arg0: i32) -> (i32, i32) {
    %c0_i32 = arith.constant 0 : i32
    %c0_i32_0 = arith.constant 0 : i32
    %c0_i32_1 = arith.constant 0 : i32
    return %c0_i32, %c0_i32_0 : i32, i32
  }
  func.func @transform_5(%arg0: i32) -> (i32, i32) {
    %c0_i32 = arith.constant 0 : i32
    %c0_i32_0 = arith.constant 0 : i32
    %c0_i32_1 = arith.constant 0 : i32
    return %c0_i32, %c0_i32_0 : i32, i32
  }
  func.func @transform_6(%arg0: i32) -> (i32, i32) {
    %c0_i32 = arith.constant 0 : i32
    %c0_i32_0 = arith.constant 0 : i32
    %c0_i32_1 = arith.constant 0 : i32
    return %c0_i32, %c0_i32_0 : i32, i32
  }
  func.func @transform_7(%arg0: i32) -> (i32, i32) {
    %c0_i32 = arith.constant 0 : i32
    %c0_i32_0 = arith.constant 0 : i32
    %c0_i32_1 = arith.constant 0 : i32
    return %c0_i32, %c0_i32_0 : i32, i32
  }
}

module attributes {stable_mosaic.version = 11 : i64} {
  func.func @_gru_layer_kernel(%arg0: i32, %arg1: memref<8x8x128xf32, #tpu.memory_space<vmem>>, %arg2: memref<128x384xf32, #tpu.memory_space<vmem>>, %arg3: memref<128x384xf32, #tpu.memory_space<vmem>>, %arg4: memref<1x384xf32, #tpu.memory_space<vmem>>, %arg5: memref<1x128xf32, #tpu.memory_space<vmem>>, %arg6: memref<8x8x128xf32, #tpu.memory_space<vmem>>, %arg7: memref<8x128xf32, #tpu.memory_space<vmem>>) attributes {dimension_semantics = [#tpu.dimension_semantics<arbitrary>], iteration_bounds = array<i64: 1>, scalar_prefetch = 0 : i64, scratch_operands = 1 : i64, tpu.core_type = #tpu.core_type<tc>, window_params = [{transform_indices = @transform_0, window_bounds = array<i64: 8, 8, 128>}, {pipeline_mode = #tpu.pipeline_mode<synchronous>, transform_indices = @transform_1, window_bounds = array<i64: 128, 384>}, {pipeline_mode = #tpu.pipeline_mode<synchronous>, transform_indices = @transform_2, window_bounds = array<i64: 128, 384>}, {pipeline_mode = #tpu.pipeline_mode<synchronous>, transform_indices = @transform_3, window_bounds = array<i64: 1, 384>}, {pipeline_mode = #tpu.pipeline_mode<synchronous>, transform_indices = @transform_4, window_bounds = array<i64: 1, 128>}, {transform_indices = @transform_5, window_bounds = array<i64: 8, 8, 128>}]} {
    %c0_i32 = arith.constant 0 : i32
    %0 = arith.cmpi eq, %arg0, %c0_i32 : i32
    %1 = arith.extui %0 : i1 to i32
    %c0_i32_0 = arith.constant 0 : i32
    %2 = arith.cmpi ne, %1, %c0_i32_0 : i32
    scf.if %2 {
      %cst_92 = arith.constant 0.000000e+00 : f32
      %286 = vector.broadcast %cst_92 : f32 to vector<8x128xf32>
      %c0_93 = arith.constant 0 : index
      %c0_94 = arith.constant 0 : index
      %287 = vector.load %arg7[%c0_93, %c0_94] : memref<8x128xf32, #tpu.memory_space<vmem>>, vector<8x128xf32>
      tpu.vector_store %arg7[%c0_93, %c0_94], %286 {strides = array<i32>} : memref<8x128xf32, #tpu.memory_space<vmem>>, vector<8x128xf32>,
    } else {
    }
    %c0 = arith.constant 0 : index
    %c0_1 = arith.constant 0 : index
    %c0_2 = arith.constant 0 : index
    %3 = vector.load %arg1[%c0, %c0_1, %c0_2] : memref<8x8x128xf32, #tpu.memory_space<vmem>>, vector<8x8x128xf32>
    %4 = vector.shape_cast %3 : vector<8x8x128xf32> to vector<64x128xf32>
    %c0_3 = arith.constant 0 : index
    %c0_4 = arith.constant 0 : index
    %5 = vector.load %arg2[%c0_3, %c0_4] : memref<128x384xf32, #tpu.memory_space<vmem>>, vector<128x384xf32>
    %cst = arith.constant dense<0.000000e+00> : vector<64x384xf32>
    %6 = tpu.matmul %4, %5, %cst {dimension_numbers = #tpu.dot_dimension_numbers<[1], [0], [0], [1], [0, 0, 1, 1], [], []>} : vector<64x128xf32>, vector<128x384xf32>, vector<64x384xf32> -> vector<64x384xf32>
    %c0_5 = arith.constant 0 : index
    %c0_6 = arith.constant 0 : index
    %7 = vector.load %arg4[%c0_5, %c0_6] : memref<1x384xf32, #tpu.memory_space<vmem>>, vector<1x384xf32>
    %8 = vector.broadcast %7 : vector<1x384xf32> to vector<64x384xf32>
    %9 = arith.addf %6, %8 : vector<64x384xf32>
    %c0_7 = arith.constant 0 : index
    %c0_8 = arith.constant 0 : index
    %10 = vector.load %arg3[%c0_7, %c0_8] : memref<128x384xf32, #tpu.memory_space<vmem>>, vector<128x384xf32>
    %c0_9 = arith.constant 0 : index
    %c0_10 = arith.constant 0 : index
    %11 = vector.load %arg5[%c0_9, %c0_10] : memref<1x128xf32, #tpu.memory_space<vmem>>, vector<1x128xf32>
    %12 = vector.shape_cast %11 : vector<1x128xf32> to vector<1x128xf32>
    %13 = vector.broadcast %12 : vector<1x128xf32> to vector<8x128xf32>
    %c0_11 = arith.constant 0 : index
    %c0_12 = arith.constant 0 : index
    %14 = vector.load %arg7[%c0_11, %c0_12] : memref<8x128xf32, #tpu.memory_space<vmem>>, vector<8x128xf32>
    %cst_13 = arith.constant dense<0.000000e+00> : vector<8x384xf32>
    %15 = tpu.matmul %14, %10, %cst_13 {dimension_numbers = #tpu.dot_dimension_numbers<[1], [0], [0], [1], [0, 0, 1, 1], [], []>} : vector<8x128xf32>, vector<128x384xf32>, vector<8x384xf32> -> vector<8x384xf32>
    %16 = vector.extract_strided_slice %9 {offsets = [0, 0], sizes = [8, 384], strides = [1, 1]} : vector<64x384xf32> to vector<8x384xf32>
    %17 = vector.extract_strided_slice %16 {offsets = [0, 0], sizes = [8, 128], strides = [1, 1]} : vector<8x384xf32> to vector<8x128xf32>
    %18 = vector.extract_strided_slice %15 {offsets = [0, 0], sizes = [8, 128], strides = [1, 1]} : vector<8x384xf32> to vector<8x128xf32>
    %19 = arith.addf %17, %18 : vector<8x128xf32>
    %20 = arith.negf %19 : vector<8x128xf32>
    %21 = math.exp %20 : vector<8x128xf32>
    %cst_14 = arith.constant 1.000000e+00 : f32
    %22 = vector.broadcast %cst_14 : f32 to vector<8x128xf32>
    %23 = arith.addf %22, %21 : vector<8x128xf32>
    %24 = arith.divf %22, %23 : vector<8x128xf32>
    %25 = vector.extract_strided_slice %16 {offsets = [0, 128], sizes = [8, 128], strides = [1, 1]} : vector<8x384xf32> to vector<8x128xf32>
    %26 = vector.extract_strided_slice %15 {offsets = [0, 128], sizes = [8, 128], strides = [1, 1]} : vector<8x384xf32> to vector<8x128xf32>
    %27 = arith.addf %25, %26 : vector<8x128xf32>
    %28 = arith.negf %27 : vector<8x128xf32>
    %29 = math.exp %28 : vector<8x128xf32>
    %cst_15 = arith.constant 1.000000e+00 : f32
    %30 = vector.broadcast %cst_15 : f32 to vector<8x128xf32>
    %31 = arith.addf %30, %29 : vector<8x128xf32>
    %32 = arith.divf %30, %31 : vector<8x128xf32>
    %33 = vector.extract_strided_slice %16 {offsets = [0, 256], sizes = [8, 128], strides = [1, 1]} : vector<8x384xf32> to vector<8x128xf32>
    %34 = vector.extract_strided_slice %15 {offsets = [0, 256], sizes = [8, 128], strides = [1, 1]} : vector<8x384xf32> to vector<8x128xf32>
    %35 = arith.addf %34, %13 : vector<8x128xf32>
    %36 = arith.mulf %24, %35 : vector<8x128xf32>
    %37 = arith.addf %33, %36 : vector<8x128xf32>
    %38 = math.tanh %37 : vector<8x128xf32>
    %cst_16 = arith.constant 1.000000e+00 : f32
    %39 = vector.broadcast %cst_16 : f32 to vector<8x128xf32>
    %40 = arith.subf %39, %32 : vector<8x128xf32>
    %41 = arith.mulf %40, %38 : vector<8x128xf32>
    %42 = arith.mulf %32, %14 : vector<8x128xf32>
    %43 = arith.addf %41, %42 : vector<8x128xf32>
    %c0_17 = arith.constant 0 : index
    %c0_18 = arith.constant 0 : index
    %44 = vector.load %arg7[%c0_17, %c0_18] : memref<8x128xf32, #tpu.memory_space<vmem>>, vector<8x128xf32>
    tpu.vector_store %arg7[%c0_17, %c0_18], %43 {strides = array<i32>} : memref<8x128xf32, #tpu.memory_space<vmem>>, vector<8x128xf32>,
    %c0_19 = arith.constant 0 : index
    %c0_20 = arith.constant 0 : index
    %c0_21 = arith.constant 0 : index
    %45 = vector.load %arg6[%c0_19, %c0_20, %c0_21] : memref<8x8x128xf32, #tpu.memory_space<vmem>>, vector<1x8x128xf32>
    %46 = vector.shape_cast %45 : vector<1x8x128xf32> to vector<8x128xf32>
    %47 = vector.shape_cast %43 : vector<8x128xf32> to vector<1x8x128xf32>
    tpu.vector_store %arg6[%c0_19, %c0_20, %c0_21], %47 {strides = array<i32>} : memref<8x8x128xf32, #tpu.memory_space<vmem>>, vector<1x8x128xf32>,
    %c0_22 = arith.constant 0 : index
    %c0_23 = arith.constant 0 : index
    %48 = vector.load %arg7[%c0_22, %c0_23] : memref<8x128xf32, #tpu.memory_space<vmem>>, vector<8x128xf32>
    %cst_24 = arith.constant dense<0.000000e+00> : vector<8x384xf32>
    %49 = tpu.matmul %48, %10, %cst_24 {dimension_numbers = #tpu.dot_dimension_numbers<[1], [0], [0], [1], [0, 0, 1, 1], [], []>} : vector<8x128xf32>, vector<128x384xf32>, vector<8x384xf32> -> vector<8x384xf32>
    %50 = vector.extract_strided_slice %9 {offsets = [8, 0], sizes = [8, 384], strides = [1, 1]} : vector<64x384xf32> to vector<8x384xf32>
    %51 = vector.extract_strided_slice %50 {offsets = [0, 0], sizes = [8, 128], strides = [1, 1]} : vector<8x384xf32> to vector<8x128xf32>
    %52 = vector.extract_strided_slice %49 {offsets = [0, 0], sizes = [8, 128], strides = [1, 1]} : vector<8x384xf32> to vector<8x128xf32>
    %53 = arith.addf %51, %52 : vector<8x128xf32>
    %54 = arith.negf %53 : vector<8x128xf32>
    %55 = math.exp %54 : vector<8x128xf32>
    %cst_25 = arith.constant 1.000000e+00 : f32
    %56 = vector.broadcast %cst_25 : f32 to vector<8x128xf32>
    %57 = arith.addf %56, %55 : vector<8x128xf32>
    %58 = arith.divf %56, %57 : vector<8x128xf32>
    %59 = vector.extract_strided_slice %50 {offsets = [0, 128], sizes = [8, 128], strides = [1, 1]} : vector<8x384xf32> to vector<8x128xf32>
    %60 = vector.extract_strided_slice %49 {offsets = [0, 128], sizes = [8, 128], strides = [1, 1]} : vector<8x384xf32> to vector<8x128xf32>
    %61 = arith.addf %59, %60 : vector<8x128xf32>
    %62 = arith.negf %61 : vector<8x128xf32>
    %63 = math.exp %62 : vector<8x128xf32>
    %cst_26 = arith.constant 1.000000e+00 : f32
    %64 = vector.broadcast %cst_26 : f32 to vector<8x128xf32>
    %65 = arith.addf %64, %63 : vector<8x128xf32>
    %66 = arith.divf %64, %65 : vector<8x128xf32>
    %67 = vector.extract_strided_slice %50 {offsets = [0, 256], sizes = [8, 128], strides = [1, 1]} : vector<8x384xf32> to vector<8x128xf32>
    %68 = vector.extract_strided_slice %49 {offsets = [0, 256], sizes = [8, 128], strides = [1, 1]} : vector<8x384xf32> to vector<8x128xf32>
    %69 = arith.addf %68, %13 : vector<8x128xf32>
    %70 = arith.mulf %58, %69 : vector<8x128xf32>
    %71 = arith.addf %67, %70 : vector<8x128xf32>
    %72 = math.tanh %71 : vector<8x128xf32>
    %cst_27 = arith.constant 1.000000e+00 : f32
    %73 = vector.broadcast %cst_27 : f32 to vector<8x128xf32>
    %74 = arith.subf %73, %66 : vector<8x128xf32>
    %75 = arith.mulf %74, %72 : vector<8x128xf32>
    %76 = arith.mulf %66, %48 : vector<8x128xf32>
    %77 = arith.addf %75, %76 : vector<8x128xf32>
    %c0_28 = arith.constant 0 : index
    %c0_29 = arith.constant 0 : index
    %78 = vector.load %arg7[%c0_28, %c0_29] : memref<8x128xf32, #tpu.memory_space<vmem>>, vector<8x128xf32>
    tpu.vector_store %arg7[%c0_28, %c0_29], %77 {strides = array<i32>} : memref<8x128xf32, #tpu.memory_space<vmem>>, vector<8x128xf32>,
    %c1 = arith.constant 1 : index
    %c0_30 = arith.constant 0 : index
    %c0_31 = arith.constant 0 : index
    %79 = vector.load %arg6[%c1, %c0_30, %c0_31] : memref<8x8x128xf32, #tpu.memory_space<vmem>>, vector<1x8x128xf32>
    %80 = vector.shape_cast %79 : vector<1x8x128xf32> to vector<8x128xf32>
    %81 = vector.shape_cast %77 : vector<8x128xf32> to vector<1x8x128xf32>
    tpu.vector_store %arg6[%c1, %c0_30, %c0_31], %81 {strides = array<i32>} : memref<8x8x128xf32, #tpu.memory_space<vmem>>, vector<1x8x128xf32>,
    %c0_32 = arith.constant 0 : index
    %c0_33 = arith.constant 0 : index
    %82 = vector.load %arg7[%c0_32, %c0_33] : memref<8x128xf32, #tpu.memory_space<vmem>>, vector<8x128xf32>
    %cst_34 = arith.constant dense<0.000000e+00> : vector<8x384xf32>
    %83 = tpu.matmul %82, %10, %cst_34 {dimension_numbers = #tpu.dot_dimension_numbers<[1], [0], [0], [1], [0, 0, 1, 1], [], []>} : vector<8x128xf32>, vector<128x384xf32>, vector<8x384xf32> -> vector<8x384xf32>
    %84 = vector.extract_strided_slice %9 {offsets = [16, 0], sizes = [8, 384], strides = [1, 1]} : vector<64x384xf32> to vector<8x384xf32>
    %85 = vector.extract_strided_slice %84 {offsets = [0, 0], sizes = [8, 128], strides = [1, 1]} : vector<8x384xf32> to vector<8x128xf32>
    %86 = vector.extract_strided_slice %83 {offsets = [0, 0], sizes = [8, 128], strides = [1, 1]} : vector<8x384xf32> to vector<8x128xf32>
    %87 = arith.addf %85, %86 : vector<8x128xf32>
    %88 = arith.negf %87 : vector<8x128xf32>
    %89 = math.exp %88 : vector<8x128xf32>
    %cst_35 = arith.constant 1.000000e+00 : f32
    %90 = vector.broadcast %cst_35 : f32 to vector<8x128xf32>
    %91 = arith.addf %90, %89 : vector<8x128xf32>
    %92 = arith.divf %90, %91 : vector<8x128xf32>
    %93 = vector.extract_strided_slice %84 {offsets = [0, 128], sizes = [8, 128], strides = [1, 1]} : vector<8x384xf32> to vector<8x128xf32>
    %94 = vector.extract_strided_slice %83 {offsets = [0, 128], sizes = [8, 128], strides = [1, 1]} : vector<8x384xf32> to vector<8x128xf32>
    %95 = arith.addf %93, %94 : vector<8x128xf32>
    %96 = arith.negf %95 : vector<8x128xf32>
    %97 = math.exp %96 : vector<8x128xf32>
    %cst_36 = arith.constant 1.000000e+00 : f32
    %98 = vector.broadcast %cst_36 : f32 to vector<8x128xf32>
    %99 = arith.addf %98, %97 : vector<8x128xf32>
    %100 = arith.divf %98, %99 : vector<8x128xf32>
    %101 = vector.extract_strided_slice %84 {offsets = [0, 256], sizes = [8, 128], strides = [1, 1]} : vector<8x384xf32> to vector<8x128xf32>
    %102 = vector.extract_strided_slice %83 {offsets = [0, 256], sizes = [8, 128], strides = [1, 1]} : vector<8x384xf32> to vector<8x128xf32>
    %103 = arith.addf %102, %13 : vector<8x128xf32>
    %104 = arith.mulf %92, %103 : vector<8x128xf32>
    %105 = arith.addf %101, %104 : vector<8x128xf32>
    %106 = math.tanh %105 : vector<8x128xf32>
    %cst_37 = arith.constant 1.000000e+00 : f32
    %107 = vector.broadcast %cst_37 : f32 to vector<8x128xf32>
    %108 = arith.subf %107, %100 : vector<8x128xf32>
    %109 = arith.mulf %108, %106 : vector<8x128xf32>
    %110 = arith.mulf %100, %82 : vector<8x128xf32>
    %111 = arith.addf %109, %110 : vector<8x128xf32>
    %c0_38 = arith.constant 0 : index
    %c0_39 = arith.constant 0 : index
    %112 = vector.load %arg7[%c0_38, %c0_39] : memref<8x128xf32, #tpu.memory_space<vmem>>, vector<8x128xf32>
    tpu.vector_store %arg7[%c0_38, %c0_39], %111 {strides = array<i32>} : memref<8x128xf32, #tpu.memory_space<vmem>>, vector<8x128xf32>,
    %c2 = arith.constant 2 : index
    %c0_40 = arith.constant 0 : index
    %c0_41 = arith.constant 0 : index
    %113 = vector.load %arg6[%c2, %c0_40, %c0_41] : memref<8x8x128xf32, #tpu.memory_space<vmem>>, vector<1x8x128xf32>
    %114 = vector.shape_cast %113 : vector<1x8x128xf32> to vector<8x128xf32>
    %115 = vector.shape_cast %111 : vector<8x128xf32> to vector<1x8x128xf32>
    tpu.vector_store %arg6[%c2, %c0_40, %c0_41], %115 {strides = array<i32>} : memref<8x8x128xf32, #tpu.memory_space<vmem>>, vector<1x8x128xf32>,
    %c0_42 = arith.constant 0 : index
    %c0_43 = arith.constant 0 : index
    %116 = vector.load %arg7[%c0_42, %c0_43] : memref<8x128xf32, #tpu.memory_space<vmem>>, vector<8x128xf32>
    %cst_44 = arith.constant dense<0.000000e+00> : vector<8x384xf32>
    %117 = tpu.matmul %116, %10, %cst_44 {dimension_numbers = #tpu.dot_dimension_numbers<[1], [0], [0], [1], [0, 0, 1, 1], [], []>} : vector<8x128xf32>, vector<128x384xf32>, vector<8x384xf32> -> vector<8x384xf32>
    %118 = vector.extract_strided_slice %9 {offsets = [24, 0], sizes = [8, 384], strides = [1, 1]} : vector<64x384xf32> to vector<8x384xf32>
    %119 = vector.extract_strided_slice %118 {offsets = [0, 0], sizes = [8, 128], strides = [1, 1]} : vector<8x384xf32> to vector<8x128xf32>
    %120 = vector.extract_strided_slice %117 {offsets = [0, 0], sizes = [8, 128], strides = [1, 1]} : vector<8x384xf32> to vector<8x128xf32>
    %121 = arith.addf %119, %120 : vector<8x128xf32>
    %122 = arith.negf %121 : vector<8x128xf32>
    %123 = math.exp %122 : vector<8x128xf32>
    %cst_45 = arith.constant 1.000000e+00 : f32
    %124 = vector.broadcast %cst_45 : f32 to vector<8x128xf32>
    %125 = arith.addf %124, %123 : vector<8x128xf32>
    %126 = arith.divf %124, %125 : vector<8x128xf32>
    %127 = vector.extract_strided_slice %118 {offsets = [0, 128], sizes = [8, 128], strides = [1, 1]} : vector<8x384xf32> to vector<8x128xf32>
    %128 = vector.extract_strided_slice %117 {offsets = [0, 128], sizes = [8, 128], strides = [1, 1]} : vector<8x384xf32> to vector<8x128xf32>
    %129 = arith.addf %127, %128 : vector<8x128xf32>
    %130 = arith.negf %129 : vector<8x128xf32>
    %131 = math.exp %130 : vector<8x128xf32>
    %cst_46 = arith.constant 1.000000e+00 : f32
    %132 = vector.broadcast %cst_46 : f32 to vector<8x128xf32>
    %133 = arith.addf %132, %131 : vector<8x128xf32>
    %134 = arith.divf %132, %133 : vector<8x128xf32>
    %135 = vector.extract_strided_slice %118 {offsets = [0, 256], sizes = [8, 128], strides = [1, 1]} : vector<8x384xf32> to vector<8x128xf32>
    %136 = vector.extract_strided_slice %117 {offsets = [0, 256], sizes = [8, 128], strides = [1, 1]} : vector<8x384xf32> to vector<8x128xf32>
    %137 = arith.addf %136, %13 : vector<8x128xf32>
    %138 = arith.mulf %126, %137 : vector<8x128xf32>
    %139 = arith.addf %135, %138 : vector<8x128xf32>
    %140 = math.tanh %139 : vector<8x128xf32>
    %cst_47 = arith.constant 1.000000e+00 : f32
    %141 = vector.broadcast %cst_47 : f32 to vector<8x128xf32>
    %142 = arith.subf %141, %134 : vector<8x128xf32>
    %143 = arith.mulf %142, %140 : vector<8x128xf32>
    %144 = arith.mulf %134, %116 : vector<8x128xf32>
    %145 = arith.addf %143, %144 : vector<8x128xf32>
    %c0_48 = arith.constant 0 : index
    %c0_49 = arith.constant 0 : index
    %146 = vector.load %arg7[%c0_48, %c0_49] : memref<8x128xf32, #tpu.memory_space<vmem>>, vector<8x128xf32>
    tpu.vector_store %arg7[%c0_48, %c0_49], %145 {strides = array<i32>} : memref<8x128xf32, #tpu.memory_space<vmem>>, vector<8x128xf32>,
    %c3 = arith.constant 3 : index
    %c0_50 = arith.constant 0 : index
    %c0_51 = arith.constant 0 : index
    %147 = vector.load %arg6[%c3, %c0_50, %c0_51] : memref<8x8x128xf32, #tpu.memory_space<vmem>>, vector<1x8x128xf32>
    %148 = vector.shape_cast %147 : vector<1x8x128xf32> to vector<8x128xf32>
    %149 = vector.shape_cast %145 : vector<8x128xf32> to vector<1x8x128xf32>
    tpu.vector_store %arg6[%c3, %c0_50, %c0_51], %149 {strides = array<i32>} : memref<8x8x128xf32, #tpu.memory_space<vmem>>, vector<1x8x128xf32>,
    %c0_52 = arith.constant 0 : index
    %c0_53 = arith.constant 0 : index
    %150 = vector.load %arg7[%c0_52, %c0_53] : memref<8x128xf32, #tpu.memory_space<vmem>>, vector<8x128xf32>
    %cst_54 = arith.constant dense<0.000000e+00> : vector<8x384xf32>
    %151 = tpu.matmul %150, %10, %cst_54 {dimension_numbers = #tpu.dot_dimension_numbers<[1], [0], [0], [1], [0, 0, 1, 1], [], []>} : vector<8x128xf32>, vector<128x384xf32>, vector<8x384xf32> -> vector<8x384xf32>
    %152 = vector.extract_strided_slice %9 {offsets = [32, 0], sizes = [8, 384], strides = [1, 1]} : vector<64x384xf32> to vector<8x384xf32>
    %153 = vector.extract_strided_slice %152 {offsets = [0, 0], sizes = [8, 128], strides = [1, 1]} : vector<8x384xf32> to vector<8x128xf32>
    %154 = vector.extract_strided_slice %151 {offsets = [0, 0], sizes = [8, 128], strides = [1, 1]} : vector<8x384xf32> to vector<8x128xf32>
    %155 = arith.addf %153, %154 : vector<8x128xf32>
    %156 = arith.negf %155 : vector<8x128xf32>
    %157 = math.exp %156 : vector<8x128xf32>
    %cst_55 = arith.constant 1.000000e+00 : f32
    %158 = vector.broadcast %cst_55 : f32 to vector<8x128xf32>
    %159 = arith.addf %158, %157 : vector<8x128xf32>
    %160 = arith.divf %158, %159 : vector<8x128xf32>
    %161 = vector.extract_strided_slice %152 {offsets = [0, 128], sizes = [8, 128], strides = [1, 1]} : vector<8x384xf32> to vector<8x128xf32>
    %162 = vector.extract_strided_slice %151 {offsets = [0, 128], sizes = [8, 128], strides = [1, 1]} : vector<8x384xf32> to vector<8x128xf32>
    %163 = arith.addf %161, %162 : vector<8x128xf32>
    %164 = arith.negf %163 : vector<8x128xf32>
    %165 = math.exp %164 : vector<8x128xf32>
    %cst_56 = arith.constant 1.000000e+00 : f32
    %166 = vector.broadcast %cst_56 : f32 to vector<8x128xf32>
    %167 = arith.addf %166, %165 : vector<8x128xf32>
    %168 = arith.divf %166, %167 : vector<8x128xf32>
    %169 = vector.extract_strided_slice %152 {offsets = [0, 256], sizes = [8, 128], strides = [1, 1]} : vector<8x384xf32> to vector<8x128xf32>
    %170 = vector.extract_strided_slice %151 {offsets = [0, 256], sizes = [8, 128], strides = [1, 1]} : vector<8x384xf32> to vector<8x128xf32>
    %171 = arith.addf %170, %13 : vector<8x128xf32>
    %172 = arith.mulf %160, %171 : vector<8x128xf32>
    %173 = arith.addf %169, %172 : vector<8x128xf32>
    %174 = math.tanh %173 : vector<8x128xf32>
    %cst_57 = arith.constant 1.000000e+00 : f32
    %175 = vector.broadcast %cst_57 : f32 to vector<8x128xf32>
    %176 = arith.subf %175, %168 : vector<8x128xf32>
    %177 = arith.mulf %176, %174 : vector<8x128xf32>
    %178 = arith.mulf %168, %150 : vector<8x128xf32>
    %179 = arith.addf %177, %178 : vector<8x128xf32>
    %c0_58 = arith.constant 0 : index
    %c0_59 = arith.constant 0 : index
    %180 = vector.load %arg7[%c0_58, %c0_59] : memref<8x128xf32, #tpu.memory_space<vmem>>, vector<8x128xf32>
    tpu.vector_store %arg7[%c0_58, %c0_59], %179 {strides = array<i32>} : memref<8x128xf32, #tpu.memory_space<vmem>>, vector<8x128xf32>,
    %c4 = arith.constant 4 : index
    %c0_60 = arith.constant 0 : index
    %c0_61 = arith.constant 0 : index
    %181 = vector.load %arg6[%c4, %c0_60, %c0_61] : memref<8x8x128xf32, #tpu.memory_space<vmem>>, vector<1x8x128xf32>
    %182 = vector.shape_cast %181 : vector<1x8x128xf32> to vector<8x128xf32>
    %183 = vector.shape_cast %179 : vector<8x128xf32> to vector<1x8x128xf32>
    tpu.vector_store %arg6[%c4, %c0_60, %c0_61], %183 {strides = array<i32>} : memref<8x8x128xf32, #tpu.memory_space<vmem>>, vector<1x8x128xf32>,
    %c0_62 = arith.constant 0 : index
    %c0_63 = arith.constant 0 : index
    %184 = vector.load %arg7[%c0_62, %c0_63] : memref<8x128xf32, #tpu.memory_space<vmem>>, vector<8x128xf32>
    %cst_64 = arith.constant dense<0.000000e+00> : vector<8x384xf32>
    %185 = tpu.matmul %184, %10, %cst_64 {dimension_numbers = #tpu.dot_dimension_numbers<[1], [0], [0], [1], [0, 0, 1, 1], [], []>} : vector<8x128xf32>, vector<128x384xf32>, vector<8x384xf32> -> vector<8x384xf32>
    %186 = vector.extract_strided_slice %9 {offsets = [40, 0], sizes = [8, 384], strides = [1, 1]} : vector<64x384xf32> to vector<8x384xf32>
    %187 = vector.extract_strided_slice %186 {offsets = [0, 0], sizes = [8, 128], strides = [1, 1]} : vector<8x384xf32> to vector<8x128xf32>
    %188 = vector.extract_strided_slice %185 {offsets = [0, 0], sizes = [8, 128], strides = [1, 1]} : vector<8x384xf32> to vector<8x128xf32>
    %189 = arith.addf %187, %188 : vector<8x128xf32>
    %190 = arith.negf %189 : vector<8x128xf32>
    %191 = math.exp %190 : vector<8x128xf32>
    %cst_65 = arith.constant 1.000000e+00 : f32
    %192 = vector.broadcast %cst_65 : f32 to vector<8x128xf32>
    %193 = arith.addf %192, %191 : vector<8x128xf32>
    %194 = arith.divf %192, %193 : vector<8x128xf32>
    %195 = vector.extract_strided_slice %186 {offsets = [0, 128], sizes = [8, 128], strides = [1, 1]} : vector<8x384xf32> to vector<8x128xf32>
    %196 = vector.extract_strided_slice %185 {offsets = [0, 128], sizes = [8, 128], strides = [1, 1]} : vector<8x384xf32> to vector<8x128xf32>
    %197 = arith.addf %195, %196 : vector<8x128xf32>
    %198 = arith.negf %197 : vector<8x128xf32>
    %199 = math.exp %198 : vector<8x128xf32>
    %cst_66 = arith.constant 1.000000e+00 : f32
    %200 = vector.broadcast %cst_66 : f32 to vector<8x128xf32>
    %201 = arith.addf %200, %199 : vector<8x128xf32>
    %202 = arith.divf %200, %201 : vector<8x128xf32>
    %203 = vector.extract_strided_slice %186 {offsets = [0, 256], sizes = [8, 128], strides = [1, 1]} : vector<8x384xf32> to vector<8x128xf32>
    %204 = vector.extract_strided_slice %185 {offsets = [0, 256], sizes = [8, 128], strides = [1, 1]} : vector<8x384xf32> to vector<8x128xf32>
    %205 = arith.addf %204, %13 : vector<8x128xf32>
    %206 = arith.mulf %194, %205 : vector<8x128xf32>
    %207 = arith.addf %203, %206 : vector<8x128xf32>
    %208 = math.tanh %207 : vector<8x128xf32>
    %cst_67 = arith.constant 1.000000e+00 : f32
    %209 = vector.broadcast %cst_67 : f32 to vector<8x128xf32>
    %210 = arith.subf %209, %202 : vector<8x128xf32>
    %211 = arith.mulf %210, %208 : vector<8x128xf32>
    %212 = arith.mulf %202, %184 : vector<8x128xf32>
    %213 = arith.addf %211, %212 : vector<8x128xf32>
    %c0_68 = arith.constant 0 : index
    %c0_69 = arith.constant 0 : index
    %214 = vector.load %arg7[%c0_68, %c0_69] : memref<8x128xf32, #tpu.memory_space<vmem>>, vector<8x128xf32>
    tpu.vector_store %arg7[%c0_68, %c0_69], %213 {strides = array<i32>} : memref<8x128xf32, #tpu.memory_space<vmem>>, vector<8x128xf32>,
    %c5 = arith.constant 5 : index
    %c0_70 = arith.constant 0 : index
    %c0_71 = arith.constant 0 : index
    %215 = vector.load %arg6[%c5, %c0_70, %c0_71] : memref<8x8x128xf32, #tpu.memory_space<vmem>>, vector<1x8x128xf32>
    %216 = vector.shape_cast %215 : vector<1x8x128xf32> to vector<8x128xf32>
    %217 = vector.shape_cast %213 : vector<8x128xf32> to vector<1x8x128xf32>
    tpu.vector_store %arg6[%c5, %c0_70, %c0_71], %217 {strides = array<i32>} : memref<8x8x128xf32, #tpu.memory_space<vmem>>, vector<1x8x128xf32>,
    %c0_72 = arith.constant 0 : index
    %c0_73 = arith.constant 0 : index
    %218 = vector.load %arg7[%c0_72, %c0_73] : memref<8x128xf32, #tpu.memory_space<vmem>>, vector<8x128xf32>
    %cst_74 = arith.constant dense<0.000000e+00> : vector<8x384xf32>
    %219 = tpu.matmul %218, %10, %cst_74 {dimension_numbers = #tpu.dot_dimension_numbers<[1], [0], [0], [1], [0, 0, 1, 1], [], []>} : vector<8x128xf32>, vector<128x384xf32>, vector<8x384xf32> -> vector<8x384xf32>
    %220 = vector.extract_strided_slice %9 {offsets = [48, 0], sizes = [8, 384], strides = [1, 1]} : vector<64x384xf32> to vector<8x384xf32>
    %221 = vector.extract_strided_slice %220 {offsets = [0, 0], sizes = [8, 128], strides = [1, 1]} : vector<8x384xf32> to vector<8x128xf32>
    %222 = vector.extract_strided_slice %219 {offsets = [0, 0], sizes = [8, 128], strides = [1, 1]} : vector<8x384xf32> to vector<8x128xf32>
    %223 = arith.addf %221, %222 : vector<8x128xf32>
    %224 = arith.negf %223 : vector<8x128xf32>
    %225 = math.exp %224 : vector<8x128xf32>
    %cst_75 = arith.constant 1.000000e+00 : f32
    %226 = vector.broadcast %cst_75 : f32 to vector<8x128xf32>
    %227 = arith.addf %226, %225 : vector<8x128xf32>
    %228 = arith.divf %226, %227 : vector<8x128xf32>
    %229 = vector.extract_strided_slice %220 {offsets = [0, 128], sizes = [8, 128], strides = [1, 1]} : vector<8x384xf32> to vector<8x128xf32>
    %230 = vector.extract_strided_slice %219 {offsets = [0, 128], sizes = [8, 128], strides = [1, 1]} : vector<8x384xf32> to vector<8x128xf32>
    %231 = arith.addf %229, %230 : vector<8x128xf32>
    %232 = arith.negf %231 : vector<8x128xf32>
    %233 = math.exp %232 : vector<8x128xf32>
    %cst_76 = arith.constant 1.000000e+00 : f32
    %234 = vector.broadcast %cst_76 : f32 to vector<8x128xf32>
    %235 = arith.addf %234, %233 : vector<8x128xf32>
    %236 = arith.divf %234, %235 : vector<8x128xf32>
    %237 = vector.extract_strided_slice %220 {offsets = [0, 256], sizes = [8, 128], strides = [1, 1]} : vector<8x384xf32> to vector<8x128xf32>
    %238 = vector.extract_strided_slice %219 {offsets = [0, 256], sizes = [8, 128], strides = [1, 1]} : vector<8x384xf32> to vector<8x128xf32>
    %239 = arith.addf %238, %13 : vector<8x128xf32>
    %240 = arith.mulf %228, %239 : vector<8x128xf32>
    %241 = arith.addf %237, %240 : vector<8x128xf32>
    %242 = math.tanh %241 : vector<8x128xf32>
    %cst_77 = arith.constant 1.000000e+00 : f32
    %243 = vector.broadcast %cst_77 : f32 to vector<8x128xf32>
    %244 = arith.subf %243, %236 : vector<8x128xf32>
    %245 = arith.mulf %244, %242 : vector<8x128xf32>
    %246 = arith.mulf %236, %218 : vector<8x128xf32>
    %247 = arith.addf %245, %246 : vector<8x128xf32>
    %c0_78 = arith.constant 0 : index
    %c0_79 = arith.constant 0 : index
    %248 = vector.load %arg7[%c0_78, %c0_79] : memref<8x128xf32, #tpu.memory_space<vmem>>, vector<8x128xf32>
    tpu.vector_store %arg7[%c0_78, %c0_79], %247 {strides = array<i32>} : memref<8x128xf32, #tpu.memory_space<vmem>>, vector<8x128xf32>,
    %c6 = arith.constant 6 : index
    %c0_80 = arith.constant 0 : index
    %c0_81 = arith.constant 0 : index
    %249 = vector.load %arg6[%c6, %c0_80, %c0_81] : memref<8x8x128xf32, #tpu.memory_space<vmem>>, vector<1x8x128xf32>
    %250 = vector.shape_cast %249 : vector<1x8x128xf32> to vector<8x128xf32>
    %251 = vector.shape_cast %247 : vector<8x128xf32> to vector<1x8x128xf32>
    tpu.vector_store %arg6[%c6, %c0_80, %c0_81], %251 {strides = array<i32>} : memref<8x8x128xf32, #tpu.memory_space<vmem>>, vector<1x8x128xf32>,
    %c0_82 = arith.constant 0 : index
    %c0_83 = arith.constant 0 : index
    %252 = vector.load %arg7[%c0_82, %c0_83] : memref<8x128xf32, #tpu.memory_space<vmem>>, vector<8x128xf32>
    %cst_84 = arith.constant dense<0.000000e+00> : vector<8x384xf32>
    %253 = tpu.matmul %252, %10, %cst_84 {dimension_numbers = #tpu.dot_dimension_numbers<[1], [0], [0], [1], [0, 0, 1, 1], [], []>} : vector<8x128xf32>, vector<128x384xf32>, vector<8x384xf32> -> vector<8x384xf32>
    %254 = vector.extract_strided_slice %9 {offsets = [56, 0], sizes = [8, 384], strides = [1, 1]} : vector<64x384xf32> to vector<8x384xf32>
    %255 = vector.extract_strided_slice %254 {offsets = [0, 0], sizes = [8, 128], strides = [1, 1]} : vector<8x384xf32> to vector<8x128xf32>
    %256 = vector.extract_strided_slice %253 {offsets = [0, 0], sizes = [8, 128], strides = [1, 1]} : vector<8x384xf32> to vector<8x128xf32>
    %257 = arith.addf %255, %256 : vector<8x128xf32>
    %258 = arith.negf %257 : vector<8x128xf32>
    %259 = math.exp %258 : vector<8x128xf32>
    %cst_85 = arith.constant 1.000000e+00 : f32
    %260 = vector.broadcast %cst_85 : f32 to vector<8x128xf32>
    %261 = arith.addf %260, %259 : vector<8x128xf32>
    %262 = arith.divf %260, %261 : vector<8x128xf32>
    %263 = vector.extract_strided_slice %254 {offsets = [0, 128], sizes = [8, 128], strides = [1, 1]} : vector<8x384xf32> to vector<8x128xf32>
    %264 = vector.extract_strided_slice %253 {offsets = [0, 128], sizes = [8, 128], strides = [1, 1]} : vector<8x384xf32> to vector<8x128xf32>
    %265 = arith.addf %263, %264 : vector<8x128xf32>
    %266 = arith.negf %265 : vector<8x128xf32>
    %267 = math.exp %266 : vector<8x128xf32>
    %cst_86 = arith.constant 1.000000e+00 : f32
    %268 = vector.broadcast %cst_86 : f32 to vector<8x128xf32>
    %269 = arith.addf %268, %267 : vector<8x128xf32>
    %270 = arith.divf %268, %269 : vector<8x128xf32>
    %271 = vector.extract_strided_slice %254 {offsets = [0, 256], sizes = [8, 128], strides = [1, 1]} : vector<8x384xf32> to vector<8x128xf32>
    %272 = vector.extract_strided_slice %253 {offsets = [0, 256], sizes = [8, 128], strides = [1, 1]} : vector<8x384xf32> to vector<8x128xf32>
    %273 = arith.addf %272, %13 : vector<8x128xf32>
    %274 = arith.mulf %262, %273 : vector<8x128xf32>
    %275 = arith.addf %271, %274 : vector<8x128xf32>
    %276 = math.tanh %275 : vector<8x128xf32>
    %cst_87 = arith.constant 1.000000e+00 : f32
    %277 = vector.broadcast %cst_87 : f32 to vector<8x128xf32>
    %278 = arith.subf %277, %270 : vector<8x128xf32>
    %279 = arith.mulf %278, %276 : vector<8x128xf32>
    %280 = arith.mulf %270, %252 : vector<8x128xf32>
    %281 = arith.addf %279, %280 : vector<8x128xf32>
    %c0_88 = arith.constant 0 : index
    %c0_89 = arith.constant 0 : index
    %282 = vector.load %arg7[%c0_88, %c0_89] : memref<8x128xf32, #tpu.memory_space<vmem>>, vector<8x128xf32>
    tpu.vector_store %arg7[%c0_88, %c0_89], %281 {strides = array<i32>} : memref<8x128xf32, #tpu.memory_space<vmem>>, vector<8x128xf32>,
    %c7 = arith.constant 7 : index
    %c0_90 = arith.constant 0 : index
    %c0_91 = arith.constant 0 : index
    %283 = vector.load %arg6[%c7, %c0_90, %c0_91] : memref<8x8x128xf32, #tpu.memory_space<vmem>>, vector<1x8x128xf32>
    %284 = vector.shape_cast %283 : vector<1x8x128xf32> to vector<8x128xf32>
    %285 = vector.shape_cast %281 : vector<8x128xf32> to vector<1x8x128xf32>
    tpu.vector_store %arg6[%c7, %c0_90, %c0_91], %285 {strides = array<i32>} : memref<8x8x128xf32, #tpu.memory_space<vmem>>, vector<1x8x128xf32>,
    return
  }
  func.func @transform_0(%arg0: i32) -> (i32, i32, i32) {
    %c0_i32 = arith.constant 0 : i32
    %c0_i32_0 = arith.constant 0 : i32
    %c0_i32_1 = arith.constant 0 : i32
    return %arg0, %c0_i32, %c0_i32_0 : i32, i32, i32
  }
  func.func @transform_1(%arg0: i32) -> (i32, i32) {
    %c0_i32 = arith.constant 0 : i32
    %c0_i32_0 = arith.constant 0 : i32
    %c0_i32_1 = arith.constant 0 : i32
    return %c0_i32, %c0_i32_0 : i32, i32
  }
  func.func @transform_2(%arg0: i32) -> (i32, i32) {
    %c0_i32 = arith.constant 0 : i32
    %c0_i32_0 = arith.constant 0 : i32
    %c0_i32_1 = arith.constant 0 : i32
    return %c0_i32, %c0_i32_0 : i32, i32
  }
  func.func @transform_3(%arg0: i32) -> (i32, i32) {
    %c0_i32 = arith.constant 0 : i32
    %c0_i32_0 = arith.constant 0 : i32
    %c0_i32_1 = arith.constant 0 : i32
    return %c0_i32, %c0_i32_0 : i32, i32
  }
  func.func @transform_4(%arg0: i32) -> (i32, i32) {
    %c0_i32 = arith.constant 0 : i32
    %c0_i32_0 = arith.constant 0 : i32
    %c0_i32_1 = arith.constant 0 : i32
    return %c0_i32, %c0_i32_0 : i32, i32
  }
  func.func @transform_5(%arg0: i32) -> (i32, i32, i32) {
    %c0_i32 = arith.constant 0 : i32
    %c0_i32_0 = arith.constant 0 : i32
    %c0_i32_1 = arith.constant 0 : i32
    return %arg0, %c0_i32, %c0_i32_0 : i32, i32, i32
  }
}

</mosaic_0001>

<bundles_post_ra>
// kernel: gru_model_forward.3
= control target key start
LH: loop header
LB: loop body
LE: loop exit
PB: predicated region body
PF: predicated region fallthrough
CT: control target
= control target key end

     0   :  { %v3004_v3 = vmov 0.0   ;;  %vm3006_vm0 = vmmov 0   ;;  %s3827_s1 = inlined_call_operand.vmem [shape: f32[128,384], index: 1, kind: input, shape index: {}]   ;;  %s3828_s0 = inlined_call_operand.vmem [shape: f32[8,8,128], index: 0, kind: input, shape index: {}]   ;;  %s3829_s2 = inlined_call_operand.vmem [shape: f32[128,384], index: 2, kind: input, shape index: {}]   ;;  %s3830_s3 = inlined_call_operand.vmem [shape: f32[1,384], index: 3, kind: input, shape index: {}]   ;;  %s3831_s4 = inlined_call_operand.vmem [shape: f32[1,128], index: 4, kind: input, shape index: {}]   ;;  %s3832_s5 = inlined_call_operand.vmem [shape: f32[128,128], index: 5, kind: input, shape index: {}]   ;;  %s3833_s6 = inlined_call_operand.vmem [shape: f32[1,128], index: 6, kind: input, shape index: {}]   ;;  %s3834_s7 = inlined_call_operand.vmem [shape: f32[8,128], index: 7, kind: output, shape index: {}]  }
   0x1   :  { %v40_v0 = vld [vmem:[%s3827_s1 + $0x8] sm:$0xff]  ;;  %v43_v1 = vld [vmem:[%s3827_s1 + $0x20] sm:$0xff]  ;;  %168 = vmatprep.mubr.f32.mxu0 %v3004_v3  ;;  %v42_v5 = vld [vmem:[%s3827_s1 + $0x18] sm:$0xff] }
   0x2   :  { %v39_v2 = vld [vmem:[%s3827_s1] sm:$0xff]  ;;  %v2353_v4 = vpack.c.bf16 %v43_v1, %v40_v0  ;;  %v46_v6 = vld [vmem:[%s3827_s1 + $0x38] sm:$0xff]  ;;  %v49_v7 = vld [vmem:[%s3827_s1 + $0x50] sm:$0xff] }
   0x3   :  { %v2355_v8 = vpack.c.bf16 %v42_v5, %v39_v2  ;;  %v2357_v9 = vpack.c.bf16 %v49_v7, %v46_v6  ;;  %v45_v10 = vld [vmem:[%s3827_s1 + $0x30] sm:$0xff]  ;;  %v48_v11 = vld [vmem:[%s3827_s1 + $0x48] sm:$0xff]  ;;  %v55_v13 = vld [vmem:[%s3827_s1 + $0x80] sm:$0xff] }
   0x4   :  { %v52_v12 = vld [vmem:[%s3827_s1 + $0x68] sm:$0xff]  ;;  %2354 = vmatprep.subr.bf16.mxu0 %v2353_v4  ;;  %v2359_v14 = vpack.c.bf16 %v48_v11, %v45_v10  ;;  %v51_v16 = vld [vmem:[%s3827_s1 + $0x60] sm:$0xff]  ;;  %v54_v17 = vld [vmem:[%s3827_s1 + $0x78] sm:$0xff] }
   0x5   :  { %2356 = vmatpush1.bf16.msra.mxu0 %v2355_v8  ;;  %v2361_v15 = vpack.c.bf16 %v55_v13, %v52_v12  ;;  %v58_v18 = vld [vmem:[%s3827_s1 + $0x98] sm:$0xff]  ;;  %v61_v19 = vld [vmem:[%s3827_s1 + $0xb0] sm:$0xff]  ;;  %v2363_v20 = vpack.c.bf16 %v54_v17, %v51_v16  ;;  %v60_v23 = vld [vmem:[%s3827_s1 + $0xa8] sm:$0xff] }
   0x6   :  { %2358 = vmatprep.subr.bf16.mxu0 %v2357_v9  ;;  %v57_v21 = vld [vmem:[%s3827_s1 + $0x90] sm:$0xff]  ;;  %v2365_v22 = vpack.c.bf16 %v61_v19, %v58_v18  ;;  %v44_v25 = vld [vmem:[%s3827_s1 + $0x28] sm:$0xff]  ;;  %v67_v27 = vld [vmem:[%s3827_s1 + $0xe0] sm:$0xff] }
   0x7   :  { %v41_v24 = vld [vmem:[%s3827_s1 + $0x10] sm:$0xff]  ;;  %v64_v26 = vld [vmem:[%s3827_s1 + $0xc8] sm:$0xff]  ;;  %v47_v29 = vld [vmem:[%s3827_s1 + $0x40] sm:$0xff]  ;;  %v2367_v31 = vpack.c.bf16 %v60_v23, %v57_v21 }
   0x8   :  { %v2385_v28 = vpack.c.bf16 %v44_v25, %v41_v24  ;;  %v50_v30 = vld [vmem:[%s3827_s1 + $0x58] sm:$0xff]  ;;  %v63_v32 = vld [vmem:[%s3827_s1 + $0xc0] sm:$0xff]  ;;  %v2369_v34 = vpack.c.bf16 %v67_v27, %v64_v26  ;;  %v53_v37 = vld [vmem:[%s3827_s1 + $0x70] sm:$0xff] }
   0x9   :  { %2360 = vmatpush1.bf16.msra.mxu0 %v2359_v14  ;;  %v2389_v33 = vpack.c.bf16 %v50_v30, %v47_v29  ;;  %v66_v35 = vld [vmem:[%s3827_s1 + $0xd8] sm:$0xff]  ;;  %v3123_v36 = vld [vmem:[%s3828_s0] sm:$0xff]  ;;  %v73_v39 = vld [vmem:[%s3827_s1 + $0x110] sm:$0xff] }
   0xa   :  { %2362 = vmatprep.subr.bf16.mxu0 %v2361_v15  ;;  %2386 = vmatprep.subr.bf16.mxu1 %v2385_v28  ;;  %v70_v38 = vld [vmem:[%s3827_s1 + $0xf8] sm:$0xff]  ;;  %v56_v40 = vld [vmem:[%s3827_s1 + $0x88] sm:$0xff]  ;;  %v2371_v42 = vpack.c.bf16 %v66_v35, %v63_v32  ;;  %v59_v43 = vld [vmem:[%s3827_s1 + $0xa0] sm:$0xff] }
   0xb   :  { %2388 = vmatpush3.bf16.msra.mxu1 %v2385_v28  ;;  %2026 = vmatprep.mubr.f32.mxu1 %v3123_v36  ;;  %v2393_v41 = vpack.c.bf16 %v56_v40, %v53_v37  ;;  %v62_v44 = vld [vmem:[%s3827_s1 + $0xb8] sm:$0xff]  ;;  %v2373_v45 = vpack.c.bf16 %v73_v39, %v70_v38  ;;  %v69_v46 = vld [vmem:[%s3827_s1 + $0xf0] sm:$0xff]  ;;  %v72_v47 = vld [vmem:[%s3827_s1 + $0x108] sm:$0xff]  ;;  %v3005_v40 = vmov 0.0|0.0  }
   0xc   :  { %2390 = vmatprep.subr.bf16.mxu1 %v2389_v33  ;;  %v76_v48 = vld [vmem:[%s3827_s1 + $0x128] sm:$0xff]  ;;  %v79_v49 = vld [vmem:[%s3827_s1 + $0x140] sm:$0xff]  ;;  %v2397_v50 = vpack.c.bf16 %v62_v44, %v59_v43  ;;  %v65_v51 = vld [vmem:[%s3827_s1 + $0xd0] sm:$0xff]  ;;  %v2375_v53 = vpack.c.bf16 %v72_v47, %v69_v46 }
   0xd   :  { %2364 = vmatpush1.bf16.msra.mxu0 %v2363_v20  ;;  %v68_v52 = vld [vmem:[%s3827_s1 + $0xe8] sm:$0xff]  ;;  %v2377_v54 = vpack.c.bf16 %v79_v49, %v76_v48  ;;  %v75_v55 = vld [vmem:[%s3827_s1 + $0x120] sm:$0xff]  ;;  %v78_v56 = vld [vmem:[%s3827_s1 + $0x138] sm:$0xff] }
   0xe   :  { %2366 = vmatprep.subr.bf16.mxu0 %v2365_v22  ;;  %v82_v57 = vld [vmem:[%s3827_s1 + $0x158] sm:$0xff]  ;;  %v85_v58 = vld [vmem:[%s3827_s1 + $0x170] sm:$0xff]  ;;  %v2401_v59 = vpack.c.bf16 %v68_v52, %v65_v51  ;;  %v71_v60 = vld [vmem:[%s3827_s1 + $0x100] sm:$0xff]  ;;  %v2379_v62 = vpack.c.bf16 %v78_v56, %v75_v55 }
   0xf   :  { %2392 = vmatpush3.bf16.msra.mxu1 %v2389_v33  ;;  %v74_v61 = vld [vmem:[%s3827_s1 + $0x118] sm:$0xff]  ;;  %v2381_v63 = vpack.c.bf16 %v85_v58, %v82_v57  ;;  %v81_v0 = vld [vmem:[%s3827_s1 + $0x150] sm:$0xff]  ;;  %v84_v1 = vld [vmem:[%s3827_s1 + $0x168] sm:$0xff] }
  0x10   :  { %2394 = vmatprep.subr.bf16.mxu1 %v2393_v41  ;;  %v323_v2 = vld [vmem:[%s3829_s2 + $0x8] sm:$0xff]  ;;  %v326_v4 = vld [vmem:[%s3829_s2 + $0x20] sm:$0xff]  ;;  %v2405_v5 = vpack.c.bf16 %v74_v61, %v71_v60  ;;  %v77_v6 = vld [vmem:[%s3827_s1 + $0x130] sm:$0xff]  ;;  %v2383_v8 = vpack.c.bf16 %v84_v1, %v81_v0 }
  0x11   :  { %2368 = vmatpush1.bf16.msra.mxu0 %v2367_v31  ;;  %v80_v7 = vld [vmem:[%s3827_s1 + $0x148] sm:$0xff]  ;;  %v3198_v9 = vpack.c.bf16 %v326_v4, %v323_v2  ;;  %v322_v10 = vld [vmem:[%s3829_s2] sm:$0xff]  ;;  %v325_v11 = vld [vmem:[%s3829_s2 + $0x18] sm:$0xff] }
  0x12   :  { %2370 = vmatprep.subr.bf16.mxu0 %v2369_v34  ;;  %v329_v12 = vld [vmem:[%s3829_s2 + $0x38] sm:$0xff]  ;;  %v332_v13 = vld [vmem:[%s3829_s2 + $0x50] sm:$0xff]  ;;  %v2409_v14 = vpack.c.bf16 %v80_v7, %v77_v6  ;;  %v83_v15 = vld [vmem:[%s3827_s1 + $0x160] sm:$0xff]  ;;  %v3218_v17 = vpack.c.bf16 %v325_v11, %v322_v10 }
  0x13   :  { %2396 = vmatpush3.bf16.msra.mxu1 %v2393_v41  ;;  %v86_v16 = vld [vmem:[%s3827_s1 + $0x178] sm:$0xff]  ;;  %v3221_v18 = vpack.c.bf16 %v332_v13, %v329_v12  ;;  %v328_v19 = vld [vmem:[%s3829_s2 + $0x30] sm:$0xff]  ;;  %v331_v20 = vld [vmem:[%s3829_s2 + $0x48] sm:$0xff] }
  0x14   :  { %2398 = vmatprep.subr.bf16.mxu1 %v2397_v50  ;;  %v335_v21 = vld [vmem:[%s3829_s2 + $0x68] sm:$0xff]  ;;  %v338_v22 = vld [vmem:[%s3829_s2 + $0x80] sm:$0xff]  ;;  %v2413_v23 = vpack.c.bf16 %v86_v16, %v83_v15  ;;  %v3241_v25 = vpack.c.bf16 %v331_v20, %v328_v19  ;;  %v337_v28 = vld [vmem:[%s3829_s2 + $0x78] sm:$0xff] }
  0x15   :  { %2372 = vmatpush1.bf16.msra.mxu0 %v2371_v42  ;;  %v32_v24 = vld [vmem:[%s3828_s0 + $0x8] sm:$0xff]  ;;  %v3244_v26 = vpack.c.bf16 %v338_v22, %v335_v21  ;;  %v334_v27 = vld [vmem:[%s3829_s2 + $0x60] sm:$0xff]  ;;  %v341_v29 = vld [vmem:[%s3829_s2 + $0x98] sm:$0xff] }
  0x16   :  { %2374 = vmatprep.subr.bf16.mxu0 %v2373_v45  ;;  %v344_v30 = vld [vmem:[%s3829_s2 + $0xb0] sm:$0xff]  ;;  %v327_v32 = vld [vmem:[%s3829_s2 + $0x28] sm:$0xff]  ;;  %v3269_v34 = vpack.c.bf16 %v337_v28, %v334_v27  ;;  %v350_v39 = vld [vmem:[%s3829_s2 + $0xe0] sm:$0xff] }
  0x17   :  { %2400 = vmatpush3.bf16.msra.mxu1 %v2397_v50  ;;  %v324_v31 = vld [vmem:[%s3829_s2 + $0x10] sm:$0xff]  ;;  %v3272_v35 = vpack.c.bf16 %v344_v30, %v341_v29  ;;  %v343_v37 = vld [vmem:[%s3829_s2 + $0xa8] sm:$0xff]  ;;  %v330_v42 = vld [vmem:[%s3829_s2 + $0x40] sm:$0xff] }
  0x18   :  { %2402 = vmatprep.subr.bf16.mxu1 %v2401_v59  ;;  %v33_v33 = vld [vmem:[%s3828_s0 + $0x10] sm:$0xff]  ;;  %v347_v38 = vld [vmem:[%s3829_s2 + $0xc8] sm:$0xff]  ;;  %v3287_v41 = vpack.c.bf16 %v327_v32, %v324_v31  ;;  %v333_v43 = vld [vmem:[%s3829_s2 + $0x58] sm:$0xff] }
  0x19   :  { %2376 = vmatpush1.bf16.msra.mxu0 %v2375_v53  ;;  %v34_v44 = vld [vmem:[%s3828_s0 + $0x18] sm:$0xff]  ;;  %v3303_v46 = vpack.c.bf16 %v350_v39, %v347_v38  ;;  %v346_v47 = vld [vmem:[%s3829_s2 + $0xc0] sm:$0xff]  ;;  %v356_v50 = vld [vmem:[%s3829_s2 + $0x110] sm:$0xff]  ;;  %v3318_v51 = vpack.c.bf16 %v333_v43, %v330_v42 }
  0x1a   :  { %2378 = vmatprep.subr.bf16.mxu0 %v2377_v54  ;;  %v349_v48 = vld [vmem:[%s3829_s2 + $0xd8] sm:$0xff]  ;;  %v336_v52 = vld [vmem:[%s3829_s2 + $0x70] sm:$0xff]  ;;  %v339_v53 = vld [vmem:[%s3829_s2 + $0x88] sm:$0xff] }
  0x1b   :  { %2404 = vmatpush3.bf16.msra.mxu1 %v2401_v59  ;;  %v353_v49 = vld [vmem:[%s3829_s2 + $0xf8] sm:$0xff]  ;;  %v35_v54 = vld [vmem:[%s3828_s0 + $0x20] sm:$0xff]  ;;  %v3332_v55 = vpack.c.bf16 %v349_v48, %v346_v47  ;;  %v352_v57 = vld [vmem:[%s3829_s2 + $0xf0] sm:$0xff]  ;;  %v3350_v61 = vpack.c.bf16 %v339_v53, %v336_v52 }
  0x1c   :  { %2406 = vmatprep.subr.bf16.mxu1 %v2405_v5  ;;  %v3335_v56 = vpack.c.bf16 %v356_v50, %v353_v49  ;;  %v355_v58 = vld [vmem:[%s3829_s2 + $0x108] sm:$0xff]  ;;  %v362_v60 = vld [vmem:[%s3829_s2 + $0x140] sm:$0xff]  ;;  %v37_v2 = vld [vmem:[%s3828_s0 + $0x30] sm:$0xff] }
  0x1d   :  { %2380 = vmatpush1.bf16.msra.mxu0 %v2379_v62  ;;  %v359_v59 = vld [vmem:[%s3829_s2 + $0x128] sm:$0xff]  ;;  %v342_v62 = vld [vmem:[%s3829_s2 + $0xa0] sm:$0xff]  ;;  %v3364_v1 = vpack.c.bf16 %v355_v58, %v352_v57  ;;  %v361_v6 = vld [vmem:[%s3829_s2 + $0x138] sm:$0xff] }
  0x1e   :  { %2382 = vmatprep.subr.bf16.mxu0 %v2381_v63  ;;  %v345_v63 = vld [vmem:[%s3829_s2 + $0xb8] sm:$0xff]  ;;  %v36_v0 = vld [vmem:[%s3828_s0 + $0x28] sm:$0xff]  ;;  %v3370_v4 = vpack.c.bf16 %v362_v60, %v359_v59  ;;  %v348_v11 = vld [vmem:[%s3829_s2 + $0xd0] sm:$0xff] }
  0x1f   :  { %2408 = vmatpush3.bf16.msra.mxu1 %v2405_v5  ;;  %v358_v5 = vld [vmem:[%s3829_s2 + $0x120] sm:$0xff]  ;;  %v365_v7 = vld [vmem:[%s3829_s2 + $0x158] sm:$0xff]  ;;  %v3385_v10 = vpack.c.bf16 %v345_v63, %v342_v62  ;;  %v351_v12 = vld [vmem:[%s3829_s2 + $0xe8] sm:$0xff] }
  0x20   :  { %2410 = vmatprep.subr.bf16.mxu1 %v2409_v14  ;;  %v3396_v13 = vpack.c.bf16 %v361_v6, %v358_v5  ;;  %v364_v16 = vld [vmem:[%s3829_s2 + $0x150] sm:$0xff]  ;;  %v367_v19 = vld [vmem:[%s3829_s2 + $0x168] sm:$0xff]  ;;  %v3411_v20 = vpack.c.bf16 %v351_v12, %v348_v11  ;;  %v354_v21 = vld [vmem:[%s3829_s2 + $0x100] sm:$0xff] }
  0x21   :  { %2384 = vmatpush1.bf16.msra.mxu0 %v2383_v8  ;;  %v368_v8 = vld [vmem:[%s3829_s2 + $0x170] sm:$0xff]  ;;  %v357_v22 = vld [vmem:[%s3829_s2 + $0x118] sm:$0xff]  ;;  %v363_v28 = vld [vmem:[%s3829_s2 + $0x148] sm:$0xff] }
  0x22   :  { %2418 = vmatprep.subr.bf16.mxu0 %v3198_v9  ;;  %v3402_v15 = vpack.c.bf16 %v368_v8, %v365_v7  ;;  %v360_v27 = vld [vmem:[%s3829_s2 + $0x130] sm:$0xff]  ;;  %v366_v30 = vld [vmem:[%s3829_s2 + $0x160] sm:$0xff]  ;;  %v369_v31 = vld [vmem:[%s3829_s2 + $0x178] sm:$0xff] }
  0x23   :  { %2412 = vmatpush3.bf16.msra.mxu1 %v2409_v14  ;;  %v38_v14 = vld [vmem:[%s3828_s0 + $0x38] sm:$0xff]  ;;  %v3441_v29 = vpack.c.bf16 %v363_v28, %v360_v27  ;;  %v3455_v32 = vpack.c.bf16 %v369_v31, %v366_v30  ;;  %v87_v38 = vld [vmem:[%s3830_s3] sm:$0x7] }
  0x24   :  { %169 = vmatmul.mubr.f32.vlgmr.msra.gmra.mrb[0].mxu0 %v3123_v36  ;;  %2414 = vmatprep.subr.bf16.mxu1 %v2413_v23  ;;  %v340_v36 = vld [vmem:[%s3829_s2 + $0x90] sm:$0xff]  ;;  %v3519_v28 = vld [vmem:[%s3831_s4] ss:$0 sm:$0xff] }
  0x25   :  { %2420 = vmatpush1.bf16.msra.mxu0 %v3218_v17  ;;  %174 = vmatprep.mubr.f32.mxu0 %v3004_v3  ;;  %v3300_v45 = vpack.c.bf16 %v343_v37, %v340_v36 }
  0x26   :  { %2422 = vmatprep.subr.bf16.mxu0 %v3221_v18 }
  0x27   :  { %2416 = vmatpush3.bf16.msra.mxu1 %v2413_v23  ;;  %v3424_v23 = vpack.c.bf16 %v367_v19, %v364_v16 }
  0x28   :  { %175 = vmatmul.mubr.f32.gmra.mrb[2].mxu0 %v32_v24  ;;  %2449 = vmatprep.subr.bf16.mxu1 %v3005_v40 }
  0x29   :  { %2424 = vmatpush1.bf16.msra.mxu0 %v3241_v25  ;;  %180 = vmatprep.mubr.f32.mxu0 %v3004_v3 }
  0x2a   :  { %2426 = vmatprep.subr.bf16.mxu0 %v3244_v26  ;;  %2027 = vmatmul.mubr.f32.vlgmr.msra.gmra.mrb[0].mxu1 %v32_v24  ;;  %v3428_v24 = vpack.c.bf16 %v357_v22, %v354_v21 }
  0x2b   :  { %2451 = vmatpush3.bf16.msra.mxu1 %v3287_v41  ;;  %2029 = vmatprep.mubr.f32.mxu1 %v33_v33 }
  0x2c   :  { %181 = vmatmul.mubr.f32.gmra.mrb[4].mxu0 %v33_v33  ;;  %2452 = vmatprep.subr.bf16.mxu1 %v3005_v40  ;;  %v89_v33 = vlaneseq }
  0x2d   :  { %2428 = vmatpush1.bf16.msra.mxu0 %v3269_v34  ;;  %186 = vmatprep.mubr.f32.mxu0 %v3004_v3 }
  0x2e   :  { %2430 = vmatprep.subr.bf16.mxu0 %v3272_v35  ;;  %2030 = vmatmul.mubr.f32.gmra.mrb[2].mxu1 %v34_v44  ;;  %v90_v36 = vshrl.u32 %v89_v33, 7 }
  0x2f   :  { %2454 = vmatpush3.bf16.msra.mxu1 %v3318_v51  ;;  %2032 = vmatprep.mubr.f32.mxu1 %v35_v54 }
  0x30   :  { %187 = vmatmul.mubr.f32.gmra.mrb[6].mxu0 %v34_v44  ;;  %2455 = vmatprep.subr.bf16.mxu1 %v3005_v40  ;;  %v99_v37 = vsub.s32 2, %v90_v36  ;;  %v91_v63 = vsub.s32 0, %v90_v36 }
  0x31   :  { %2432 = vmatpush1.bf16.msra.mxu0 %v3300_v45  ;;  %192 = vmatprep.mubr.f32.mxu0 %v3004_v3 }
  0x32   :  { %2434 = vmatprep.subr.bf16.mxu0 %v3303_v46  ;;  %2033 = vmatmul.mubr.f32.gmra.mrb[4].mxu1 %v36_v0  ;;  %v100_v39 = vrot.slane %v87_v38, %v99_v37 }
  0x33   :  { %2457 = vmatpush3.bf16.msra.mxu1 %v3350_v61  ;;  %2035 = vmatprep.mubr.f32.mxu1 %v37_v2 }
  0x34   :  { %193 = vmatmul.mubr.f32.gmra.mrb[8].mxu0 %v35_v54  ;;  %2458 = vmatprep.subr.bf16.mxu1 %v3005_v40 }
  0x35   :  { %2436 = vmatpush1.bf16.msra.mxu0 %v3332_v55  ;;  %198 = vmatprep.mubr.f32.mxu0 %v3004_v3 }
  0x36   :  { %2438 = vmatprep.subr.bf16.mxu0 %v3335_v56  ;;  %2036 = vmatmul.mubr.f32.gmra.mrb[6].mxu1 %v38_v14 }
  0x37   :  { %2460 = vmatpush3.bf16.msra.mxu1 %v3385_v10  ;;  %2070 = vmatprep.mubr.msk.f32.mxu1 %vm3006_vm0, %v3004_v3 }
  0x38   :  { %199 = vmatmul.mubr.f32.gmra.mrb[10].mxu0 %v36_v0  ;;  %2461 = vmatprep.subr.bf16.mxu1 %v3005_v40  ;;  %v95_v0 = vsub.s32 1, %v90_v36 }
  0x39   :  { %2440 = vmatpush1.bf16.msra.mxu0 %v3364_v1  ;;  %204 = vmatprep.mubr.f32.mxu0 %v3004_v3 }
  0x3a   :  { %2442 = vmatprep.subr.bf16.mxu0 %v3370_v4  ;;  %v3512_v6 = vrot.slane %v87_v38, %v95_v0 }
  0x3b   :  { %2463 = vmatpush3.bf16.msra.mxu1 %v3411_v20 }
  0x3c   :  { %205 = vmatmul.mubr.f32.gmra.mrb[12].mxu0 %v37_v2  ;;  %2464 = vmatprep.subr.bf16.mxu1 %v3005_v40  ;;  %v3510_v2 = vrot.slane %v87_v38, %v91_v63 }
  0x3d   :  { %2444 = vmatpush1.bf16.msra.mxu0 %v3396_v13  ;;  %210 = vmatprep.mubr.f32.mxu0 %v3004_v3 }
  0x3e   :  { %2446 = vmatprep.subr.bf16.mxu0 %v3402_v15 }
  0x3f   :  { %2466 = vmatpush3.bf16.msra.mxu1 %v3428_v24 }
  0x40   :  { %211 = vmatmul.mubr.f32.gmra.mrb[14].mxu0 %v38_v14  ;;  %2467 = vmatprep.subr.bf16.mxu1 %v3005_v40 }
  0x41   :  { %2448 = vmatpush1.bf16.msra.mxu0 %v3424_v23  ;;  %442 = vmatprep.mubr.f32.mxu0 %v3004_v3 }
  0x42   :  { %2474 = vmatprep.subr.bf16.mxu0 %v3198_v9 }
  0x43   :  { %2469 = vmatpush3.bf16.msra.mxu1 %v3441_v29 }
  0x44   :  { %443 = vmatmul.mubr.f32.vlgmr.msra.gmra.mrb[0].mxu0 %v3004_v3  ;;  %2470 = vmatprep.subr.bf16.mxu1 %v3005_v40 }
  0x45   :  { %2476 = vmatpush1.bf16.msra.mxu0 %v3218_v17  ;;  %607 = vmatprep.mubr.f32.mxu0 %v3004_v3 }
  0x46   :  { %2478 = vmatprep.subr.bf16.mxu0 %v3221_v18 }
  0x47   :  { %2472 = vmatpush3.bf16.msra.mxu1 %v3455_v32 }
  0x48   :  { %2505 = vmatprep.subr.bf16.mxu1 %v3005_v40 }
  0x49   :  { %2480 = vmatpush1.bf16.msra.mxu0 %v3241_v25 }
  0x4a   :  { %2482 = vmatprep.subr.bf16.mxu0 %v3244_v26  ;;  %2071 = vmatmul.mubr.f32.vlgmr.msra.gmra.mrb[8].mxu1 %v3004_v3 }
  0x4b   :  { %2507 = vmatpush3.bf16.msra.mxu1 %v3287_v41  ;;  %2105 = vmatprep.mubr.msk.f32.mxu1 %vm3006_vm0, %v3004_v3 }
  0x4c   :  { %2508 = vmatprep.subr.bf16.mxu1 %v3005_v40 }
  0x4d   :  { %2484 = vmatpush1.bf16.msra.mxu0 %v3269_v34 }
  0x4e   :  { %2486 = vmatprep.subr.bf16.mxu0 %v3272_v35 }
  0x4f   :  { %2510 = vmatpush3.bf16.msra.mxu1 %v3318_v51 }
  0x50   :  { %2511 = vmatprep.subr.bf16.mxu1 %v3005_v40 }
  0x51   :  { %2488 = vmatpush1.bf16.msra.mxu0 %v3300_v45 }
  0x52   :  { %2490 = vmatprep.subr.bf16.mxu0 %v3303_v46 }
  0x53   :  { %2513 = vmatpush3.bf16.msra.mxu1 %v3350_v61 }
  0x54   :  { %2514 = vmatprep.subr.bf16.mxu1 %v3005_v40 }
  0x55   :  { %2492 = vmatpush1.bf16.msra.mxu0 %v3332_v55 }
  0x56   :  { %2494 = vmatprep.subr.bf16.mxu0 %v3335_v56 }
  0x57   :  { %2516 = vmatpush3.bf16.msra.mxu1 %v3385_v10 }
  0x58   :  { %2517 = vmatprep.subr.bf16.mxu1 %v3005_v40 }
  0x59   :  { %2496 = vmatpush1.bf16.msra.mxu0 %v3364_v1 }
  0x5a   :  { %2498 = vmatprep.subr.bf16.mxu0 %v3370_v4 }
  0x5b   :  { %2519 = vmatpush3.bf16.msra.mxu1 %v3411_v20 }
  0x5c   :  { %2520 = vmatprep.subr.bf16.mxu1 %v3005_v40 }
  0x5d   :  { %2500 = vmatpush1.bf16.msra.mxu0 %v3396_v13 }
  0x5e   :  { %2502 = vmatprep.subr.bf16.mxu0 %v3402_v15 }
  0x5f   :  { %2522 = vmatpush3.bf16.msra.mxu1 %v3428_v24 }
  0x60   :  { %2523 = vmatprep.subr.bf16.mxu1 %v3005_v40 }
  0x61   :  { %2504 = vmatpush1.bf16.msra.mxu0 %v3424_v23 }
  0x62   :  { %2530 = vmatprep.subr.bf16.mxu0 %v3198_v9 }
  0x63   :  { %2525 = vmatpush3.bf16.msra.mxu1 %v3441_v29 }
  0x64   :  { %2526 = vmatprep.subr.bf16.mxu1 %v3005_v40 }
  0x67   :  { %2528 = vmatpush3.bf16.msra.mxu1 %v3455_v32 }
  0x68   :  { %2561 = vmatprep.subr.bf16.mxu1 %v3005_v40 }
  0xfd   :  { %v2028_v42 = vpop.f32.mrb[0].mxu1 }
  0xfe   :  { %v3496_v43 = vadd.f32 %v2028_v42, %v100_v39  ;;  %v283_v44 = vpop.f32.mrb[1].mxu1 }
  0xff   :  { %v284_v36 = vadd.f32 %v283_v44, %v100_v39 }
 0x101   :  { %v2031_v47 = vpop.f32.mrb[2].mxu1 }
 0x102   :  { %v3498_v48 = vadd.f32 %v2031_v47, %v100_v39  ;;  %v293_v49 = vpop.f32.mrb[3].mxu1 }
 0x103   :  { %v3500_v50 = vadd.f32 %v293_v49, %v100_v39 }
 0x105   :  { %v2034_v52 = vpop.f32.mrb[4].mxu1 }
 0x106   :  { %v3502_v53 = vadd.f32 %v2034_v52, %v100_v39  ;;  %v303_v54 = vpop.f32.mrb[5].mxu1 }
 0x107   :  { %v3504_v57 = vadd.f32 %v303_v54, %v100_v39 }
 0x109   :  { %v2037_v58 = vpop.f32.mrb[6].mxu1 }
 0x10a   :  { %v3506_v59 = vadd.f32 %v2037_v58, %v100_v39  ;;  %v313_v60 = vpop.f32.mrb[7].mxu1 }
 0x10b   :  { %v3508_v62 = vadd.f32 %v313_v60, %v100_v39 }
 0x117   :  { %v444_v5 = vpop.f32.mrb[0].mxu0 }
 0x118   :  { %v2889_v7 = vadd.f32 %v444_v5, %v3510_v2  ;;  %v446_v8 = vpop.f32.mrb[1].mxu0 }
 0x119   :  { %v2890_v12 = vadd.f32 %v446_v8, %v3512_v6 }
 0x11a   :  { %v1800_v11 = vmul.f32 -1.442695, %v2889_v7 }
 0x11b   :  { %v1801_v14 = vmul.f32 -1.442695, %v2890_v12 }
 0x11c   :  { %2924 = vpow2.f32 %v1800_v11 }
 0x11d   :  { %v515_v16 = vpop.f32.mrb[8].mxu1  ;;  %2926 = vpow2.f32 %v1801_v14 }
 0x11e   :  { %v2072_v19 = vpop.f32.mrb[9].mxu1  ;;  %v533_v31 = vadd.f32 %v3519_v28, %v515_v16 }
 0x126   :  { %v2925_v21 = vpop.eup %2924 }
 0x127   :  { %v523_v22 = vadd.f32 1.0, %v2925_v21  ;;  %v2927_v27 = vpop.eup %2926 }
 0x128   :  { %v530_v30 = vadd.f32 1.0, %v2927_v27 }
 0x129   :  { %2928 = vrcp.f32 %v523_v22 }
 0x12a   :  { %2930 = vrcp.f32 %v530_v30 }
 0x133   :  { %v2929_v33 = vpop.eup %2928 }
 0x134   :  { %v534_v37 = vmul.f32 %v2929_v33, %v533_v31  ;;  %v2931_v42 = vpop.eup %2930 }
 0x135   :  { %v537_v47 = vsub.f32 1.0, %v2931_v42  ;;  %v539_v54 = vmul.f32 0.0, %v2931_v42 }
 0x136   :  { %v535_v38 = vadd.f32 %v534_v37, %v284_v36 }
 0x138   :  { %2932 = vtanh.f32 %v535_v38 }
 0x142   :  { %v2933_v49 = vpop.eup %2932 }
 0x143   :  { %v538_v52 = vmul.f32 %v2933_v49, %v537_v47 }
 0x145   :  { %v540_v58 = vadd.f32 %v539_v54, %v538_v52 }
 0x147   :  { %608 = vmatmul.mubr.f32.vlgmr.msra.gmra.mrb[2].mxu0 %v540_v58  ;;  %2106 = vmatmul.mubr.f32.vlgmr.msra.gmra.mrb[10].mxu1 %v540_v58 }
 0x148   :  { %2532 = vmatpush1.bf16.msra.mxu0 %v3218_v17  ;;  %2563 = vmatpush3.bf16.msra.mxu1 %v3287_v41 }
 0x149   :  { %2534 = vmatprep.subr.bf16.mxu0 %v3221_v18  ;;  %2564 = vmatprep.subr.bf16.mxu1 %v3005_v40 }
 0x14a   :  { %772 = vmatprep.mubr.f32.mxu0 %v3004_v3  ;;  %2140 = vmatprep.mubr.msk.f32.mxu1 %vm3006_vm0, %v3004_v3 }
 0x14c   :  { %2536 = vmatpush1.bf16.msra.mxu0 %v3241_v25  ;;  %2566 = vmatpush3.bf16.msra.mxu1 %v3318_v51 }
 0x14d   :  { %2538 = vmatprep.subr.bf16.mxu0 %v3244_v26  ;;  %2567 = vmatprep.subr.bf16.mxu1 %v3005_v40 }
 0x150   :  { %2540 = vmatpush1.bf16.msra.mxu0 %v3269_v34  ;;  %2569 = vmatpush3.bf16.msra.mxu1 %v3350_v61 }
 0x151   :  { %2542 = vmatprep.subr.bf16.mxu0 %v3272_v35  ;;  %2570 = vmatprep.subr.bf16.mxu1 %v3005_v40 }
 0x154   :  { %2544 = vmatpush1.bf16.msra.mxu0 %v3300_v45  ;;  %2572 = vmatpush3.bf16.msra.mxu1 %v3385_v10 }
 0x155   :  { %2546 = vmatprep.subr.bf16.mxu0 %v3303_v46  ;;  %2573 = vmatprep.subr.bf16.mxu1 %v3005_v40 }
 0x158   :  { %2548 = vmatpush1.bf16.msra.mxu0 %v3332_v55  ;;  %2575 = vmatpush3.bf16.msra.mxu1 %v3411_v20 }
 0x159   :  { %2550 = vmatprep.subr.bf16.mxu0 %v3335_v56  ;;  %2576 = vmatprep.subr.bf16.mxu1 %v3005_v40 }
 0x15c   :  { %2552 = vmatpush1.bf16.msra.mxu0 %v3364_v1  ;;  %2578 = vmatpush3.bf16.msra.mxu1 %v3428_v24 }
 0x15d   :  { %2554 = vmatprep.subr.bf16.mxu0 %v3370_v4  ;;  %2579 = vmatprep.subr.bf16.mxu1 %v3005_v40 }
 0x160   :  { %2556 = vmatpush1.bf16.msra.mxu0 %v3396_v13  ;;  %2581 = vmatpush3.bf16.msra.mxu1 %v3441_v29 }
 0x161   :  { %2558 = vmatprep.subr.bf16.mxu0 %v3402_v15  ;;  %2582 = vmatprep.subr.bf16.mxu1 %v3005_v40 }
 0x164   :  { %2560 = vmatpush1.bf16.msra.mxu0 %v3424_v23  ;;  %2584 = vmatpush3.bf16.msra.mxu1 %v3455_v32 }
 0x165   :  { %2586 = vmatprep.subr.bf16.mxu0 %v3198_v9  ;;  %2617 = vmatprep.subr.bf16.mxu1 %v3005_v40 }
 0x21a   :  { %v609_v39 = vpop.f32.mrb[2].mxu0  ;;  %v680_v44 = vpop.f32.mrb[10].mxu1 }
 0x21b   :  { %v2891_v60 = vadd.f32 %v609_v39, %v3510_v2  ;;  %v611_v63 = vpop.f32.mrb[3].mxu0  ;;  %v2107_v0 = vpop.f32.mrb[11].mxu1  ;;  %v698_v19 = vadd.f32 %v3519_v28, %v680_v44 }
 0x21c   :  { %v2892_v7 = vadd.f32 %v611_v63, %v3512_v6 }
 0x21d   :  { %v1802_v5 = vmul.f32 -1.442695, %v2891_v60 }
 0x21e   :  { %v1803_v8 = vmul.f32 -1.442695, %v2892_v7 }
 0x21f   :  { %2934 = vpow2.f32 %v1802_v5 }
 0x220   :  { %2936 = vpow2.f32 %v1803_v8 }
 0x229   :  { %v2935_v11 = vpop.eup %2934 }
 0x22a   :  { %v688_v12 = vadd.f32 1.0, %v2935_v11  ;;  %v2937_v14 = vpop.eup %2936 }
 0x22b   :  { %v695_v16 = vadd.f32 1.0, %v2937_v14 }
 0x22c   :  { %2938 = vrcp.f32 %v688_v12 }
 0x22d   :  { %2940 = vrcp.f32 %v695_v16 }
 0x236   :  { %v2939_v21 = vpop.eup %2938 }
 0x237   :  { %v699_v22 = vmul.f32 %v2939_v21, %v698_v19  ;;  %v2941_v30 = vpop.eup %2940 }
 0x238   :  { %v702_v31 = vsub.f32 1.0, %v2941_v30  ;;  %v704_v37 = vmul.f32 %v2941_v30, %v540_v58 }
 0x239   :  { %v700_v27 = vadd.f32 %v699_v22, %v3496_v43 }
 0x23b   :  { %2942 = vtanh.f32 %v700_v27 }
 0x245   :  { %v2943_v33 = vpop.eup %2942 }
 0x246   :  { %v703_v36 = vmul.f32 %v2943_v33, %v702_v31 }
 0x248   :  { %v705_v38 = vadd.f32 %v704_v37, %v703_v36 }
 0x24a   :  { %773 = vmatmul.mubr.f32.vlgmr.msra.gmra.mrb[4].mxu0 %v705_v38  ;;  %2141 = vmatmul.mubr.f32.vlgmr.msra.gmra.mrb[12].mxu1 %v705_v38 }
 0x24b   :  { %2588 = vmatpush1.bf16.msra.mxu0 %v3218_v17  ;;  %2619 = vmatpush3.bf16.msra.mxu1 %v3287_v41 }
 0x24c   :  { %2590 = vmatprep.subr.bf16.mxu0 %v3221_v18  ;;  %2620 = vmatprep.subr.bf16.mxu1 %v3005_v40 }
 0x24d   :  { %937 = vmatprep.mubr.f32.mxu0 %v3004_v3  ;;  %2175 = vmatprep.mubr.msk.f32.mxu1 %vm3006_vm0, %v3004_v3 }
 0x24f   :  { %2592 = vmatpush1.bf16.msra.mxu0 %v3241_v25  ;;  %2622 = vmatpush3.bf16.msra.mxu1 %v3318_v51 }
 0x250   :  { %2594 = vmatprep.subr.bf16.mxu0 %v3244_v26  ;;  %2623 = vmatprep.subr.bf16.mxu1 %v3005_v40 }
 0x253   :  { %2596 = vmatpush1.bf16.msra.mxu0 %v3269_v34  ;;  %2625 = vmatpush3.bf16.msra.mxu1 %v3350_v61 }
 0x254   :  { %2598 = vmatprep.subr.bf16.mxu0 %v3272_v35  ;;  %2626 = vmatprep.subr.bf16.mxu1 %v3005_v40 }
 0x257   :  { %2600 = vmatpush1.bf16.msra.mxu0 %v3300_v45  ;;  %2628 = vmatpush3.bf16.msra.mxu1 %v3385_v10 }
 0x258   :  { %2602 = vmatprep.subr.bf16.mxu0 %v3303_v46  ;;  %2629 = vmatprep.subr.bf16.mxu1 %v3005_v40 }
 0x25b   :  { %2604 = vmatpush1.bf16.msra.mxu0 %v3332_v55  ;;  %2631 = vmatpush3.bf16.msra.mxu1 %v3411_v20 }
 0x25c   :  { %2606 = vmatprep.subr.bf16.mxu0 %v3335_v56  ;;  %2632 = vmatprep.subr.bf16.mxu1 %v3005_v40 }
 0x25f   :  { %2608 = vmatpush1.bf16.msra.mxu0 %v3364_v1  ;;  %2634 = vmatpush3.bf16.msra.mxu1 %v3428_v24 }
 0x260   :  { %2610 = vmatprep.subr.bf16.mxu0 %v3370_v4  ;;  %2635 = vmatprep.subr.bf16.mxu1 %v3005_v40 }
 0x263   :  { %2612 = vmatpush1.bf16.msra.mxu0 %v3396_v13  ;;  %2637 = vmatpush3.bf16.msra.mxu1 %v3441_v29 }
 0x264   :  { %2614 = vmatprep.subr.bf16.mxu0 %v3402_v15  ;;  %2638 = vmatprep.subr.bf16.mxu1 %v3005_v40 }
 0x267   :  { %2616 = vmatpush1.bf16.msra.mxu0 %v3424_v23  ;;  %2640 = vmatpush3.bf16.msra.mxu1 %v3455_v32 }
 0x268   :  { %2642 = vmatprep.subr.bf16.mxu0 %v3198_v9  ;;  %2673 = vmatprep.subr.bf16.mxu1 %v3005_v40 }
 0x31d   :  { %v774_v43 = vpop.f32.mrb[4].mxu0  ;;  %v845_v42 = vpop.f32.mrb[12].mxu1 }
 0x31e   :  { %v2893_v47 = vadd.f32 %v774_v43, %v3510_v2  ;;  %v776_v49 = vpop.f32.mrb[5].mxu0  ;;  %v2142_v52 = vpop.f32.mrb[13].mxu1  ;;  %v863_v5 = vadd.f32 %v3519_v28, %v845_v42 }
 0x31f   :  { %v2894_v58 = vadd.f32 %v776_v49, %v3512_v6 }
 0x320   :  { %v1804_v54 = vmul.f32 -1.442695, %v2893_v47 }
 0x321   :  { %v1805_v39 = vmul.f32 -1.442695, %v2894_v58 }
 0x322   :  { %2944 = vpow2.f32 %v1804_v54 }
 0x323   :  { %2946 = vpow2.f32 %v1805_v39 }
 0x32c   :  { %v2945_v44 = vpop.eup %2944 }
 0x32d   :  { %v853_v60 = vadd.f32 1.0, %v2945_v44  ;;  %v2947_v63 = vpop.eup %2946 }
 0x32e   :  { %v860_v0 = vadd.f32 1.0, %v2947_v63 }
 0x32f   :  { %2948 = vrcp.f32 %v853_v60 }
 0x330   :  { %2950 = vrcp.f32 %v860_v0 }
 0x339   :  { %v2949_v7 = vpop.eup %2948 }
 0x33a   :  { %v864_v8 = vmul.f32 %v2949_v7, %v863_v5  ;;  %v2951_v12 = vpop.eup %2950 }
 0x33b   :  { %v867_v14 = vsub.f32 1.0, %v2951_v12  ;;  %v869_v21 = vmul.f32 %v2951_v12, %v705_v38 }
 0x33c   :  { %v865_v11 = vadd.f32 %v864_v8, %v3500_v50 }
 0x33e   :  { %2952 = vtanh.f32 %v865_v11 }
 0x348   :  { %v2953_v16 = vpop.eup %2952 }
 0x349   :  { %v868_v19 = vmul.f32 %v2953_v16, %v867_v14 }
 0x34b   :  { %v870_v22 = vadd.f32 %v869_v21, %v868_v19 }
 0x34d   :  { %938 = vmatmul.mubr.f32.vlgmr.msra.gmra.mrb[6].mxu0 %v870_v22  ;;  %2176 = vmatmul.mubr.f32.vlgmr.msra.gmra.mrb[14].mxu1 %v870_v22 }
 0x34e   :  { %2644 = vmatpush1.bf16.msra.mxu0 %v3218_v17  ;;  %2675 = vmatpush3.bf16.msra.mxu1 %v3287_v41 }
 0x34f   :  { %2646 = vmatprep.subr.bf16.mxu0 %v3221_v18  ;;  %2676 = vmatprep.subr.bf16.mxu1 %v3005_v40 }
 0x350   :  { %1102 = vmatprep.mubr.f32.mxu0 %v3004_v3  ;;  %2210 = vmatprep.mubr.msk.f32.mxu1 %vm3006_vm0, %v3004_v3 }
 0x352   :  { %2648 = vmatpush1.bf16.msra.mxu0 %v3241_v25  ;;  %2678 = vmatpush3.bf16.msra.mxu1 %v3318_v51 }
 0x353   :  { %2650 = vmatprep.subr.bf16.mxu0 %v3244_v26  ;;  %2679 = vmatprep.subr.bf16.mxu1 %v3005_v40 }
 0x356   :  { %2652 = vmatpush1.bf16.msra.mxu0 %v3269_v34  ;;  %2681 = vmatpush3.bf16.msra.mxu1 %v3350_v61 }
 0x357   :  { %2654 = vmatprep.subr.bf16.mxu0 %v3272_v35  ;;  %2682 = vmatprep.subr.bf16.mxu1 %v3005_v40 }
 0x35a   :  { %2656 = vmatpush1.bf16.msra.mxu0 %v3300_v45  ;;  %2684 = vmatpush3.bf16.msra.mxu1 %v3385_v10 }
 0x35b   :  { %2658 = vmatprep.subr.bf16.mxu0 %v3303_v46  ;;  %2685 = vmatprep.subr.bf16.mxu1 %v3005_v40 }
 0x35e   :  { %2660 = vmatpush1.bf16.msra.mxu0 %v3332_v55  ;;  %2687 = vmatpush3.bf16.msra.mxu1 %v3411_v20 }
 0x35f   :  { %2662 = vmatprep.subr.bf16.mxu0 %v3335_v56  ;;  %2688 = vmatprep.subr.bf16.mxu1 %v3005_v40 }
 0x362   :  { %2664 = vmatpush1.bf16.msra.mxu0 %v3364_v1  ;;  %2690 = vmatpush3.bf16.msra.mxu1 %v3428_v24 }
 0x363   :  { %2666 = vmatprep.subr.bf16.mxu0 %v3370_v4  ;;  %2691 = vmatprep.subr.bf16.mxu1 %v3005_v40 }
 0x366   :  { %2668 = vmatpush1.bf16.msra.mxu0 %v3396_v13  ;;  %2693 = vmatpush3.bf16.msra.mxu1 %v3441_v29 }
 0x367   :  { %2670 = vmatprep.subr.bf16.mxu0 %v3402_v15  ;;  %2694 = vmatprep.subr.bf16.mxu1 %v3005_v40 }
 0x36a   :  { %2672 = vmatpush1.bf16.msra.mxu0 %v3424_v23  ;;  %2696 = vmatpush3.bf16.msra.mxu1 %v3455_v32 }
 0x36b   :  { %2698 = vmatprep.subr.bf16.mxu0 %v3198_v9  ;;  %2729 = vmatprep.subr.bf16.mxu1 %v3005_v40 }
 0x420   :  { %v939_v50 = vpop.f32.mrb[6].mxu0  ;;  %v1010_v27 = vpop.f32.mrb[14].mxu1 }
 0x421   :  { %v2895_v30 = vadd.f32 %v939_v50, %v3510_v2  ;;  %v941_v31 = vpop.f32.mrb[7].mxu0  ;;  %v2177_v33 = vpop.f32.mrb[15].mxu1  ;;  %v1028_v52 = vadd.f32 %v3519_v28, %v1010_v27 }
 0x422   :  { %v2896_v37 = vadd.f32 %v941_v31, %v3512_v6 }
 0x423   :  { %v1806_v36 = vmul.f32 -1.442695, %v2895_v30 }
 0x424   :  { %v1807_v38 = vmul.f32 -1.442695, %v2896_v37 }
 0x425   :  { %2954 = vpow2.f32 %v1806_v36 }
 0x426   :  { %2956 = vpow2.f32 %v1807_v38 }
 0x42f   :  { %v2955_v43 = vpop.eup %2954 }
 0x430   :  { %v1018_v42 = vadd.f32 1.0, %v2955_v43  ;;  %v2957_v47 = vpop.eup %2956 }
 0x431   :  { %v1025_v49 = vadd.f32 1.0, %v2957_v47 }
 0x432   :  { %2958 = vrcp.f32 %v1018_v42 }
 0x433   :  { %2960 = vrcp.f32 %v1025_v49 }
 0x43c   :  { %v2959_v54 = vpop.eup %2958 }
 0x43d   :  { %v1029_v58 = vmul.f32 %v2959_v54, %v1028_v52  ;;  %v2961_v44 = vpop.eup %2960 }
 0x43e   :  { %v1032_v60 = vsub.f32 1.0, %v2961_v44  ;;  %v1034_v5 = vmul.f32 %v2961_v44, %v870_v22 }
 0x43f   :  { %v1030_v39 = vadd.f32 %v1029_v58, %v3498_v48 }
 0x441   :  { %2962 = vtanh.f32 %v1030_v39 }
 0x44b   :  { %v2963_v63 = vpop.eup %2962 }
 0x44c   :  { %v1033_v0 = vmul.f32 %v2963_v63, %v1032_v60 }
 0x44e   :  { %v1035_v7 = vadd.f32 %v1034_v5, %v1033_v0 }
 0x450   :  { %1103 = vmatmul.mubr.f32.vlgmr.msra.gmra.mrb[8].mxu0 %v1035_v7  ;;  %2211 = vmatmul.mubr.f32.vlgmr.msra.gmra.mrb[16].mxu1 %v1035_v7 }
 0x451   :  { %2700 = vmatpush1.bf16.msra.mxu0 %v3218_v17  ;;  %2731 = vmatpush3.bf16.msra.mxu1 %v3287_v41 }
 0x452   :  { %2702 = vmatprep.subr.bf16.mxu0 %v3221_v18  ;;  %2732 = vmatprep.subr.bf16.mxu1 %v3005_v40 }
 0x453   :  { %1267 = vmatprep.mubr.f32.mxu0 %v3004_v3  ;;  %2245 = vmatprep.mubr.msk.f32.mxu1 %vm3006_vm0, %v3004_v3 }
 0x455   :  { %2704 = vmatpush1.bf16.msra.mxu0 %v3241_v25  ;;  %2734 = vmatpush3.bf16.msra.mxu1 %v3318_v51 }
 0x456   :  { %2706 = vmatprep.subr.bf16.mxu0 %v3244_v26  ;;  %2735 = vmatprep.subr.bf16.mxu1 %v3005_v40 }
 0x459   :  { %2708 = vmatpush1.bf16.msra.mxu0 %v3269_v34  ;;  %2737 = vmatpush3.bf16.msra.mxu1 %v3350_v61 }
 0x45a   :  { %2710 = vmatprep.subr.bf16.mxu0 %v3272_v35  ;;  %2738 = vmatprep.subr.bf16.mxu1 %v3005_v40 }
 0x45d   :  { %2712 = vmatpush1.bf16.msra.mxu0 %v3300_v45  ;;  %2740 = vmatpush3.bf16.msra.mxu1 %v3385_v10 }
 0x45e   :  { %2714 = vmatprep.subr.bf16.mxu0 %v3303_v46  ;;  %2741 = vmatprep.subr.bf16.mxu1 %v3005_v40 }
 0x461   :  { %2716 = vmatpush1.bf16.msra.mxu0 %v3332_v55  ;;  %2743 = vmatpush3.bf16.msra.mxu1 %v3411_v20 }
 0x462   :  { %2718 = vmatprep.subr.bf16.mxu0 %v3335_v56  ;;  %2744 = vmatprep.subr.bf16.mxu1 %v3005_v40 }
 0x465   :  { %2720 = vmatpush1.bf16.msra.mxu0 %v3364_v1  ;;  %2746 = vmatpush3.bf16.msra.mxu1 %v3428_v24 }
 0x466   :  { %2722 = vmatprep.subr.bf16.mxu0 %v3370_v4  ;;  %2747 = vmatprep.subr.bf16.mxu1 %v3005_v40 }
 0x469   :  { %2724 = vmatpush1.bf16.msra.mxu0 %v3396_v13  ;;  %2749 = vmatpush3.bf16.msra.mxu1 %v3441_v29 }
 0x46a   :  { %2726 = vmatprep.subr.bf16.mxu0 %v3402_v15  ;;  %2750 = vmatprep.subr.bf16.mxu1 %v3005_v40 }
 0x46d   :  { %2728 = vmatpush1.bf16.msra.mxu0 %v3424_v23  ;;  %2752 = vmatpush3.bf16.msra.mxu1 %v3455_v32 }
 0x46e   :  { %2754 = vmatprep.subr.bf16.mxu0 %v3198_v9  ;;  %2785 = vmatprep.subr.bf16.mxu1 %v3005_v40 }
 0x523   :  { %v1104_v48 = vpop.f32.mrb[8].mxu0  ;;  %v1175_v8 = vpop.f32.mrb[16].mxu1 }
 0x524   :  { %v2897_v11 = vadd.f32 %v1104_v48, %v3510_v2  ;;  %v1106_v12 = vpop.f32.mrb[9].mxu0  ;;  %v2212_v14 = vpop.f32.mrb[17].mxu1  ;;  %v1193_v31 = vadd.f32 %v3519_v28, %v1175_v8 }
 0x525   :  { %v2898_v19 = vadd.f32 %v1106_v12, %v3512_v6 }
 0x526   :  { %v1808_v16 = vmul.f32 -1.442695, %v2897_v11 }
 0x527   :  { %v1809_v21 = vmul.f32 -1.442695, %v2898_v19 }
 0x528   :  { %2964 = vpow2.f32 %v1808_v16 }
 0x529   :  { %2966 = vpow2.f32 %v1809_v21 }
 0x532   :  { %v2965_v22 = vpop.eup %2964 }
 0x533   :  { %v1183_v50 = vadd.f32 1.0, %v2965_v22  ;;  %v2967_v27 = vpop.eup %2966 }
 0x534   :  { %v1190_v30 = vadd.f32 1.0, %v2967_v27 }
 0x535   :  { %2968 = vrcp.f32 %v1183_v50 }
 0x536   :  { %2970 = vrcp.f32 %v1190_v30  ;;  %v1703_v30 = vld [vmem:[%s3832_s5 + $0x10] sm:$0xff] }
 0x53f   :  { %v2969_v33 = vpop.eup %2968 }
 0x540   :  { %v1194_v36 = vmul.f32 %v2969_v33, %v1193_v31  ;;  %v2971_v38 = vpop.eup %2970  ;;  %v1705_v33 = vld [vmem:[%s3832_s5 + $0x20] sm:$0xff] }
 0x541   :  { %v1197_v43 = vsub.f32 1.0, %v2971_v38  ;;  %v1199_v49 = vmul.f32 %v2971_v38, %v1035_v7  ;;  %v1707_v38 = vld [vmem:[%s3832_s5 + $0x30] sm:$0xff] }
 0x542   :  { %v1195_v37 = vadd.f32 %v1194_v36, %v3504_v57  ;;  %v1706_v36 = vld [vmem:[%s3832_s5 + $0x28] sm:$0xff] }
 0x544   :  { %2972 = vtanh.f32 %v1195_v37  ;;  %v2872_v37 = vpack.c.bf16 %v1706_v36, %v1705_v33 }
 0x54e   :  { %v2973_v42 = vpop.eup %2972 }
 0x54f   :  { %v1198_v47 = vmul.f32 %v2973_v42, %v1197_v43  ;;  %v1708_v43 = vld [vmem:[%s3832_s5 + $0x38] sm:$0xff] }
 0x550   :  { %v2875_v42 = vpack.c.bf16 %v1708_v43, %v1707_v38 }
 0x551   :  { %v1200_v52 = vadd.f32 %v1199_v49, %v1198_v47  ;;  %v1709_v47 = vld [vmem:[%s3832_s5 + $0x40] sm:$0xff]  ;;  %v1710_v49 = vld [vmem:[%s3832_s5 + $0x48] sm:$0xff] }
 0x553   :  { %1268 = vmatmul.mubr.f32.vlgmr.msra.gmra.mrb[10].mxu0 %v1200_v52  ;;  %2246 = vmatmul.mubr.f32.vlgmr.msra.gmra.mrb[18].mxu1 %v1200_v52 }
 0x554   :  { %2756 = vmatpush1.bf16.msra.mxu0 %v3218_v17  ;;  %2787 = vmatpush3.bf16.msra.mxu1 %v3287_v41 }
 0x555   :  { %2758 = vmatprep.subr.bf16.mxu0 %v3221_v18  ;;  %2788 = vmatprep.subr.bf16.mxu1 %v3005_v40 }
 0x556   :  { %1432 = vmatprep.mubr.f32.mxu0 %v3004_v3  ;;  %2280 = vmatprep.mubr.msk.f32.mxu1 %vm3006_vm0, %v3004_v3 }
 0x558   :  { %2760 = vmatpush1.bf16.msra.mxu0 %v3241_v25  ;;  %2790 = vmatpush3.bf16.msra.mxu1 %v3318_v51 }
 0x559   :  { %2762 = vmatprep.subr.bf16.mxu0 %v3244_v26  ;;  %2791 = vmatprep.subr.bf16.mxu1 %v3005_v40 }
 0x55c   :  { %2764 = vmatpush1.bf16.msra.mxu0 %v3269_v34  ;;  %2793 = vmatpush3.bf16.msra.mxu1 %v3350_v61 }
 0x55d   :  { %2766 = vmatprep.subr.bf16.mxu0 %v3272_v35  ;;  %2794 = vmatprep.subr.bf16.mxu1 %v3005_v40 }
 0x560   :  { %2768 = vmatpush1.bf16.msra.mxu0 %v3300_v45  ;;  %2796 = vmatpush3.bf16.msra.mxu1 %v3385_v10 }
 0x561   :  { %2770 = vmatprep.subr.bf16.mxu0 %v3303_v46  ;;  %2797 = vmatprep.subr.bf16.mxu1 %v3005_v40 }
 0x564   :  { %2772 = vmatpush1.bf16.msra.mxu0 %v3332_v55  ;;  %2799 = vmatpush3.bf16.msra.mxu1 %v3411_v20 }
 0x565   :  { %2774 = vmatprep.subr.bf16.mxu0 %v3335_v56  ;;  %2800 = vmatprep.subr.bf16.mxu1 %v3005_v40 }
 0x568   :  { %2776 = vmatpush1.bf16.msra.mxu0 %v3364_v1  ;;  %2802 = vmatpush3.bf16.msra.mxu1 %v3428_v24 }
 0x569   :  { %2778 = vmatprep.subr.bf16.mxu0 %v3370_v4  ;;  %2803 = vmatprep.subr.bf16.mxu1 %v3005_v40 }
 0x56c   :  { %2780 = vmatpush1.bf16.msra.mxu0 %v3396_v13  ;;  %2805 = vmatpush3.bf16.msra.mxu1 %v3441_v29 }
 0x56d   :  { %2782 = vmatprep.subr.bf16.mxu0 %v3402_v15  ;;  %2806 = vmatprep.subr.bf16.mxu1 %v3005_v40 }
 0x570   :  { %2784 = vmatpush1.bf16.msra.mxu0 %v3424_v23  ;;  %2808 = vmatpush3.bf16.msra.mxu1 %v3455_v32 }
 0x571   :  { %2810 = vmatprep.subr.bf16.mxu0 %v3198_v9  ;;  %2841 = vmatprep.subr.bf16.mxu1 %v3005_v40 }
 0x626   :  { %v1269_v57 = vpop.f32.mrb[10].mxu0  ;;  %v1340_v54 = vpop.f32.mrb[18].mxu1 }
 0x627   :  { %v2899_v58 = vadd.f32 %v1269_v57, %v3510_v2  ;;  %v1271_v39 = vpop.f32.mrb[11].mxu0  ;;  %v2247_v44 = vpop.f32.mrb[19].mxu1  ;;  %v1358_v9 = vadd.f32 %v3519_v28, %v1340_v54  ;;  %v1711_v57 = vld [vmem:[%s3832_s5 + $0x50] sm:$0xff]  ;;  %v1712_v54 = vld [vmem:[%s3832_s5 + $0x58] sm:$0xff] }
 0x628   :  { %v2900_v63 = vadd.f32 %v1271_v39, %v3512_v6  ;;  %v1713_v39 = vld [vmem:[%s3832_s5 + $0x60] sm:$0xff]  ;;  %v1714_v44 = vld [vmem:[%s3832_s5 + $0x68] sm:$0xff] }
 0x629   :  { %v1810_v60 = vmul.f32 -1.442695, %v2899_v58  ;;  %v2881_v58 = vpack.c.bf16 %v1712_v54, %v1711_v57 }
 0x62a   :  { %v1811_v0 = vmul.f32 -1.442695, %v2900_v63  ;;  %v1715_v63 = vld [vmem:[%s3832_s5 + $0x70] sm:$0xff] }
 0x62b   :  { %2974 = vpow2.f32 %v1810_v60  ;;  %v2884_v60 = vpack.c.bf16 %v1714_v44, %v1713_v39 }
 0x62c   :  { %2976 = vpow2.f32 %v1811_v0  ;;  %v1716_v0 = vld [vmem:[%s3832_s5 + $0x78] sm:$0xff] }
 0x635   :  { %v2975_v5 = vpop.eup %2974 }
 0x636   :  { %v1348_v7 = vadd.f32 1.0, %v2975_v5  ;;  %v2977_v48 = vpop.eup %2976  ;;  %v2887_v5 = vpack.c.bf16 %v1716_v0, %v1715_v63 }
 0x637   :  { %v1355_v8 = vadd.f32 1.0, %v2977_v48 }
 0x638   :  { %2978 = vrcp.f32 %v1348_v7 }
 0x639   :  { %2980 = vrcp.f32 %v1355_v8 }
 0x642   :  { %v2979_v11 = vpop.eup %2978 }
 0x643   :  { %v1359_v12 = vmul.f32 %v2979_v11, %v1358_v9  ;;  %v2981_v16 = vpop.eup %2980 }
 0x644   :  { %v1362_v19 = vsub.f32 1.0, %v2981_v16  ;;  %v1364_v50 = vmul.f32 %v2981_v16, %v1200_v52  ;;  %v2878_v52 = vpack.c.bf16 %v1710_v49, %v1709_v47 }
 0x645   :  { %v1360_v14 = vadd.f32 %v1359_v12, %v3502_v53  ;;  %v1702_v53 = vld [vmem:[%s3832_s5 + $0x8] sm:$0xff] }
 0x647   :  { %2982 = vtanh.f32 %v1360_v14 }
 0x651   :  { %v2983_v21 = vpop.eup %2982 }
 0x652   :  { %v1363_v22 = vmul.f32 %v2983_v21, %v1362_v19 }
 0x654   :  { %v1365_v27 = vadd.f32 %v1364_v50, %v1363_v22 }
 0x656   :  { %1433 = vmatmul.mubr.f32.vlgmr.msra.gmra.mrb[12].mxu0 %v1365_v27  ;;  %2281 = vmatmul.mubr.f32.vlgmr.msra.gmra.mrb[20].mxu1 %v1365_v27 }
 0x657   :  { %2812 = vmatpush1.bf16.msra.mxu0 %v3218_v17  ;;  %2843 = vmatpush3.bf16.msra.mxu1 %v3287_v41 }
 0x658   :  { %2814 = vmatprep.subr.bf16.mxu0 %v3221_v18  ;;  %2844 = vmatprep.subr.bf16.mxu1 %v3005_v40 }
 0x659   :  { %1597 = vmatprep.mubr.f32.mxu0 %v3004_v3  ;;  %2315 = vmatprep.mubr.msk.f32.mxu1 %vm3006_vm0, %v3004_v3 }
 0x65b   :  { %2816 = vmatpush1.bf16.msra.mxu0 %v3241_v25  ;;  %2846 = vmatpush3.bf16.msra.mxu1 %v3318_v51 }
 0x65c   :  { %2818 = vmatprep.subr.bf16.mxu0 %v3244_v26  ;;  %2847 = vmatprep.subr.bf16.mxu1 %v3005_v40 }
 0x65f   :  { %2820 = vmatpush1.bf16.msra.mxu0 %v3269_v34  ;;  %2849 = vmatpush3.bf16.msra.mxu1 %v3350_v61 }
 0x660   :  { %2822 = vmatprep.subr.bf16.mxu0 %v3272_v35  ;;  %2850 = vmatprep.subr.bf16.mxu1 %v3005_v40 }
 0x663   :  { %2824 = vmatpush1.bf16.msra.mxu0 %v3300_v45  ;;  %2852 = vmatpush3.bf16.msra.mxu1 %v3385_v10 }
 0x664   :  { %2826 = vmatprep.subr.bf16.mxu0 %v3303_v46  ;;  %2853 = vmatprep.subr.bf16.mxu1 %v3005_v40 }
 0x667   :  { %2828 = vmatpush1.bf16.msra.mxu0 %v3332_v55  ;;  %2855 = vmatpush3.bf16.msra.mxu1 %v3411_v20 }
 0x668   :  { %2830 = vmatprep.subr.bf16.mxu0 %v3335_v56  ;;  %2856 = vmatprep.subr.bf16.mxu1 %v3005_v40 }
 0x66b   :  { %2832 = vmatpush1.bf16.msra.mxu0 %v3364_v1  ;;  %2858 = vmatpush3.bf16.msra.mxu1 %v3428_v24 }
 0x66c   :  { %2834 = vmatprep.subr.bf16.mxu0 %v3370_v4  ;;  %2859 = vmatprep.subr.bf16.mxu1 %v3005_v40 }
 0x66f   :  { %2836 = vmatpush1.bf16.msra.mxu0 %v3396_v13  ;;  %2861 = vmatpush3.bf16.msra.mxu1 %v3441_v29 }
 0x670   :  { %2838 = vmatprep.subr.bf16.mxu0 %v3402_v15  ;;  %2862 = vmatprep.subr.bf16.mxu1 %v3005_v40 }
 0x673   :  { %2840 = vmatpush1.bf16.msra.mxu0 %v3424_v23  ;;  %2864 = vmatpush3.bf16.msra.mxu1 %v3455_v32  ;;  %v1701_v32 = vld [vmem:[%s3832_s5] sm:$0xff] }
 0x674   :  { %2865 = vmatprep.subr.bf16.mxu0 %v3005_v40 }
 0x729   :  { %v1434_v17 = vpop.f32.mrb[12].mxu0  ;;  %v1505_v18 = vpop.f32.mrb[20].mxu1 }
 0x72a   :  { %v2901_v25 = vadd.f32 %v1434_v17, %v3510_v2  ;;  %v1436_v26 = vpop.f32.mrb[13].mxu0  ;;  %v2282_v34 = vpop.f32.mrb[21].mxu1  ;;  %v1523_v61 = vadd.f32 %v3519_v28, %v1505_v18 }
 0x72b   :  { %v2902_v41 = vadd.f32 %v1436_v26, %v3512_v6 }
 0x72c   :  { %v1812_v35 = vmul.f32 -1.442695, %v2901_v25 }
 0x72d   :  { %v1813_v45 = vmul.f32 -1.442695, %v2902_v41  ;;  %v1816_v41 = vld [vmem:[%s3833_s6] ss:$0 sm:$0xff] }
 0x72e   :  { %2984 = vpow2.f32 %v1812_v35 }
 0x72f   :  { %2986 = vpow2.f32 %v1813_v45 }
 0x738   :  { %v2985_v46 = vpop.eup %2984 }
 0x739   :  { %v1513_v51 = vadd.f32 1.0, %v2985_v46  ;;  %v2987_v55 = vpop.eup %2986 }
 0x73a   :  { %v1520_v56 = vadd.f32 1.0, %v2987_v55 }
 0x73b   :  { %2988 = vrcp.f32 %v1513_v51 }
 0x73c   :  { %2990 = vrcp.f32 %v1520_v56 }
 0x745   :  { %v2989_v1 = vpop.eup %2988 }
 0x746   :  { %v1524_v4 = vmul.f32 %v2989_v1, %v1523_v61  ;;  %v2991_v13 = vpop.eup %2990 }
 0x747   :  { %v1527_v15 = vsub.f32 1.0, %v2991_v13  ;;  %v1529_v24 = vmul.f32 %v2991_v13, %v1365_v27 }
 0x748   :  { %v1525_v10 = vadd.f32 %v1524_v4, %v3508_v62  ;;  %v2866_v62 = vpack.c.bf16 %v1702_v53, %v1701_v32 }
 0x74a   :  { %2992 = vtanh.f32 %v1525_v10 }
 0x754   :  { %v2993_v20 = vpop.eup %2992 }
 0x755   :  { %v1528_v23 = vmul.f32 %v2993_v20, %v1527_v15 }
 0x757   :  { %v3755_v29 = vadd.f32 %v1529_v24, %v1528_v23 }
 0x759   :  { %1598 = vmatmul.mubr.f32.vlgmr.msra.gmra.mrb[14].mxu0 %v3755_v29  ;;  %2316 = vmatmul.mubr.f32.vlgmr.msra.gmra.mrb[22].mxu1 %v3755_v29 }
 0x75a   :  { %2350 = vmatprep.mubr.msk.f32.mxu0 %vm3006_vm0, %v3004_v3  ;;  %2867 = vmatpush3.bf16.msra.mxu0 %v2866_v62  ;;  %v1704_v3 = vld [vmem:[%s3832_s5 + $0x18] sm:$0xff] }
 0x75b   :  { %2868 = vmatprep.subr.bf16.mxu0 %v3005_v40  ;;  %v2869_v31 = vpack.c.bf16 %v1704_v3, %v1703_v30 }
 0x75e   :  { %2870 = vmatpush3.bf16.msra.mxu0 %v2869_v31 }
 0x75f   :  { %2871 = vmatprep.subr.bf16.mxu0 %v3005_v40 }
 0x762   :  { %2873 = vmatpush3.bf16.msra.mxu0 %v2872_v37 }
 0x763   :  { %2874 = vmatprep.subr.bf16.mxu0 %v3005_v40 }
 0x766   :  { %2876 = vmatpush3.bf16.msra.mxu0 %v2875_v42 }
 0x767   :  { %2877 = vmatprep.subr.bf16.mxu0 %v3005_v40 }
 0x76a   :  { %2879 = vmatpush3.bf16.msra.mxu0 %v2878_v52 }
 0x76b   :  { %2880 = vmatprep.subr.bf16.mxu0 %v3005_v40 }
 0x76e   :  { %2882 = vmatpush3.bf16.msra.mxu0 %v2881_v58 }
 0x76f   :  { %2883 = vmatprep.subr.bf16.mxu0 %v3005_v40 }
 0x772   :  { %2885 = vmatpush3.bf16.msra.mxu0 %v2884_v60 }
 0x773   :  { %2886 = vmatprep.subr.bf16.mxu0 %v3005_v40 }
 0x776   :  { %2888 = vmatpush3.bf16.msra.mxu0 %v2887_v5 }
 0x82c   :  { %v1599_v7 = vpop.f32.mrb[14].mxu0  ;;  %v1670_v48 = vpop.f32.mrb[22].mxu1 }
 0x82d   :  { %v2903_v8 = vadd.f32 %v1599_v7, %v3510_v2  ;;  %v1601_v9 = vpop.f32.mrb[15].mxu0  ;;  %v2317_v11 = vpop.f32.mrb[23].mxu1  ;;  %v1688_v40 = vadd.f32 %v3519_v28, %v1670_v48 }
 0x82e   :  { %v2904_v14 = vadd.f32 %v1601_v9, %v3512_v6 }
 0x82f   :  { %v1814_v12 = vmul.f32 -1.442695, %v2903_v8 }
 0x830   :  { %v1815_v16 = vmul.f32 -1.442695, %v2904_v14 }
 0x831   :  { %2994 = vpow2.f32 %v1814_v12 }
 0x832   :  { %2996 = vpow2.f32 %v1815_v16 }
 0x83b   :  { %v2995_v19 = vpop.eup %2994 }
 0x83c   :  { %v1678_v21 = vadd.f32 1.0, %v2995_v19  ;;  %v2997_v22 = vpop.eup %2996 }
 0x83d   :  { %v1685_v50 = vadd.f32 1.0, %v2997_v22 }
 0x83e   :  { %2998 = vrcp.f32 %v1678_v21 }
 0x83f   :  { %3000 = vrcp.f32 %v1685_v50 }
 0x848   :  { %v2999_v27 = vpop.eup %2998 }
 0x849   :  { %v1689_v17 = vmul.f32 %v2999_v27, %v1688_v40  ;;  %v3001_v18 = vpop.eup %3000 }
 0x84a   :  { %v1692_v25 = vsub.f32 1.0, %v3001_v18  ;;  %v1694_v34 = vmul.f32 %v3001_v18, %v3755_v29 }
 0x84b   :  { %v1690_v2 = vadd.f32 %v1689_v17, %v3506_v59 }
 0x84d   :  { %3002 = vtanh.f32 %v1690_v2 }
 0x857   :  { %v3003_v26 = vpop.eup %3002 }
 0x858   :  { %v1693_v6 = vmul.f32 %v3003_v26, %v1692_v25 }
 0x85a   :  { %v1695_v35 = vadd.f32 %v1694_v34, %v1693_v6 }
 0x85c   :  { %2351 = vmatmul.mubr.f32.vlgmr.msra.gmra.mrb[16].mxu0 %v1695_v35 }
 0x92f   :  { %v1790_v45 = vpop.f32.mrb[16].mxu0 }
 0x930   :  { %v1791_v28 = vadd.f32 %v1816_v41, %v1790_v45  ;;  %v2352_v46 = vpop.f32.mrb[17].mxu0 }
 0x932   :  { %1794 = vst [vmem:[%s3834_s7] sm:$0xff] %v1791_v28 }

// kernel: gru_model_forward.2
= control target key start
LH: loop header
LB: loop body
LE: loop exit
PB: predicated region body
PF: predicated region fallthrough
CT: control target
= control target key end

     0   :  { %10 = vsyncpa [#allocation4], 0  ;;  %s3465_s0 = inlined_call_operand.vmem [shape: f32[8,8,128], index: 0, kind: input, shape index: {}]   ;;  %s3466_s1 = inlined_call_operand.hbm [shape: f32[128,384], index: 1, kind: input, shape index: {}]   ;;  %s3467_s2 = inlined_call_operand.hbm [shape: f32[128,384], index: 2, kind: input, shape index: {}]   ;;  %s3468_s3 = inlined_call_operand.vmem [shape: f32[1,384], index: 3, kind: input, shape index: {}]   ;;  %s3469_s4 = inlined_call_operand.vmem [shape: f32[1,128], index: 4, kind: input, shape index: {}]   ;;  %s3470_s5 = inlined_call_operand.vmem [shape: f32[8,8,128], index: 5, kind: output, shape index: {}]  }
   0x1   :  { %11 = vsyncpa [#allocation6], 0  ;;  %s2927_s18 = smov [#allocation3]   ;;  %s2879_s22 = scalar_lea.hbm %s3466_s1, 6144 }
   0x2   :  { %s19_s19 = sshll.u32 %s2927_s18, 4  ;;  %p2880_p0 = scmp.ne.s32.totalorder %s3466_s1, %s2879_s22  ;;  %s20_s19 = int_to_ptr.vmem [resolvable:$true] %s19_s19 }
   0x3   :  { %p2883_p1 = scmp.lt.u32.totalorder %s2879_s22, %s3466_s1 }
   0x5   :  { %p2885_p2 = pnand %p2883_p1, %p2880_p0 }
   0x7   :  { %2888 = shalt.err (!%p2885_p2)
}
   0x8   :  { %s2889_s27 = scalar_lea.vmem %s20_s19, 6144  ;;  %p2894_p4 = scmp.lt.s32.totalorder %s20_s19, %s20_s19 }
   0x9   :  { %p2890_p3 = scmp.ne.s32.totalorder %s20_s19, %s2889_s27  ;;  %p2895_p5 = scmp.lt.s32.totalorder %s2889_s27, %s2889_s27 }
   0xb   :  { %p2896_p6 = por %p2895_p5, %p2894_p4 }
   0xd   :  { %p2897_p7 = pnand %p2896_p6, %p2890_p3 }
   0xf   :  { %2900 = shalt.err (!%p2897_p7)
}
  0x10   :  { %s2928_s28 = smov 384   ;;  %s2929_s29 = smov 24  }
  0x11   :  { %25 = dma.hbm_to_vmem [thread:$0]  %s3466_s1, 6144, %s20_s19, [#allocation4], %s2928_s28, %s2928_s28, %s2929_s29  }
  0x12   :  { %s2930_s7 = smov [#allocation5]   ;;  %s2901_s11 = scalar_lea.hbm %s3467_s2, 6144 }
  0x13   :  { %s31_s8 = sshll.u32 %s2930_s7, 4  ;;  %p2902_p8 = scmp.ne.s32.totalorder %s3467_s2, %s2901_s11  ;;  %s32_s8 = int_to_ptr.vmem [resolvable:$true] %s31_s8 }
  0x14   :  { %p2905_p9 = scmp.lt.u32.totalorder %s2901_s11, %s3467_s2 }
  0x16   :  { %p2907_p10 = pnand %p2905_p9, %p2902_p8 }
  0x18   :  { %2910 = shalt.err (!%p2907_p10)
}
  0x19   :  { %s2911_s16 = scalar_lea.vmem %s32_s8, 6144  ;;  %p2916_p12 = scmp.lt.s32.totalorder %s32_s8, %s32_s8 }
  0x1a   :  { %p2912_p11 = scmp.ne.s32.totalorder %s32_s8, %s2911_s16  ;;  %p2917_p13 = scmp.lt.s32.totalorder %s2911_s16, %s2911_s16 }
  0x1c   :  { %p2918_p0 = por %p2917_p13, %p2916_p12 }
  0x1e   :  { %p2919_p1 = pnand %p2918_p0, %p2912_p11 }
  0x20   :  { %2922 = shalt.err (!%p2919_p1)
}
  0x21   :  { %37 = dma.hbm_to_vmem [thread:$0]  %s3467_s2, 6144, %s32_s8, [#allocation6], %s2928_s28, %s2928_s28, %s2929_s29  }
  0x22   :  { %2923 = dma.done.wait [#allocation4], 6144  }
  0x23   :  { %2924 = vsyncadd [#allocation4], 4294961152 }
  0x24   :  { %2925 = dma.done.wait [#allocation6], 6144  }
  0x25   :  { %2926 = vsyncadd [#allocation6], 4294961152  ;;  %v2931_v0 = vmov 0.0   ;;  %v62_v1 = vld [vmem:[#allocation3 + $0x8] sm:$0xff]  ;;  %v65_v2 = vld [vmem:[#allocation3 + $0x20] sm:$0xff]  ;;  %vm2933_vm0 = vmmov 0  }
  0x26   :  { %190 = vmatprep.mubr.f32.mxu0 %v2931_v0  ;;  %v61_v3 = vld [vmem:[#allocation3] sm:$0xff]  ;;  %v2248_v4 = vpack.c.bf16 %v65_v2, %v62_v1  ;;  %v64_v5 = vld [vmem:[#allocation3 + $0x18] sm:$0xff]  ;;  %v71_v7 = vld [vmem:[#allocation3 + $0x50] sm:$0xff] }
  0x27   :  { %v68_v6 = vld [vmem:[#allocation3 + $0x38] sm:$0xff]  ;;  %v2250_v8 = vpack.c.bf16 %v64_v5, %v61_v3  ;;  %v67_v10 = vld [vmem:[#allocation3 + $0x30] sm:$0xff]  ;;  %v70_v11 = vld [vmem:[#allocation3 + $0x48] sm:$0xff] }
  0x28   :  { %v2252_v9 = vpack.c.bf16 %v71_v7, %v68_v6  ;;  %v74_v12 = vld [vmem:[#allocation3 + $0x68] sm:$0xff]  ;;  %2249 = vmatprep.subr.bf16.mxu0 %v2248_v4  ;;  %v77_v13 = vld [vmem:[#allocation3 + $0x80] sm:$0xff]  ;;  %v2254_v14 = vpack.c.bf16 %v70_v11, %v67_v10  ;;  %v76_v17 = vld [vmem:[#allocation3 + $0x78] sm:$0xff] }
  0x29   :  { %2251 = vmatpush1.bf16.msra.mxu0 %v2250_v8  ;;  %v2256_v15 = vpack.c.bf16 %v77_v13, %v74_v12  ;;  %v73_v16 = vld [vmem:[#allocation3 + $0x60] sm:$0xff]  ;;  %v80_v18 = vld [vmem:[#allocation3 + $0x98] sm:$0xff]  ;;  %v83_v19 = vld [vmem:[#allocation3 + $0xb0] sm:$0xff] }
  0x2a   :  { %2253 = vmatprep.subr.bf16.mxu0 %v2252_v9  ;;  %v2258_v20 = vpack.c.bf16 %v76_v17, %v73_v16  ;;  %v79_v21 = vld [vmem:[#allocation3 + $0x90] sm:$0xff]  ;;  %v2260_v22 = vpack.c.bf16 %v83_v19, %v80_v18  ;;  %v82_v23 = vld [vmem:[#allocation3 + $0xa8] sm:$0xff]  ;;  %v89_v27 = vld [vmem:[#allocation3 + $0xe0] sm:$0xff] }
  0x2b   :  { %v63_v24 = vld [vmem:[#allocation3 + $0x10] sm:$0xff]  ;;  %v66_v25 = vld [vmem:[#allocation3 + $0x28] sm:$0xff]  ;;  %v69_v29 = vld [vmem:[#allocation3 + $0x40] sm:$0xff]  ;;  %v2262_v31 = vpack.c.bf16 %v82_v23, %v79_v21 }
  0x2c   :  { %v86_v26 = vld [vmem:[#allocation3 + $0xc8] sm:$0xff]  ;;  %v2280_v28 = vpack.c.bf16 %v66_v25, %v63_v24  ;;  %v72_v30 = vld [vmem:[#allocation3 + $0x58] sm:$0xff]  ;;  %v85_v32 = vld [vmem:[#allocation3 + $0xc0] sm:$0xff] }
  0x2d   :  { %2255 = vmatpush1.bf16.msra.mxu0 %v2254_v14  ;;  %v2284_v33 = vpack.c.bf16 %v72_v30, %v69_v29  ;;  %v2264_v34 = vpack.c.bf16 %v89_v27, %v86_v26  ;;  %v88_v35 = vld [vmem:[#allocation3 + $0xd8] sm:$0xff]  ;;  %v2992_v36 = vld [vmem:[%s3465_s0] sm:$0xff]  ;;  %v75_v37 = vld [vmem:[#allocation3 + $0x70] sm:$0xff] }
  0x2e   :  { %2257 = vmatprep.subr.bf16.mxu0 %v2256_v15  ;;  %2281 = vmatprep.subr.bf16.mxu1 %v2280_v28  ;;  %v92_v38 = vld [vmem:[#allocation3 + $0xf8] sm:$0xff]  ;;  %v95_v39 = vld [vmem:[#allocation3 + $0x110] sm:$0xff]  ;;  %v78_v40 = vld [vmem:[#allocation3 + $0x88] sm:$0xff]  ;;  %v2266_v42 = vpack.c.bf16 %v88_v35, %v85_v32 }
  0x2f   :  { %2283 = vmatpush3.bf16.msra.mxu1 %v2280_v28  ;;  %1956 = vmatprep.mubr.f32.mxu1 %v2992_v36  ;;  %v2288_v41 = vpack.c.bf16 %v78_v40, %v75_v37  ;;  %v81_v43 = vld [vmem:[#allocation3 + $0xa0] sm:$0xff]  ;;  %v84_v44 = vld [vmem:[#allocation3 + $0xb8] sm:$0xff]  ;;  %v2268_v45 = vpack.c.bf16 %v95_v39, %v92_v38  ;;  %v91_v46 = vld [vmem:[#allocation3 + $0xf0] sm:$0xff]  ;;  %v2932_v40 = vmov 0.0|0.0  }
  0x30   :  { %2285 = vmatprep.subr.bf16.mxu1 %v2284_v33  ;;  %v94_v47 = vld [vmem:[#allocation3 + $0x108] sm:$0xff]  ;;  %v101_v49 = vld [vmem:[#allocation3 + $0x140] sm:$0xff]  ;;  %v2292_v50 = vpack.c.bf16 %v84_v44, %v81_v43  ;;  %v87_v51 = vld [vmem:[#allocation3 + $0xd0] sm:$0xff] }
  0x31   :  { %2259 = vmatpush1.bf16.msra.mxu0 %v2258_v20  ;;  %v98_v48 = vld [vmem:[#allocation3 + $0x128] sm:$0xff]  ;;  %v2270_v53 = vpack.c.bf16 %v94_v47, %v91_v46  ;;  %v97_v55 = vld [vmem:[#allocation3 + $0x120] sm:$0xff]  ;;  %v100_v56 = vld [vmem:[#allocation3 + $0x138] sm:$0xff] }
  0x32   :  { %2261 = vmatprep.subr.bf16.mxu0 %v2260_v22  ;;  %v90_v52 = vld [vmem:[#allocation3 + $0xe8] sm:$0xff]  ;;  %v2272_v54 = vpack.c.bf16 %v101_v49, %v98_v48  ;;  %v104_v57 = vld [vmem:[#allocation3 + $0x158] sm:$0xff]  ;;  %v107_v58 = vld [vmem:[#allocation3 + $0x170] sm:$0xff]  ;;  %v2274_v62 = vpack.c.bf16 %v100_v56, %v97_v55 }
  0x33   :  { %2287 = vmatpush3.bf16.msra.mxu1 %v2284_v33  ;;  %v2296_v59 = vpack.c.bf16 %v90_v52, %v87_v51  ;;  %v93_v60 = vld [vmem:[#allocation3 + $0x100] sm:$0xff]  ;;  %v96_v61 = vld [vmem:[#allocation3 + $0x118] sm:$0xff]  ;;  %v2276_v63 = vpack.c.bf16 %v107_v58, %v104_v57  ;;  %v103_v1 = vld [vmem:[#allocation3 + $0x150] sm:$0xff] }
  0x34   :  { %2289 = vmatprep.subr.bf16.mxu1 %v2288_v41  ;;  %v106_v2 = vld [vmem:[#allocation3 + $0x168] sm:$0xff]  ;;  %v348_v4 = vld [vmem:[#allocation5 + $0x20] sm:$0xff]  ;;  %v2300_v5 = vpack.c.bf16 %v96_v61, %v93_v60  ;;  %v99_v6 = vld [vmem:[#allocation3 + $0x130] sm:$0xff] }
  0x35   :  { %2263 = vmatpush1.bf16.msra.mxu0 %v2262_v31  ;;  %v345_v3 = vld [vmem:[#allocation5 + $0x8] sm:$0xff]  ;;  %v2278_v8 = vpack.c.bf16 %v106_v2, %v103_v1  ;;  %v344_v10 = vld [vmem:[#allocation5] sm:$0xff]  ;;  %v347_v11 = vld [vmem:[#allocation5 + $0x18] sm:$0xff] }
  0x36   :  { %2265 = vmatprep.subr.bf16.mxu0 %v2264_v34  ;;  %v102_v7 = vld [vmem:[#allocation3 + $0x148] sm:$0xff]  ;;  %v2995_v9 = vpack.c.bf16 %v348_v4, %v345_v3  ;;  %v351_v12 = vld [vmem:[#allocation5 + $0x38] sm:$0xff]  ;;  %v354_v13 = vld [vmem:[#allocation5 + $0x50] sm:$0xff]  ;;  %v2997_v17 = vpack.c.bf16 %v347_v11, %v344_v10 }
  0x37   :  { %2291 = vmatpush3.bf16.msra.mxu1 %v2288_v41  ;;  %v2304_v14 = vpack.c.bf16 %v102_v7, %v99_v6  ;;  %v105_v15 = vld [vmem:[#allocation3 + $0x160] sm:$0xff]  ;;  %v108_v16 = vld [vmem:[#allocation3 + $0x178] sm:$0xff]  ;;  %v3000_v18 = vpack.c.bf16 %v354_v13, %v351_v12  ;;  %v350_v19 = vld [vmem:[#allocation5 + $0x30] sm:$0xff] }
  0x38   :  { %2293 = vmatprep.subr.bf16.mxu1 %v2292_v50  ;;  %v353_v20 = vld [vmem:[#allocation5 + $0x48] sm:$0xff]  ;;  %v360_v22 = vld [vmem:[#allocation5 + $0x80] sm:$0xff]  ;;  %v2308_v23 = vpack.c.bf16 %v108_v16, %v105_v15  ;;  %v359_v28 = vld [vmem:[#allocation5 + $0x78] sm:$0xff] }
  0x39   :  { %2267 = vmatpush1.bf16.msra.mxu0 %v2266_v42  ;;  %v357_v21 = vld [vmem:[#allocation5 + $0x68] sm:$0xff]  ;;  %v3008_v25 = vpack.c.bf16 %v353_v20, %v350_v19  ;;  %v356_v27 = vld [vmem:[#allocation5 + $0x60] sm:$0xff]  ;;  %v363_v29 = vld [vmem:[#allocation5 + $0x98] sm:$0xff] }
  0x3a   :  { %2269 = vmatprep.subr.bf16.mxu0 %v2268_v45  ;;  %v54_v24 = vld [vmem:[%s3465_s0 + $0x8] sm:$0xff]  ;;  %v3011_v26 = vpack.c.bf16 %v360_v22, %v357_v21  ;;  %v366_v30 = vld [vmem:[#allocation5 + $0xb0] sm:$0xff]  ;;  %v3018_v34 = vpack.c.bf16 %v359_v28, %v356_v27  ;;  %v372_v39 = vld [vmem:[#allocation5 + $0xe0] sm:$0xff] }
  0x3b   :  { %2295 = vmatpush3.bf16.msra.mxu1 %v2292_v50  ;;  %v346_v31 = vld [vmem:[#allocation5 + $0x10] sm:$0xff]  ;;  %v349_v32 = vld [vmem:[#allocation5 + $0x28] sm:$0xff]  ;;  %v3021_v35 = vpack.c.bf16 %v366_v30, %v363_v29  ;;  %v352_v42 = vld [vmem:[#allocation5 + $0x40] sm:$0xff] }
  0x3c   :  { %2297 = vmatprep.subr.bf16.mxu1 %v2296_v59  ;;  %v55_v33 = vld [vmem:[%s3465_s0 + $0x10] sm:$0xff]  ;;  %v365_v37 = vld [vmem:[#allocation5 + $0xa8] sm:$0xff]  ;;  %v3024_v41 = vpack.c.bf16 %v349_v32, %v346_v31  ;;  %v355_v43 = vld [vmem:[#allocation5 + $0x58] sm:$0xff] }
  0x3d   :  { %2271 = vmatpush1.bf16.msra.mxu0 %v2270_v53  ;;  %v369_v38 = vld [vmem:[#allocation5 + $0xc8] sm:$0xff]  ;;  %v56_v44 = vld [vmem:[%s3465_s0 + $0x18] sm:$0xff]  ;;  %v368_v47 = vld [vmem:[#allocation5 + $0xc0] sm:$0xff]  ;;  %v3037_v51 = vpack.c.bf16 %v355_v43, %v352_v42 }
  0x3e   :  { %2273 = vmatprep.subr.bf16.mxu0 %v2272_v54  ;;  %v3034_v46 = vpack.c.bf16 %v372_v39, %v369_v38  ;;  %v371_v48 = vld [vmem:[#allocation5 + $0xd8] sm:$0xff]  ;;  %v378_v50 = vld [vmem:[#allocation5 + $0x110] sm:$0xff]  ;;  %v361_v53 = vld [vmem:[#allocation5 + $0x88] sm:$0xff] }
  0x3f   :  { %2299 = vmatpush3.bf16.msra.mxu1 %v2296_v59  ;;  %v375_v49 = vld [vmem:[#allocation5 + $0xf8] sm:$0xff]  ;;  %v358_v52 = vld [vmem:[#allocation5 + $0x70] sm:$0xff]  ;;  %v57_v54 = vld [vmem:[%s3465_s0 + $0x20] sm:$0xff]  ;;  %v3045_v55 = vpack.c.bf16 %v371_v48, %v368_v47 }
  0x40   :  { %2301 = vmatprep.subr.bf16.mxu1 %v2300_v5  ;;  %v3048_v56 = vpack.c.bf16 %v378_v50, %v375_v49  ;;  %v374_v57 = vld [vmem:[#allocation5 + $0xf0] sm:$0xff]  ;;  %v377_v58 = vld [vmem:[#allocation5 + $0x108] sm:$0xff]  ;;  %v384_v60 = vld [vmem:[#allocation5 + $0x140] sm:$0xff]  ;;  %v3051_v61 = vpack.c.bf16 %v361_v53, %v358_v52 }
  0x41   :  { %2275 = vmatpush1.bf16.msra.mxu0 %v2274_v62  ;;  %v381_v59 = vld [vmem:[#allocation5 + $0x128] sm:$0xff]  ;;  %v364_v62 = vld [vmem:[#allocation5 + $0xa0] sm:$0xff]  ;;  %v3059_v2 = vpack.c.bf16 %v377_v58, %v374_v57  ;;  %v59_v3 = vld [vmem:[%s3465_s0 + $0x30] sm:$0xff] }
  0x42   :  { %2277 = vmatprep.subr.bf16.mxu0 %v2276_v63  ;;  %v367_v63 = vld [vmem:[#allocation5 + $0xb8] sm:$0xff]  ;;  %v58_v1 = vld [vmem:[%s3465_s0 + $0x28] sm:$0xff]  ;;  %v3065_v4 = vpack.c.bf16 %v384_v60, %v381_v59  ;;  %v370_v11 = vld [vmem:[#allocation5 + $0xd0] sm:$0xff] }
  0x43   :  { %2303 = vmatpush3.bf16.msra.mxu1 %v2300_v5  ;;  %v380_v5 = vld [vmem:[#allocation5 + $0x120] sm:$0xff]  ;;  %v383_v6 = vld [vmem:[#allocation5 + $0x138] sm:$0xff]  ;;  %v3068_v10 = vpack.c.bf16 %v367_v63, %v364_v62  ;;  %v373_v12 = vld [vmem:[#allocation5 + $0xe8] sm:$0xff] }
  0x44   :  { %2305 = vmatprep.subr.bf16.mxu1 %v2304_v14  ;;  %v387_v7 = vld [vmem:[#allocation5 + $0x158] sm:$0xff]  ;;  %v3073_v13 = vpack.c.bf16 %v383_v6, %v380_v5  ;;  %v386_v16 = vld [vmem:[#allocation5 + $0x150] sm:$0xff]  ;;  %v389_v19 = vld [vmem:[#allocation5 + $0x168] sm:$0xff]  ;;  %v3082_v20 = vpack.c.bf16 %v373_v12, %v370_v11 }
  0x45   :  { %2279 = vmatpush1.bf16.msra.mxu0 %v2278_v8  ;;  %v390_v8 = vld [vmem:[#allocation5 + $0x170] sm:$0xff]  ;;  %v376_v21 = vld [vmem:[#allocation5 + $0x100] sm:$0xff]  ;;  %v379_v22 = vld [vmem:[#allocation5 + $0x118] sm:$0xff] }
  0x46   :  { %2313 = vmatprep.subr.bf16.mxu0 %v2995_v9  ;;  %v3079_v15 = vpack.c.bf16 %v390_v8, %v387_v7  ;;  %v382_v27 = vld [vmem:[#allocation5 + $0x130] sm:$0xff]  ;;  %v385_v28 = vld [vmem:[#allocation5 + $0x148] sm:$0xff]  ;;  %v388_v30 = vld [vmem:[#allocation5 + $0x160] sm:$0xff] }
  0x47   :  { %2307 = vmatpush3.bf16.msra.mxu1 %v2304_v14  ;;  %v60_v14 = vld [vmem:[%s3465_s0 + $0x38] sm:$0xff]  ;;  %v3100_v29 = vpack.c.bf16 %v385_v28, %v382_v27  ;;  %v109_v38 = vld [vmem:[%s3468_s3] sm:$0x7] }
  0x48   :  { %191 = vmatmul.mubr.f32.vlgmr.msra.gmra.mrb[0].mxu0 %v2992_v36  ;;  %2309 = vmatprep.subr.bf16.mxu1 %v2308_v23  ;;  %v362_v36 = vld [vmem:[#allocation5 + $0x90] sm:$0xff]  ;;  %v391_v31 = vld [vmem:[#allocation5 + $0x178] sm:$0xff]  ;;  %v3172_v28 = vld [vmem:[%s3469_s4] ss:$0 sm:$0xff] }
  0x49   :  { %2315 = vmatpush1.bf16.msra.mxu0 %v2997_v17  ;;  %196 = vmatprep.mubr.f32.mxu0 %v2931_v0  ;;  %v3031_v45 = vpack.c.bf16 %v365_v37, %v362_v36  ;;  %v3108_v32 = vpack.c.bf16 %v391_v31, %v388_v30 }
  0x4a   :  { %2317 = vmatprep.subr.bf16.mxu0 %v3000_v18 }
  0x4b   :  { %2311 = vmatpush3.bf16.msra.mxu1 %v2308_v23  ;;  %v3089_v23 = vpack.c.bf16 %v389_v19, %v386_v16 }
  0x4c   :  { %197 = vmatmul.mubr.f32.gmra.mrb[2].mxu0 %v54_v24  ;;  %2344 = vmatprep.subr.bf16.mxu1 %v2932_v40 }
  0x4d   :  { %2319 = vmatpush1.bf16.msra.mxu0 %v3008_v25  ;;  %202 = vmatprep.mubr.f32.mxu0 %v2931_v0 }
  0x4e   :  { %2321 = vmatprep.subr.bf16.mxu0 %v3011_v26  ;;  %1957 = vmatmul.mubr.f32.vlgmr.msra.gmra.mrb[0].mxu1 %v54_v24  ;;  %v3093_v24 = vpack.c.bf16 %v379_v22, %v376_v21 }
  0x4f   :  { %2346 = vmatpush3.bf16.msra.mxu1 %v3024_v41  ;;  %1959 = vmatprep.mubr.f32.mxu1 %v55_v33 }
  0x50   :  { %203 = vmatmul.mubr.f32.gmra.mrb[4].mxu0 %v55_v33  ;;  %2347 = vmatprep.subr.bf16.mxu1 %v2932_v40  ;;  %v111_v33 = vlaneseq }
  0x51   :  { %2323 = vmatpush1.bf16.msra.mxu0 %v3018_v34  ;;  %208 = vmatprep.mubr.f32.mxu0 %v2931_v0 }
  0x52   :  { %2325 = vmatprep.subr.bf16.mxu0 %v3021_v35  ;;  %1960 = vmatmul.mubr.f32.gmra.mrb[2].mxu1 %v56_v44  ;;  %v112_v36 = vshrl.u32 %v111_v33, 7 }
  0x53   :  { %2349 = vmatpush3.bf16.msra.mxu1 %v3037_v51  ;;  %1962 = vmatprep.mubr.f32.mxu1 %v57_v54 }
  0x54   :  { %209 = vmatmul.mubr.f32.gmra.mrb[6].mxu0 %v56_v44  ;;  %2350 = vmatprep.subr.bf16.mxu1 %v2932_v40  ;;  %v121_v37 = vsub.s32 2, %v112_v36  ;;  %v113_v63 = vsub.s32 0, %v112_v36 }
  0x55   :  { %2327 = vmatpush1.bf16.msra.mxu0 %v3031_v45  ;;  %214 = vmatprep.mubr.f32.mxu0 %v2931_v0 }
  0x56   :  { %2329 = vmatprep.subr.bf16.mxu0 %v3034_v46  ;;  %1963 = vmatmul.mubr.f32.gmra.mrb[4].mxu1 %v58_v1  ;;  %v122_v39 = vrot.slane %v109_v38, %v121_v37 }
  0x57   :  { %2352 = vmatpush3.bf16.msra.mxu1 %v3051_v61  ;;  %1965 = vmatprep.mubr.f32.mxu1 %v59_v3 }
  0x58   :  { %215 = vmatmul.mubr.f32.gmra.mrb[8].mxu0 %v57_v54  ;;  %2353 = vmatprep.subr.bf16.mxu1 %v2932_v40 }
  0x59   :  { %2331 = vmatpush1.bf16.msra.mxu0 %v3045_v55  ;;  %220 = vmatprep.mubr.f32.mxu0 %v2931_v0 }
  0x5a   :  { %2333 = vmatprep.subr.bf16.mxu0 %v3048_v56  ;;  %1966 = vmatmul.mubr.f32.gmra.mrb[6].mxu1 %v60_v14 }
  0x5b   :  { %2355 = vmatpush3.bf16.msra.mxu1 %v3068_v10  ;;  %2000 = vmatprep.mubr.msk.f32.mxu1 %vm2933_vm0, %v2931_v0 }
  0x5c   :  { %221 = vmatmul.mubr.f32.gmra.mrb[10].mxu0 %v58_v1  ;;  %2356 = vmatprep.subr.bf16.mxu1 %v2932_v40  ;;  %v117_v1 = vsub.s32 1, %v112_v36 }
  0x5d   :  { %2335 = vmatpush1.bf16.msra.mxu0 %v3059_v2  ;;  %226 = vmatprep.mubr.f32.mxu0 %v2931_v0 }
  0x5e   :  { %2337 = vmatprep.subr.bf16.mxu0 %v3065_v4  ;;  %v3165_v6 = vrot.slane %v109_v38, %v117_v1 }
  0x5f   :  { %2358 = vmatpush3.bf16.msra.mxu1 %v3082_v20 }
  0x60   :  { %227 = vmatmul.mubr.f32.gmra.mrb[12].mxu0 %v59_v3  ;;  %2359 = vmatprep.subr.bf16.mxu1 %v2932_v40  ;;  %v3163_v3 = vrot.slane %v109_v38, %v113_v63 }
  0x61   :  { %2339 = vmatpush1.bf16.msra.mxu0 %v3073_v13  ;;  %232 = vmatprep.mubr.f32.mxu0 %v2931_v0 }
  0x62   :  { %2341 = vmatprep.subr.bf16.mxu0 %v3079_v15 }
  0x63   :  { %2361 = vmatpush3.bf16.msra.mxu1 %v3093_v24 }
  0x64   :  { %233 = vmatmul.mubr.f32.gmra.mrb[14].mxu0 %v60_v14  ;;  %2362 = vmatprep.subr.bf16.mxu1 %v2932_v40 }
  0x65   :  { %2343 = vmatpush1.bf16.msra.mxu0 %v3089_v23  ;;  %464 = vmatprep.mubr.f32.mxu0 %v2931_v0 }
  0x66   :  { %2369 = vmatprep.subr.bf16.mxu0 %v2995_v9 }
  0x67   :  { %2364 = vmatpush3.bf16.msra.mxu1 %v3100_v29 }
  0x68   :  { %465 = vmatmul.mubr.f32.vlgmr.msra.gmra.mrb[0].mxu0 %v2931_v0  ;;  %2365 = vmatprep.subr.bf16.mxu1 %v2932_v40 }
  0x69   :  { %2371 = vmatpush1.bf16.msra.mxu0 %v2997_v17  ;;  %630 = vmatprep.mubr.f32.mxu0 %v2931_v0 }
  0x6a   :  { %2373 = vmatprep.subr.bf16.mxu0 %v3000_v18 }
  0x6b   :  { %2367 = vmatpush3.bf16.msra.mxu1 %v3108_v32 }
  0x6c   :  { %2400 = vmatprep.subr.bf16.mxu1 %v2932_v40 }
  0x6d   :  { %2375 = vmatpush1.bf16.msra.mxu0 %v3008_v25 }
  0x6e   :  { %2377 = vmatprep.subr.bf16.mxu0 %v3011_v26  ;;  %2001 = vmatmul.mubr.f32.vlgmr.msra.gmra.mrb[8].mxu1 %v2931_v0 }
  0x6f   :  { %2402 = vmatpush3.bf16.msra.mxu1 %v3024_v41  ;;  %2035 = vmatprep.mubr.msk.f32.mxu1 %vm2933_vm0, %v2931_v0 }
  0x70   :  { %2403 = vmatprep.subr.bf16.mxu1 %v2932_v40 }
  0x71   :  { %2379 = vmatpush1.bf16.msra.mxu0 %v3018_v34 }
  0x72   :  { %2381 = vmatprep.subr.bf16.mxu0 %v3021_v35 }
  0x73   :  { %2405 = vmatpush3.bf16.msra.mxu1 %v3037_v51 }
  0x74   :  { %2406 = vmatprep.subr.bf16.mxu1 %v2932_v40 }
  0x75   :  { %2383 = vmatpush1.bf16.msra.mxu0 %v3031_v45 }
  0x76   :  { %2385 = vmatprep.subr.bf16.mxu0 %v3034_v46 }
  0x77   :  { %2408 = vmatpush3.bf16.msra.mxu1 %v3051_v61 }
  0x78   :  { %2409 = vmatprep.subr.bf16.mxu1 %v2932_v40 }
  0x79   :  { %2387 = vmatpush1.bf16.msra.mxu0 %v3045_v55 }
  0x7a   :  { %2389 = vmatprep.subr.bf16.mxu0 %v3048_v56 }
  0x7b   :  { %2411 = vmatpush3.bf16.msra.mxu1 %v3068_v10 }
  0x7c   :  { %2412 = vmatprep.subr.bf16.mxu1 %v2932_v40 }
  0x7d   :  { %2391 = vmatpush1.bf16.msra.mxu0 %v3059_v2 }
  0x7e   :  { %2393 = vmatprep.subr.bf16.mxu0 %v3065_v4 }
  0x7f   :  { %2414 = vmatpush3.bf16.msra.mxu1 %v3082_v20 }
  0x80   :  { %2415 = vmatprep.subr.bf16.mxu1 %v2932_v40 }
  0x81   :  { %2395 = vmatpush1.bf16.msra.mxu0 %v3073_v13 }
  0x82   :  { %2397 = vmatprep.subr.bf16.mxu0 %v3079_v15 }
  0x83   :  { %2417 = vmatpush3.bf16.msra.mxu1 %v3093_v24 }
  0x84   :  { %2418 = vmatprep.subr.bf16.mxu1 %v2932_v40 }
  0x85   :  { %2399 = vmatpush1.bf16.msra.mxu0 %v3089_v23 }
  0x86   :  { %2425 = vmatprep.subr.bf16.mxu0 %v2995_v9 }
  0x87   :  { %2420 = vmatpush3.bf16.msra.mxu1 %v3100_v29 }
  0x88   :  { %2421 = vmatprep.subr.bf16.mxu1 %v2932_v40 }
  0x8b   :  { %2423 = vmatpush3.bf16.msra.mxu1 %v3108_v32 }
  0x8c   :  { %2456 = vmatprep.subr.bf16.mxu1 %v2932_v40 }
 0x121   :  { %v1958_v42 = vpop.f32.mrb[0].mxu1 }
 0x122   :  { %v3149_v43 = vadd.f32 %v1958_v42, %v122_v39  ;;  %v305_v44 = vpop.f32.mrb[1].mxu1 }
 0x123   :  { %v306_v36 = vadd.f32 %v305_v44, %v122_v39 }
 0x125   :  { %v1961_v47 = vpop.f32.mrb[2].mxu1 }
 0x126   :  { %v3151_v48 = vadd.f32 %v1961_v47, %v122_v39  ;;  %v315_v49 = vpop.f32.mrb[3].mxu1 }
 0x127   :  { %v3153_v50 = vadd.f32 %v315_v49, %v122_v39 }
 0x129   :  { %v1964_v52 = vpop.f32.mrb[4].mxu1 }
 0x12a   :  { %v3155_v53 = vadd.f32 %v1964_v52, %v122_v39  ;;  %v325_v54 = vpop.f32.mrb[5].mxu1 }
 0x12b   :  { %v3157_v57 = vadd.f32 %v325_v54, %v122_v39 }
 0x12d   :  { %v1967_v58 = vpop.f32.mrb[6].mxu1 }
 0x12e   :  { %v3159_v59 = vadd.f32 %v1967_v58, %v122_v39  ;;  %v335_v60 = vpop.f32.mrb[7].mxu1 }
 0x12f   :  { %v3161_v62 = vadd.f32 %v335_v60, %v122_v39 }
 0x13b   :  { %v466_v5 = vpop.f32.mrb[0].mxu0 }
 0x13c   :  { %v2760_v7 = vadd.f32 %v466_v5, %v3163_v3  ;;  %v468_v8 = vpop.f32.mrb[1].mxu0 }
 0x13d   :  { %v2761_v12 = vadd.f32 %v468_v8, %v3165_v6 }
 0x13e   :  { %v1741_v11 = vmul.f32 -1.442695, %v2760_v7 }
 0x13f   :  { %v1742_v14 = vmul.f32 -1.442695, %v2761_v12 }
 0x140   :  { %2799 = vpow2.f32 %v1741_v11 }
 0x141   :  { %v537_v16 = vpop.f32.mrb[8].mxu1  ;;  %2801 = vpow2.f32 %v1742_v14 }
 0x142   :  { %v2002_v19 = vpop.f32.mrb[9].mxu1  ;;  %v555_v31 = vadd.f32 %v3172_v28, %v537_v16 }
 0x14a   :  { %v2800_v21 = vpop.eup %2799 }
 0x14b   :  { %v545_v22 = vadd.f32 1.0, %v2800_v21  ;;  %v2802_v27 = vpop.eup %2801 }
 0x14c   :  { %v552_v30 = vadd.f32 1.0, %v2802_v27 }
 0x14d   :  { %2803 = vrcp.f32 %v545_v22 }
 0x14e   :  { %2805 = vrcp.f32 %v552_v30 }
 0x157   :  { %v2804_v33 = vpop.eup %2803 }
 0x158   :  { %v556_v37 = vmul.f32 %v2804_v33, %v555_v31  ;;  %v2806_v42 = vpop.eup %2805 }
 0x159   :  { %v559_v47 = vsub.f32 1.0, %v2806_v42  ;;  %v561_v54 = vmul.f32 0.0, %v2806_v42 }
 0x15a   :  { %v557_v38 = vadd.f32 %v556_v37, %v306_v36 }
 0x15c   :  { %2807 = vtanh.f32 %v557_v38 }
 0x166   :  { %v2808_v49 = vpop.eup %2807 }
 0x167   :  { %v560_v52 = vmul.f32 %v2808_v49, %v559_v47 }
 0x169   :  { %v3175_v58 = vadd.f32 %v561_v54, %v560_v52 }
 0x16b   :  { %564 = vst [vmem:[%s3470_s5] sm:$0xff] %v3175_v58  ;;  %631 = vmatmul.mubr.f32.vlgmr.msra.gmra.mrb[2].mxu0 %v3175_v58  ;;  %2036 = vmatmul.mubr.f32.vlgmr.msra.gmra.mrb[10].mxu1 %v3175_v58 }
 0x16c   :  { %2427 = vmatpush1.bf16.msra.mxu0 %v2997_v17  ;;  %2458 = vmatpush3.bf16.msra.mxu1 %v3024_v41 }
 0x16d   :  { %2429 = vmatprep.subr.bf16.mxu0 %v3000_v18  ;;  %2459 = vmatprep.subr.bf16.mxu1 %v2932_v40 }
 0x16e   :  { %797 = vmatprep.mubr.f32.mxu0 %v2931_v0  ;;  %2070 = vmatprep.mubr.msk.f32.mxu1 %vm2933_vm0, %v2931_v0 }
 0x170   :  { %2431 = vmatpush1.bf16.msra.mxu0 %v3008_v25  ;;  %2461 = vmatpush3.bf16.msra.mxu1 %v3037_v51 }
 0x171   :  { %2433 = vmatprep.subr.bf16.mxu0 %v3011_v26  ;;  %2462 = vmatprep.subr.bf16.mxu1 %v2932_v40 }
 0x174   :  { %2435 = vmatpush1.bf16.msra.mxu0 %v3018_v34  ;;  %2464 = vmatpush3.bf16.msra.mxu1 %v3051_v61 }
 0x175   :  { %2437 = vmatprep.subr.bf16.mxu0 %v3021_v35  ;;  %2465 = vmatprep.subr.bf16.mxu1 %v2932_v40 }
 0x178   :  { %2439 = vmatpush1.bf16.msra.mxu0 %v3031_v45  ;;  %2467 = vmatpush3.bf16.msra.mxu1 %v3068_v10 }
 0x179   :  { %2441 = vmatprep.subr.bf16.mxu0 %v3034_v46  ;;  %2468 = vmatprep.subr.bf16.mxu1 %v2932_v40 }
 0x17c   :  { %2443 = vmatpush1.bf16.msra.mxu0 %v3045_v55  ;;  %2470 = vmatpush3.bf16.msra.mxu1 %v3082_v20 }
 0x17d   :  { %2445 = vmatprep.subr.bf16.mxu0 %v3048_v56  ;;  %2471 = vmatprep.subr.bf16.mxu1 %v2932_v40 }
 0x180   :  { %2447 = vmatpush1.bf16.msra.mxu0 %v3059_v2  ;;  %2473 = vmatpush3.bf16.msra.mxu1 %v3093_v24 }
 0x181   :  { %2449 = vmatprep.subr.bf16.mxu0 %v3065_v4  ;;  %2474 = vmatprep.subr.bf16.mxu1 %v2932_v40 }
 0x184   :  { %2451 = vmatpush1.bf16.msra.mxu0 %v3073_v13  ;;  %2476 = vmatpush3.bf16.msra.mxu1 %v3100_v29 }
 0x185   :  { %2453 = vmatprep.subr.bf16.mxu0 %v3079_v15  ;;  %2477 = vmatprep.subr.bf16.mxu1 %v2932_v40 }
 0x188   :  { %2455 = vmatpush1.bf16.msra.mxu0 %v3089_v23  ;;  %2479 = vmatpush3.bf16.msra.mxu1 %v3108_v32 }
 0x189   :  { %2481 = vmatprep.subr.bf16.mxu0 %v2995_v9  ;;  %2512 = vmatprep.subr.bf16.mxu1 %v2932_v40 }
 0x23e   :  { %v632_v39 = vpop.f32.mrb[2].mxu0  ;;  %v703_v44 = vpop.f32.mrb[10].mxu1 }
 0x23f   :  { %v2762_v60 = vadd.f32 %v632_v39, %v3163_v3  ;;  %v634_v63 = vpop.f32.mrb[3].mxu0  ;;  %v2037_v1 = vpop.f32.mrb[11].mxu1  ;;  %v721_v19 = vadd.f32 %v3172_v28, %v703_v44 }
 0x240   :  { %v2763_v7 = vadd.f32 %v634_v63, %v3165_v6 }
 0x241   :  { %v1743_v5 = vmul.f32 -1.442695, %v2762_v60 }
 0x242   :  { %v1744_v8 = vmul.f32 -1.442695, %v2763_v7 }
 0x243   :  { %2809 = vpow2.f32 %v1743_v5 }
 0x244   :  { %2811 = vpow2.f32 %v1744_v8 }
 0x24d   :  { %v2810_v11 = vpop.eup %2809 }
 0x24e   :  { %v711_v12 = vadd.f32 1.0, %v2810_v11  ;;  %v2812_v14 = vpop.eup %2811 }
 0x24f   :  { %v718_v16 = vadd.f32 1.0, %v2812_v14 }
 0x250   :  { %2813 = vrcp.f32 %v711_v12 }
 0x251   :  { %2815 = vrcp.f32 %v718_v16 }
 0x25a   :  { %v2814_v21 = vpop.eup %2813 }
 0x25b   :  { %v722_v22 = vmul.f32 %v2814_v21, %v721_v19  ;;  %v2816_v30 = vpop.eup %2815 }
 0x25c   :  { %v725_v31 = vsub.f32 1.0, %v2816_v30  ;;  %v727_v37 = vmul.f32 %v2816_v30, %v3175_v58 }
 0x25d   :  { %v723_v27 = vadd.f32 %v722_v22, %v3149_v43 }
 0x25f   :  { %2817 = vtanh.f32 %v723_v27 }
 0x269   :  { %v2818_v33 = vpop.eup %2817 }
 0x26a   :  { %v726_v36 = vmul.f32 %v2818_v33, %v725_v31 }
 0x26c   :  { %v3223_v38 = vadd.f32 %v727_v37, %v726_v36 }
 0x26e   :  { %1745 = vst [vmem:[%s3470_s5 + $0x8] sm:$0xff] %v3223_v38  ;;  %798 = vmatmul.mubr.f32.vlgmr.msra.gmra.mrb[4].mxu0 %v3223_v38  ;;  %2071 = vmatmul.mubr.f32.vlgmr.msra.gmra.mrb[12].mxu1 %v3223_v38 }
 0x26f   :  { %2483 = vmatpush1.bf16.msra.mxu0 %v2997_v17  ;;  %2514 = vmatpush3.bf16.msra.mxu1 %v3024_v41 }
 0x270   :  { %2485 = vmatprep.subr.bf16.mxu0 %v3000_v18  ;;  %2515 = vmatprep.subr.bf16.mxu1 %v2932_v40 }
 0x271   :  { %964 = vmatprep.mubr.f32.mxu0 %v2931_v0  ;;  %2105 = vmatprep.mubr.msk.f32.mxu1 %vm2933_vm0, %v2931_v0 }
 0x273   :  { %2487 = vmatpush1.bf16.msra.mxu0 %v3008_v25  ;;  %2517 = vmatpush3.bf16.msra.mxu1 %v3037_v51 }
 0x274   :  { %2489 = vmatprep.subr.bf16.mxu0 %v3011_v26  ;;  %2518 = vmatprep.subr.bf16.mxu1 %v2932_v40 }
 0x277   :  { %2491 = vmatpush1.bf16.msra.mxu0 %v3018_v34  ;;  %2520 = vmatpush3.bf16.msra.mxu1 %v3051_v61 }
 0x278   :  { %2493 = vmatprep.subr.bf16.mxu0 %v3021_v35  ;;  %2521 = vmatprep.subr.bf16.mxu1 %v2932_v40 }
 0x27b   :  { %2495 = vmatpush1.bf16.msra.mxu0 %v3031_v45  ;;  %2523 = vmatpush3.bf16.msra.mxu1 %v3068_v10 }
 0x27c   :  { %2497 = vmatprep.subr.bf16.mxu0 %v3034_v46  ;;  %2524 = vmatprep.subr.bf16.mxu1 %v2932_v40 }
 0x27f   :  { %2499 = vmatpush1.bf16.msra.mxu0 %v3045_v55  ;;  %2526 = vmatpush3.bf16.msra.mxu1 %v3082_v20 }
 0x280   :  { %2501 = vmatprep.subr.bf16.mxu0 %v3048_v56  ;;  %2527 = vmatprep.subr.bf16.mxu1 %v2932_v40 }
 0x283   :  { %2503 = vmatpush1.bf16.msra.mxu0 %v3059_v2  ;;  %2529 = vmatpush3.bf16.msra.mxu1 %v3093_v24 }
 0x284   :  { %2505 = vmatprep.subr.bf16.mxu0 %v3065_v4  ;;  %2530 = vmatprep.subr.bf16.mxu1 %v2932_v40 }
 0x287   :  { %2507 = vmatpush1.bf16.msra.mxu0 %v3073_v13  ;;  %2532 = vmatpush3.bf16.msra.mxu1 %v3100_v29 }
 0x288   :  { %2509 = vmatprep.subr.bf16.mxu0 %v3079_v15  ;;  %2533 = vmatprep.subr.bf16.mxu1 %v2932_v40 }
 0x28b   :  { %2511 = vmatpush1.bf16.msra.mxu0 %v3089_v23  ;;  %2535 = vmatpush3.bf16.msra.mxu1 %v3108_v32 }
 0x28c   :  { %2537 = vmatprep.subr.bf16.mxu0 %v2995_v9  ;;  %2568 = vmatprep.subr.bf16.mxu1 %v2932_v40 }
 0x341   :  { %v799_v43 = vpop.f32.mrb[4].mxu0  ;;  %v870_v42 = vpop.f32.mrb[12].mxu1 }
 0x342   :  { %v2764_v47 = vadd.f32 %v799_v43, %v3163_v3  ;;  %v801_v49 = vpop.f32.mrb[5].mxu0  ;;  %v2072_v52 = vpop.f32.mrb[13].mxu1  ;;  %v888_v5 = vadd.f32 %v3172_v28, %v870_v42 }
 0x343   :  { %v2765_v58 = vadd.f32 %v801_v49, %v3165_v6 }
 0x344   :  { %v1746_v54 = vmul.f32 -1.442695, %v2764_v47 }
 0x345   :  { %v1747_v39 = vmul.f32 -1.442695, %v2765_v58 }
 0x346   :  { %2819 = vpow2.f32 %v1746_v54 }
 0x347   :  { %2821 = vpow2.f32 %v1747_v39 }
 0x350   :  { %v2820_v44 = vpop.eup %2819 }
 0x351   :  { %v878_v60 = vadd.f32 1.0, %v2820_v44  ;;  %v2822_v63 = vpop.eup %2821 }
 0x352   :  { %v885_v1 = vadd.f32 1.0, %v2822_v63 }
 0x353   :  { %2823 = vrcp.f32 %v878_v60 }
 0x354   :  { %2825 = vrcp.f32 %v885_v1 }
 0x35d   :  { %v2824_v7 = vpop.eup %2823 }
 0x35e   :  { %v889_v8 = vmul.f32 %v2824_v7, %v888_v5  ;;  %v2826_v12 = vpop.eup %2825 }
 0x35f   :  { %v892_v14 = vsub.f32 1.0, %v2826_v12  ;;  %v894_v21 = vmul.f32 %v2826_v12, %v3223_v38 }
 0x360   :  { %v890_v11 = vadd.f32 %v889_v8, %v3153_v50 }
 0x362   :  { %2827 = vtanh.f32 %v890_v11 }
 0x36c   :  { %v2828_v16 = vpop.eup %2827 }
 0x36d   :  { %v893_v19 = vmul.f32 %v2828_v16, %v892_v14 }
 0x36f   :  { %v3271_v22 = vadd.f32 %v894_v21, %v893_v19 }
 0x371   :  { %1748 = vst [vmem:[%s3470_s5 + $0x10] sm:$0xff] %v3271_v22  ;;  %965 = vmatmul.mubr.f32.vlgmr.msra.gmra.mrb[6].mxu0 %v3271_v22  ;;  %2106 = vmatmul.mubr.f32.vlgmr.msra.gmra.mrb[14].mxu1 %v3271_v22 }
 0x372   :  { %2539 = vmatpush1.bf16.msra.mxu0 %v2997_v17  ;;  %2570 = vmatpush3.bf16.msra.mxu1 %v3024_v41 }
 0x373   :  { %2541 = vmatprep.subr.bf16.mxu0 %v3000_v18  ;;  %2571 = vmatprep.subr.bf16.mxu1 %v2932_v40 }
 0x374   :  { %1131 = vmatprep.mubr.f32.mxu0 %v2931_v0  ;;  %2140 = vmatprep.mubr.msk.f32.mxu1 %vm2933_vm0, %v2931_v0 }
 0x376   :  { %2543 = vmatpush1.bf16.msra.mxu0 %v3008_v25  ;;  %2573 = vmatpush3.bf16.msra.mxu1 %v3037_v51 }
 0x377   :  { %2545 = vmatprep.subr.bf16.mxu0 %v3011_v26  ;;  %2574 = vmatprep.subr.bf16.mxu1 %v2932_v40 }
 0x37a   :  { %2547 = vmatpush1.bf16.msra.mxu0 %v3018_v34  ;;  %2576 = vmatpush3.bf16.msra.mxu1 %v3051_v61 }
 0x37b   :  { %2549 = vmatprep.subr.bf16.mxu0 %v3021_v35  ;;  %2577 = vmatprep.subr.bf16.mxu1 %v2932_v40 }
 0x37e   :  { %2551 = vmatpush1.bf16.msra.mxu0 %v3031_v45  ;;  %2579 = vmatpush3.bf16.msra.mxu1 %v3068_v10 }
 0x37f   :  { %2553 = vmatprep.subr.bf16.mxu0 %v3034_v46  ;;  %2580 = vmatprep.subr.bf16.mxu1 %v2932_v40 }
 0x382   :  { %2555 = vmatpush1.bf16.msra.mxu0 %v3045_v55  ;;  %2582 = vmatpush3.bf16.msra.mxu1 %v3082_v20 }
 0x383   :  { %2557 = vmatprep.subr.bf16.mxu0 %v3048_v56  ;;  %2583 = vmatprep.subr.bf16.mxu1 %v2932_v40 }
 0x386   :  { %2559 = vmatpush1.bf16.msra.mxu0 %v3059_v2  ;;  %2585 = vmatpush3.bf16.msra.mxu1 %v3093_v24 }
 0x387   :  { %2561 = vmatprep.subr.bf16.mxu0 %v3065_v4  ;;  %2586 = vmatprep.subr.bf16.mxu1 %v2932_v40 }
 0x38a   :  { %2563 = vmatpush1.bf16.msra.mxu0 %v3073_v13  ;;  %2588 = vmatpush3.bf16.msra.mxu1 %v3100_v29 }
 0x38b   :  { %2565 = vmatprep.subr.bf16.mxu0 %v3079_v15  ;;  %2589 = vmatprep.subr.bf16.mxu1 %v2932_v40 }
 0x38e   :  { %2567 = vmatpush1.bf16.msra.mxu0 %v3089_v23  ;;  %2591 = vmatpush3.bf16.msra.mxu1 %v3108_v32 }
 0x38f   :  { %2593 = vmatprep.subr.bf16.mxu0 %v2995_v9  ;;  %2624 = vmatprep.subr.bf16.mxu1 %v2932_v40 }
 0x444   :  { %v966_v50 = vpop.f32.mrb[6].mxu0  ;;  %v1037_v27 = vpop.f32.mrb[14].mxu1 }
 0x445   :  { %v2766_v30 = vadd.f32 %v966_v50, %v3163_v3  ;;  %v968_v31 = vpop.f32.mrb[7].mxu0  ;;  %v2107_v33 = vpop.f32.mrb[15].mxu1  ;;  %v1055_v52 = vadd.f32 %v3172_v28, %v1037_v27 }
 0x446   :  { %v2767_v37 = vadd.f32 %v968_v31, %v3165_v6 }
 0x447   :  { %v1749_v36 = vmul.f32 -1.442695, %v2766_v30 }
 0x448   :  { %v1750_v38 = vmul.f32 -1.442695, %v2767_v37 }
 0x449   :  { %2829 = vpow2.f32 %v1749_v36 }
 0x44a   :  { %2831 = vpow2.f32 %v1750_v38 }
 0x453   :  { %v2830_v43 = vpop.eup %2829 }
 0x454   :  { %v1045_v42 = vadd.f32 1.0, %v2830_v43  ;;  %v2832_v47 = vpop.eup %2831 }
 0x455   :  { %v1052_v49 = vadd.f32 1.0, %v2832_v47 }
 0x456   :  { %2833 = vrcp.f32 %v1045_v42 }
 0x457   :  { %2835 = vrcp.f32 %v1052_v49 }
 0x460   :  { %v2834_v54 = vpop.eup %2833 }
 0x461   :  { %v1056_v58 = vmul.f32 %v2834_v54, %v1055_v52  ;;  %v2836_v44 = vpop.eup %2835 }
 0x462   :  { %v1059_v60 = vsub.f32 1.0, %v2836_v44  ;;  %v1061_v5 = vmul.f32 %v2836_v44, %v3271_v22 }
 0x463   :  { %v1057_v39 = vadd.f32 %v1056_v58, %v3151_v48 }
 0x465   :  { %2837 = vtanh.f32 %v1057_v39 }
 0x46f   :  { %v2838_v63 = vpop.eup %2837 }
 0x470   :  { %v1060_v1 = vmul.f32 %v2838_v63, %v1059_v60 }
 0x472   :  { %v3319_v7 = vadd.f32 %v1061_v5, %v1060_v1 }
 0x474   :  { %1751 = vst [vmem:[%s3470_s5 + $0x18] sm:$0xff] %v3319_v7  ;;  %1132 = vmatmul.mubr.f32.vlgmr.msra.gmra.mrb[8].mxu0 %v3319_v7  ;;  %2141 = vmatmul.mubr.f32.vlgmr.msra.gmra.mrb[16].mxu1 %v3319_v7 }
 0x475   :  { %2595 = vmatpush1.bf16.msra.mxu0 %v2997_v17  ;;  %2626 = vmatpush3.bf16.msra.mxu1 %v3024_v41 }
 0x476   :  { %2597 = vmatprep.subr.bf16.mxu0 %v3000_v18  ;;  %2627 = vmatprep.subr.bf16.mxu1 %v2932_v40 }
 0x477   :  { %1298 = vmatprep.mubr.f32.mxu0 %v2931_v0  ;;  %2175 = vmatprep.mubr.msk.f32.mxu1 %vm2933_vm0, %v2931_v0 }
 0x479   :  { %2599 = vmatpush1.bf16.msra.mxu0 %v3008_v25  ;;  %2629 = vmatpush3.bf16.msra.mxu1 %v3037_v51 }
 0x47a   :  { %2601 = vmatprep.subr.bf16.mxu0 %v3011_v26  ;;  %2630 = vmatprep.subr.bf16.mxu1 %v2932_v40 }
 0x47d   :  { %2603 = vmatpush1.bf16.msra.mxu0 %v3018_v34  ;;  %2632 = vmatpush3.bf16.msra.mxu1 %v3051_v61 }
 0x47e   :  { %2605 = vmatprep.subr.bf16.mxu0 %v3021_v35  ;;  %2633 = vmatprep.subr.bf16.mxu1 %v2932_v40 }
 0x481   :  { %2607 = vmatpush1.bf16.msra.mxu0 %v3031_v45  ;;  %2635 = vmatpush3.bf16.msra.mxu1 %v3068_v10 }
 0x482   :  { %2609 = vmatprep.subr.bf16.mxu0 %v3034_v46  ;;  %2636 = vmatprep.subr.bf16.mxu1 %v2932_v40 }
 0x485   :  { %2611 = vmatpush1.bf16.msra.mxu0 %v3045_v55  ;;  %2638 = vmatpush3.bf16.msra.mxu1 %v3082_v20 }
 0x486   :  { %2613 = vmatprep.subr.bf16.mxu0 %v3048_v56  ;;  %2639 = vmatprep.subr.bf16.mxu1 %v2932_v40 }
 0x489   :  { %2615 = vmatpush1.bf16.msra.mxu0 %v3059_v2  ;;  %2641 = vmatpush3.bf16.msra.mxu1 %v3093_v24 }
 0x48a   :  { %2617 = vmatprep.subr.bf16.mxu0 %v3065_v4  ;;  %2642 = vmatprep.subr.bf16.mxu1 %v2932_v40 }
 0x48d   :  { %2619 = vmatpush1.bf16.msra.mxu0 %v3073_v13  ;;  %2644 = vmatpush3.bf16.msra.mxu1 %v3100_v29 }
 0x48e   :  { %2621 = vmatprep.subr.bf16.mxu0 %v3079_v15  ;;  %2645 = vmatprep.subr.bf16.mxu1 %v2932_v40 }
 0x491   :  { %2623 = vmatpush1.bf16.msra.mxu0 %v3089_v23  ;;  %2647 = vmatpush3.bf16.msra.mxu1 %v3108_v32 }
 0x492   :  { %2649 = vmatprep.subr.bf16.mxu0 %v2995_v9  ;;  %2680 = vmatprep.subr.bf16.mxu1 %v2932_v40 }
 0x547   :  { %v1133_v48 = vpop.f32.mrb[8].mxu0  ;;  %v1204_v8 = vpop.f32.mrb[16].mxu1 }
 0x548   :  { %v2768_v11 = vadd.f32 %v1133_v48, %v3163_v3  ;;  %v1135_v12 = vpop.f32.mrb[9].mxu0  ;;  %v2142_v14 = vpop.f32.mrb[17].mxu1  ;;  %v1222_v31 = vadd.f32 %v3172_v28, %v1204_v8 }
 0x549   :  { %v2769_v19 = vadd.f32 %v1135_v12, %v3165_v6 }
 0x54a   :  { %v1752_v16 = vmul.f32 -1.442695, %v2768_v11 }
 0x54b   :  { %v1753_v21 = vmul.f32 -1.442695, %v2769_v19 }
 0x54c   :  { %2839 = vpow2.f32 %v1752_v16 }
 0x54d   :  { %2841 = vpow2.f32 %v1753_v21 }
 0x556   :  { %v2840_v22 = vpop.eup %2839 }
 0x557   :  { %v1212_v50 = vadd.f32 1.0, %v2840_v22  ;;  %v2842_v27 = vpop.eup %2841 }
 0x558   :  { %v1219_v30 = vadd.f32 1.0, %v2842_v27 }
 0x559   :  { %2843 = vrcp.f32 %v1212_v50 }
 0x55a   :  { %2845 = vrcp.f32 %v1219_v30 }
 0x563   :  { %v2844_v33 = vpop.eup %2843 }
 0x564   :  { %v1223_v36 = vmul.f32 %v2844_v33, %v1222_v31  ;;  %v2846_v38 = vpop.eup %2845 }
 0x565   :  { %v1226_v43 = vsub.f32 1.0, %v2846_v38  ;;  %v1228_v49 = vmul.f32 %v2846_v38, %v3319_v7 }
 0x566   :  { %v1224_v37 = vadd.f32 %v1223_v36, %v3157_v57 }
 0x568   :  { %2847 = vtanh.f32 %v1224_v37 }
 0x572   :  { %v2848_v42 = vpop.eup %2847 }
 0x573   :  { %v1227_v47 = vmul.f32 %v2848_v42, %v1226_v43 }
 0x575   :  { %v3367_v52 = vadd.f32 %v1228_v49, %v1227_v47 }
 0x577   :  { %1754 = vst [vmem:[%s3470_s5 + $0x20] sm:$0xff] %v3367_v52  ;;  %1299 = vmatmul.mubr.f32.vlgmr.msra.gmra.mrb[10].mxu0 %v3367_v52  ;;  %2176 = vmatmul.mubr.f32.vlgmr.msra.gmra.mrb[18].mxu1 %v3367_v52 }
 0x578   :  { %2651 = vmatpush1.bf16.msra.mxu0 %v2997_v17  ;;  %2682 = vmatpush3.bf16.msra.mxu1 %v3024_v41 }
 0x579   :  { %2653 = vmatprep.subr.bf16.mxu0 %v3000_v18  ;;  %2683 = vmatprep.subr.bf16.mxu1 %v2932_v40 }
 0x57a   :  { %1465 = vmatprep.mubr.f32.mxu0 %v2931_v0  ;;  %2210 = vmatprep.mubr.msk.f32.mxu1 %vm2933_vm0, %v2931_v0 }
 0x57c   :  { %2655 = vmatpush1.bf16.msra.mxu0 %v3008_v25  ;;  %2685 = vmatpush3.bf16.msra.mxu1 %v3037_v51 }
 0x57d   :  { %2657 = vmatprep.subr.bf16.mxu0 %v3011_v26  ;;  %2686 = vmatprep.subr.bf16.mxu1 %v2932_v40 }
 0x580   :  { %2659 = vmatpush1.bf16.msra.mxu0 %v3018_v34  ;;  %2688 = vmatpush3.bf16.msra.mxu1 %v3051_v61 }
 0x581   :  { %2661 = vmatprep.subr.bf16.mxu0 %v3021_v35  ;;  %2689 = vmatprep.subr.bf16.mxu1 %v2932_v40 }
 0x584   :  { %2663 = vmatpush1.bf16.msra.mxu0 %v3031_v45  ;;  %2691 = vmatpush3.bf16.msra.mxu1 %v3068_v10 }
 0x585   :  { %2665 = vmatprep.subr.bf16.mxu0 %v3034_v46  ;;  %2692 = vmatprep.subr.bf16.mxu1 %v2932_v40 }
 0x588   :  { %2667 = vmatpush1.bf16.msra.mxu0 %v3045_v55  ;;  %2694 = vmatpush3.bf16.msra.mxu1 %v3082_v20 }
 0x589   :  { %2669 = vmatprep.subr.bf16.mxu0 %v3048_v56  ;;  %2695 = vmatprep.subr.bf16.mxu1 %v2932_v40 }
 0x58c   :  { %2671 = vmatpush1.bf16.msra.mxu0 %v3059_v2  ;;  %2697 = vmatpush3.bf16.msra.mxu1 %v3093_v24 }
 0x58d   :  { %2673 = vmatprep.subr.bf16.mxu0 %v3065_v4  ;;  %2698 = vmatprep.subr.bf16.mxu1 %v2932_v40 }
 0x590   :  { %2675 = vmatpush1.bf16.msra.mxu0 %v3073_v13  ;;  %2700 = vmatpush3.bf16.msra.mxu1 %v3100_v29 }
 0x591   :  { %2677 = vmatprep.subr.bf16.mxu0 %v3079_v15  ;;  %2701 = vmatprep.subr.bf16.mxu1 %v2932_v40 }
 0x594   :  { %2679 = vmatpush1.bf16.msra.mxu0 %v3089_v23  ;;  %2703 = vmatpush3.bf16.msra.mxu1 %v3108_v32 }
 0x595   :  { %2705 = vmatprep.subr.bf16.mxu0 %v2995_v9  ;;  %2736 = vmatprep.subr.bf16.mxu1 %v2932_v40 }
 0x64a   :  { %v1300_v57 = vpop.f32.mrb[10].mxu0  ;;  %v1371_v54 = vpop.f32.mrb[18].mxu1 }
 0x64b   :  { %v2770_v58 = vadd.f32 %v1300_v57, %v3163_v3  ;;  %v1302_v39 = vpop.f32.mrb[11].mxu0  ;;  %v2177_v44 = vpop.f32.mrb[19].mxu1  ;;  %v1389_v9 = vadd.f32 %v3172_v28, %v1371_v54 }
 0x64c   :  { %v2771_v63 = vadd.f32 %v1302_v39, %v3165_v6 }
 0x64d   :  { %v1755_v60 = vmul.f32 -1.442695, %v2770_v58 }
 0x64e   :  { %v1756_v1 = vmul.f32 -1.442695, %v2771_v63 }
 0x64f   :  { %2849 = vpow2.f32 %v1755_v60 }
 0x650   :  { %2851 = vpow2.f32 %v1756_v1 }
 0x659   :  { %v2850_v5 = vpop.eup %2849 }
 0x65a   :  { %v1379_v7 = vadd.f32 1.0, %v2850_v5  ;;  %v2852_v48 = vpop.eup %2851 }
 0x65b   :  { %v1386_v8 = vadd.f32 1.0, %v2852_v48 }
 0x65c   :  { %2853 = vrcp.f32 %v1379_v7 }
 0x65d   :  { %2855 = vrcp.f32 %v1386_v8 }
 0x666   :  { %v2854_v11 = vpop.eup %2853 }
 0x667   :  { %v1390_v12 = vmul.f32 %v2854_v11, %v1389_v9  ;;  %v2856_v16 = vpop.eup %2855 }
 0x668   :  { %v1393_v19 = vsub.f32 1.0, %v2856_v16  ;;  %v1395_v50 = vmul.f32 %v2856_v16, %v3367_v52 }
 0x669   :  { %v1391_v14 = vadd.f32 %v1390_v12, %v3155_v53 }
 0x66b   :  { %2857 = vtanh.f32 %v1391_v14 }
 0x675   :  { %v2858_v21 = vpop.eup %2857 }
 0x676   :  { %v1394_v22 = vmul.f32 %v2858_v21, %v1393_v19 }
 0x678   :  { %v1396_v27 = vadd.f32 %v1395_v50, %v1394_v22 }
 0x67a   :  { %1757 = vst [vmem:[%s3470_s5 + $0x28] sm:$0xff] %v1396_v27  ;;  %1466 = vmatmul.mubr.f32.vlgmr.msra.gmra.mrb[12].mxu0 %v1396_v27  ;;  %2211 = vmatmul.mubr.f32.vlgmr.msra.gmra.mrb[20].mxu1 %v1396_v27 }
 0x67b   :  { %2707 = vmatpush1.bf16.msra.mxu0 %v2997_v17  ;;  %2738 = vmatpush3.bf16.msra.mxu1 %v3024_v41 }
 0x67c   :  { %2709 = vmatprep.subr.bf16.mxu0 %v3000_v18  ;;  %2739 = vmatprep.subr.bf16.mxu1 %v2932_v40 }
 0x67d   :  { %1632 = vmatprep.mubr.f32.mxu0 %v2931_v0  ;;  %2245 = vmatprep.mubr.msk.f32.mxu1 %vm2933_vm0, %v2931_v0 }
 0x67f   :  { %2711 = vmatpush1.bf16.msra.mxu0 %v3008_v25  ;;  %2741 = vmatpush3.bf16.msra.mxu1 %v3037_v51 }
 0x680   :  { %2713 = vmatprep.subr.bf16.mxu0 %v3011_v26  ;;  %2742 = vmatprep.subr.bf16.mxu1 %v2932_v40 }
 0x683   :  { %2715 = vmatpush1.bf16.msra.mxu0 %v3018_v34  ;;  %2744 = vmatpush3.bf16.msra.mxu1 %v3051_v61 }
 0x684   :  { %2717 = vmatprep.subr.bf16.mxu0 %v3021_v35  ;;  %2745 = vmatprep.subr.bf16.mxu1 %v2932_v40 }
 0x687   :  { %2719 = vmatpush1.bf16.msra.mxu0 %v3031_v45  ;;  %2747 = vmatpush3.bf16.msra.mxu1 %v3068_v10 }
 0x688   :  { %2721 = vmatprep.subr.bf16.mxu0 %v3034_v46  ;;  %2748 = vmatprep.subr.bf16.mxu1 %v2932_v40 }
 0x68b   :  { %2723 = vmatpush1.bf16.msra.mxu0 %v3045_v55  ;;  %2750 = vmatpush3.bf16.msra.mxu1 %v3082_v20 }
 0x68c   :  { %2725 = vmatprep.subr.bf16.mxu0 %v3048_v56  ;;  %2751 = vmatprep.subr.bf16.mxu1 %v2932_v40 }
 0x68f   :  { %2727 = vmatpush1.bf16.msra.mxu0 %v3059_v2  ;;  %2753 = vmatpush3.bf16.msra.mxu1 %v3093_v24 }
 0x690   :  { %2729 = vmatprep.subr.bf16.mxu0 %v3065_v4  ;;  %2754 = vmatprep.subr.bf16.mxu1 %v2932_v40 }
 0x693   :  { %2731 = vmatpush1.bf16.msra.mxu0 %v3073_v13  ;;  %2756 = vmatpush3.bf16.msra.mxu1 %v3100_v29 }
 0x694   :  { %2733 = vmatprep.subr.bf16.mxu0 %v3079_v15  ;;  %2757 = vmatprep.subr.bf16.mxu1 %v2932_v40 }
 0x697   :  { %2735 = vmatpush1.bf16.msra.mxu0 %v3089_v23  ;;  %2759 = vmatpush3.bf16.msra.mxu1 %v3108_v32 }
 0x74d   :  { %v1467_v0 = vpop.f32.mrb[12].mxu0  ;;  %v1538_v17 = vpop.f32.mrb[20].mxu1 }
 0x74e   :  { %v2772_v18 = vadd.f32 %v1467_v0, %v3163_v3  ;;  %v1469_v25 = vpop.f32.mrb[13].mxu0  ;;  %v2212_v26 = vpop.f32.mrb[21].mxu1  ;;  %v1556_v55 = vadd.f32 %v3172_v28, %v1538_v17 }
 0x74f   :  { %v2773_v35 = vadd.f32 %v1469_v25, %v3165_v6 }
 0x750   :  { %v1758_v34 = vmul.f32 -1.442695, %v2772_v18 }
 0x751   :  { %v1759_v41 = vmul.f32 -1.442695, %v2773_v35 }
 0x752   :  { %2859 = vpow2.f32 %v1758_v34 }
 0x753   :  { %2861 = vpow2.f32 %v1759_v41 }
 0x75c   :  { %v2860_v45 = vpop.eup %2859 }
 0x75d   :  { %v1546_v46 = vadd.f32 1.0, %v2860_v45  ;;  %v2862_v40 = vpop.eup %2861 }
 0x75e   :  { %v1553_v51 = vadd.f32 1.0, %v2862_v40 }
 0x75f   :  { %2863 = vrcp.f32 %v1546_v46 }
 0x760   :  { %2865 = vrcp.f32 %v1553_v51 }
 0x769   :  { %v2864_v56 = vpop.eup %2863 }
 0x76a   :  { %v1557_v61 = vmul.f32 %v2864_v56, %v1556_v55  ;;  %v2866_v4 = vpop.eup %2865 }
 0x76b   :  { %v1560_v10 = vsub.f32 1.0, %v2866_v4  ;;  %v1562_v20 = vmul.f32 %v2866_v4, %v1396_v27 }
 0x76c   :  { %v1558_v2 = vadd.f32 %v1557_v61, %v3161_v62 }
 0x76e   :  { %2867 = vtanh.f32 %v1558_v2 }
 0x778   :  { %v2868_v13 = vpop.eup %2867 }
 0x779   :  { %v1561_v15 = vmul.f32 %v2868_v13, %v1560_v10 }
 0x77b   :  { %v1563_v23 = vadd.f32 %v1562_v20, %v1561_v15 }
 0x77d   :  { %1760 = vst [vmem:[%s3470_s5 + $0x30] sm:$0xff] %v1563_v23  ;;  %1633 = vmatmul.mubr.f32.vlgmr.msra.gmra.mrb[14].mxu0 %v1563_v23  ;;  %2246 = vmatmul.mubr.f32.vlgmr.msra.gmra.mrb[22].mxu1 %v1563_v23 }
 0x850   :  { %v1634_v24 = vpop.f32.mrb[14].mxu0  ;;  %v1705_v29 = vpop.f32.mrb[22].mxu1 }
 0x851   :  { %v2774_v32 = vadd.f32 %v1634_v24, %v3163_v3  ;;  %v1636_v53 = vpop.f32.mrb[15].mxu0  ;;  %v2247_v30 = vpop.f32.mrb[23].mxu1  ;;  %v1723_v42 = vadd.f32 %v3172_v28, %v1705_v29 }
 0x852   :  { %v2775_v31 = vadd.f32 %v1636_v53, %v3165_v6 }
 0x853   :  { %v1761_v62 = vmul.f32 -1.442695, %v2774_v32 }
 0x854   :  { %v1762_v33 = vmul.f32 -1.442695, %v2775_v31 }
 0x855   :  { %2869 = vpow2.f32 %v1761_v62 }
 0x856   :  { %2871 = vpow2.f32 %v1762_v33 }
 0x85f   :  { %v2870_v36 = vpop.eup %2869 }
 0x860   :  { %v1713_v37 = vadd.f32 1.0, %v2870_v36  ;;  %v2872_v38 = vpop.eup %2871 }
 0x861   :  { %v1720_v43 = vadd.f32 1.0, %v2872_v38 }
 0x862   :  { %2873 = vrcp.f32 %v1713_v37 }
 0x863   :  { %2875 = vrcp.f32 %v1720_v43 }
 0x86c   :  { %v2874_v47 = vpop.eup %2873 }
 0x86d   :  { %v1724_v49 = vmul.f32 %v2874_v47, %v1723_v42  ;;  %v2876_v52 = vpop.eup %2875 }
 0x86e   :  { %v1727_v57 = vsub.f32 1.0, %v2876_v52  ;;  %v1729_v58 = vmul.f32 %v2876_v52, %v1563_v23 }
 0x86f   :  { %v1725_v3 = vadd.f32 %v1724_v49, %v3159_v59 }
 0x871   :  { %2877 = vtanh.f32 %v1725_v3 }
 0x87b   :  { %v2878_v54 = vpop.eup %2877 }
 0x87c   :  { %v1728_v6 = vmul.f32 %v2878_v54, %v1727_v57 }
 0x87e   :  { %v1730_v39 = vadd.f32 %v1729_v58, %v1728_v6 }
 0x880   :  { %1763 = vst [vmem:[%s3470_s5 + $0x38] sm:$0xff] %v1730_v39 }
 0x881   :  { %1738 = vsyncpa [#allocation4], 1 }
 0x882   :  { %1739 = vsyncpa [#allocation6], 1 }

</bundles_post_ra>
